<compile_context>
chip_gen: v7x
topology: tpu7x:2x2x1
jax: 0.10.0
libtpu: 0.0.40
codegen_flags: <defaults>
</compile_context>

<pallas_src>
import functools

import jax
import jax.numpy as jnp
from jax.experimental import pallas as pl
from jax.experimental.pallas import tpu as pltpu


# ------------------------------ Pallas kernels ----------------------------- #

def _conv_gemm_kernel(w_ref, p_ref, b_ref, o_ref):
    """o = relu(w @ p + b).  w: (mb, K) f32 (tiny, cast to bf16 for the MXU),
    p: (K, N) bf16 patches, b: (mb, 1) f32, o: (mb, N) f32 (lane-dense N)."""
    w = w_ref[...].astype(p_ref.dtype)
    acc = jnp.dot(w, p_ref[...], preferred_element_type=jnp.float32)
    o_ref[...] = jnp.maximum(acc + b_ref[...], 0.0).astype(o_ref.dtype)


def _mlp_kernel(x_ref, w1_ref, b1_ref, w2_ref, b2_ref, o_ref):
    """o = relu(x @ w1 + b1) @ w2 + b2  (fc1 + ReLU + fc2 fused, f32 accum)."""
    h = jnp.dot(x_ref[...], w1_ref[...], preferred_element_type=jnp.float32)
    h = jnp.maximum(h + b1_ref[...], 0.0)
    out = jnp.dot(h.astype(w2_ref.dtype), w2_ref[...],
                  preferred_element_type=jnp.float32)
    o_ref[...] = (out + b2_ref[...]).astype(o_ref.dtype)


# ------------------------------ kernel wrappers ----------------------------- #

def conv_gemm(w, p_t, b_col, *, m_block=None):
    """relu(w @ p_t + b_col).  w: (O, K) f32, p_t: (K, N) bf16, b: (O, 1) f32.

    Output is (O, N) f32 (lane-dense: N = B*OH*OW >= 220).  `m_block` splits
    the O rows into O//m_block grid steps marked "parallel" (both v7x cores).
    """
    O, K = w.shape
    N = p_t.shape[1]
    if m_block is None:
        m_block = O
    grid = (O // m_block,)
    flops = 2 * O * K * N
    bytes_accessed = w.size * 4 + p_t.size * 2 + b_col.size * 4 + O * N * 4
    return pl.pallas_call(
        _conv_gemm_kernel,
        out_shape=jax.ShapeDtypeStruct((O, N), jnp.float32),
        grid=grid,
        in_specs=[
            pl.BlockSpec((m_block, K), lambda i: (i, 0)),
            pl.BlockSpec((K, N), lambda i: (0, 0)),
            pl.BlockSpec((m_block, 1), lambda i: (i, 0)),
        ],
        out_specs=pl.BlockSpec((m_block, N), lambda i: (i, 0)),
        compiler_params=pltpu.CompilerParams(
            dimension_semantics=("parallel",)),
        cost_estimate=pl.CostEstimate(flops=flops, transcendentals=0,
                                      bytes_accessed=bytes_accessed),
    )(w, p_t, b_col)


def mlp_fused(x, w1, b1, w2, b2):
    """relu(x @ w1 + b1) @ w2 + b2 in one kernel.

    x: (B, 3520) bf16, w1: (3520, 256) bf16, b1: (1, 256) f32,
    w2: (256, 128) bf16 (fc2 zero-padded to 128 lanes), b2: (1, 128) f32.
    """
    B, K = x.shape
    H = w1.shape[1]
    Np = w2.shape[1]
    flops = 2 * B * K * H + 2 * B * H * Np
    bytes_accessed = (x.size * 2 + w1.size * 2 + b1.size * 4 +
                      w2.size * 2 + b2.size * 4 + B * Np * 4)
    return pl.pallas_call(
        _mlp_kernel,
        out_shape=jax.ShapeDtypeStruct((B, Np), jnp.float32),
        grid=(1,),
        in_specs=[
            pl.BlockSpec((B, K), lambda i: (0, 0)),
            pl.BlockSpec((K, H), lambda i: (0, 0)),
            pl.BlockSpec((1, H), lambda i: (0, 0)),
            pl.BlockSpec((H, Np), lambda i: (0, 0)),
            pl.BlockSpec((1, Np), lambda i: (0, 0)),
        ],
        out_specs=pl.BlockSpec((B, Np), lambda i: (0, 0)),
        compiler_params=pltpu.CompilerParams(
            dimension_semantics=("arbitrary",)),
        cost_estimate=pl.CostEstimate(flops=flops, transcendentals=0,
                                      bytes_accessed=bytes_accessed),
    )(x, w1, b1, w2, b2)


# ------------------------------- glue (JAX) -------------------------------- #

def im2col_T(x_nchw, kh, kw, stride):
    """(B,C,H,W) -> ((C*kh*kw, B*OH*OW), OH, OW).

    Row order is (C, kh, kw) so it contracts against torch's
    weight.reshape(O, -1); column order is (B, OH, OW)."""
    B, C, H, W = x_nchw.shape
    OH = (H - kh) // stride + 1
    OW = (W - kw) // stride + 1
    cols = []
    for di in range(kh):
        for dj in range(kw):
            cols.append(
                x_nchw[:, :,
                       di:di + stride * (OH - 1) + 1:stride,
                       dj:dj + stride * (OW - 1) + 1:stride])
    p = jnp.stack(cols, axis=2)              # (B, C, kh*kw, OH, OW)
    p = p.transpose(1, 2, 0, 3, 4)           # (C, kh*kw, B, OH, OW)
    return p.reshape(C * kh * kw, B * OH * OW), OH, OW


FC2_PAD = 128   # lane-dense fc2 output (real action_space columns come first)


def prepare_params(params):
    """One-time weight repack, run OUTSIDE jit: flatten conv weights to (O, K),
    transpose fc weights, pad fc2 to 128 lanes, cast the big GEMM operands to
    bf16 (biases and tiny conv weights stay f32; conv weights are cast to bf16
    in-kernel right before the MXU)."""
    a = params["fc2_w"].shape[0]
    h = params["fc2_w"].shape[1]
    fc2_w = jnp.zeros((h, FC2_PAD), jnp.bfloat16)
    fc2_w = fc2_w.at[:, :a].set(params["fc2_w"].T.astype(jnp.bfloat16))
    fc2_b = jnp.zeros((1, FC2_PAD), jnp.float32).at[0, :a].set(params["fc2_b"])
    return {
        "conv1_w": params["conv1_w"].reshape(params["conv1_w"].shape[0], -1).astype(jnp.float32),
        "conv1_b": params["conv1_b"].astype(jnp.float32).reshape(-1, 1),
        "conv2_w": params["conv2_w"].reshape(params["conv2_w"].shape[0], -1).astype(jnp.float32),
        "conv2_b": params["conv2_b"].astype(jnp.float32).reshape(-1, 1),
        "fc1_w": params["fc1_w"].T.astype(jnp.bfloat16),              # (3520, 256)
        "fc1_b": params["fc1_b"].astype(jnp.float32).reshape(1, -1),  # (1, 256)
        "fc2_w": fc2_w,                                               # (256, 128)
        "fc2_b": fc2_b,                                               # (1, 128)
    }


def dqn_forward(p, x, *, action_space=3):
    """x: (B, 4, 92, 100) f32 NCHW -> (B, action_space) f32."""
    B = x.shape[0]
    x = x.astype(jnp.bfloat16)

    # conv1 + ReLU: weight @ patches^T  ->  lane-dense (16, B*22*24)
    p1t, oh1, ow1 = im2col_T(x, 8, 8, 4)
    z1 = conv_gemm(p["conv1_w"], p1t, p["conv1_b"], m_block=8)

    # conv2 (+ the post-flatten ReLU, which is the same elementwise op)
    z1 = z1.reshape(16, B, oh1, ow1).transpose(1, 0, 2, 3)           # (B,16,22,24), ~67 KB
    p2t, oh2, ow2 = im2col_T(z1.astype(jnp.bfloat16), 4, 4, 2)       # (256, B*110)
    z2 = conv_gemm(p["conv2_w"], p2t, p["conv2_b"])                  # (32, B*110)

    # torch x.view(B, -1) on the NCHW conv2 output == (c, oh, ow)-major rows
    act = z2.reshape(32, B, oh2 * ow2).transpose(1, 0, 2).reshape(B, -1)
    act = act.astype(jnp.bfloat16)                                   # (B, 3520)

    # fc1 + ReLU + fc2 fused in one kernel; fc2 columns were padded to 128
    out = mlp_fused(act, p["fc1_w"], p["fc1_b"], p["fc2_w"], p["fc2_b"])
    return out[:, :action_space]


# -------------------------- deterministic init ----------------------------- #

def init_params(key, action_space=3):
    """Deterministic synthetic weights with torch-default-like uniform bounds."""
    ks = jax.random.split(key, 8)

    def u(k, shape, fan_in):
        bound = 1.0 / jnp.sqrt(jnp.float32(fan_in))
        return jax.random.uniform(k, shape, jnp.float32, -bound, bound)

    return {
        "conv1_w": u(ks[0], (16, 4, 8, 8), 4 * 8 * 8),
        "conv1_b": u(ks[1], (16,), 4 * 8 * 8),
        "conv2_w": u(ks[2], (32, 16, 4, 4), 16 * 4 * 4),
        "conv2_b": u(ks[3], (32,), 16 * 4 * 4),
        "fc1_w":   u(ks[4], (256, 3520), 3520),
        "fc1_b":   u(ks[5], (256,), 3520),
        "fc2_w":   u(ks[6], (action_space, 256), 256),
        "fc2_b":   u(ks[7], (action_space,), 256),
    }


# ------------------------------ reference ---------------------------------- #

def dqn_forward_ref(params, x):
    """Pure-JAX f32 reference (XLA convs) for a sanity check."""
    dn = ("NCHW", "OIHW", "NCHW")
    x = jax.lax.conv_general_dilated(x, params["conv1_w"], (4, 4), "VALID",
                                     dimension_numbers=dn)
    x = jnp.maximum(x + params["conv1_b"][None, :, None, None], 0.0)
    x = jax.lax.conv_general_dilated(x, params["conv2_w"], (2, 2), "VALID",
                                     dimension_numbers=dn)
    x = x + params["conv2_b"][None, :, None, None]
    x = x.reshape(x.shape[0], -1)
    x = jnp.maximum(x, 0.0)
    x = jnp.maximum(x @ params["fc1_w"].T + params["fc1_b"], 0.0)
    return x @ params["fc2_w"].T + params["fc2_b"]


if __name__ == "__main__":
    key = jax.random.PRNGKey(0)
    k_params, k_x = jax.random.split(key)

    raw = init_params(k_params, action_space=3)
    prepped = prepare_params(raw)          # one-time weight repack, outside jit

    # fc1 expects 3520 = 32 * 10 * 11 features, which pins the input spatial
    # size: H=92, W=100 -> conv1 (22, 24) -> conv2 (10, 11).  Batch = 2.
    x = jax.random.uniform(k_x, (2, 4, 92, 100), jnp.float32)

    fwd = jax.jit(functools.partial(dqn_forward, action_space=3))
    out = jax.block_until_ready(fwd(prepped, x))
    assert out.shape == (2, 3), out.shape

    ref = jax.block_until_ready(jax.jit(dqn_forward_ref)(raw, x))
    # 2e-2 tolerance matches the bf16 GEMM-operand path (f32 accumulation).
    assert jnp.allclose(out, ref, rtol=2e-2, atol=2e-2), (out, ref)

    print("KERNEL_OK")
</pallas_src>

<mosaic_0001>
module attributes {stable_mosaic.version = 11 : i64} {
  func.func @_conv_gemm_kernel(%arg0: i32, %arg1: memref<8x256xf32, #tpu.memory_space<vmem>>, %arg2: memref<256x1056xbf16, #tpu.memory_space<vmem>>, %arg3: memref<8x1xf32, #tpu.memory_space<vmem>>, %arg4: memref<8x1056xf32, #tpu.memory_space<vmem>>) attributes {dimension_semantics = [#tpu.dimension_semantics<parallel>], iteration_bounds = array<i64: 2>, scalar_prefetch = 0 : i64, scratch_operands = 0 : i64, tpu.core_type = #tpu.core_type<tc>, window_params = [{transform_indices = @transform_0, window_bounds = array<i64: 8, 256>}, {pipeline_mode = #tpu.pipeline_mode<synchronous>, transform_indices = @transform_1, window_bounds = array<i64: 256, 1056>}, {transform_indices = @transform_2, window_bounds = array<i64: 8, 1>}, {transform_indices = @transform_3, window_bounds = array<i64: 8, 1056>}]} {
    %c0 = arith.constant 0 : index
    %c0_0 = arith.constant 0 : index
    %0 = vector.load %arg1[%c0, %c0_0] : memref<8x256xf32, #tpu.memory_space<vmem>>, vector<8x256xf32>
    %1 = arith.truncf %0 : vector<8x256xf32> to vector<8x256xbf16>
    %c0_1 = arith.constant 0 : index
    %c0_2 = arith.constant 0 : index
    %2 = vector.load %arg2[%c0_1, %c0_2] : memref<256x1056xbf16, #tpu.memory_space<vmem>>, vector<256x1056xbf16>
    %cst = arith.constant dense<0.000000e+00> : vector<8x1056xf32>
    %3 = tpu.matmul %1, %2, %cst {dimension_numbers = #tpu.dot_dimension_numbers<[1], [0], [0], [1], [0, 0, 1, 1], [], []>} : vector<8x256xbf16>, vector<256x1056xbf16>, vector<8x1056xf32> -> vector<8x1056xf32>
    %c0_3 = arith.constant 0 : index
    %c0_4 = arith.constant 0 : index
    %4 = vector.load %arg3[%c0_3, %c0_4] : memref<8x1xf32, #tpu.memory_space<vmem>>, vector<8x1xf32>
    %5 = vector.broadcast %4 : vector<8x1xf32> to vector<8x1056xf32>
    %6 = arith.addf %3, %5 : vector<8x1056xf32>
    %cst_5 = arith.constant 0.000000e+00 : f32
    %7 = vector.broadcast %cst_5 : f32 to vector<8x1056xf32>
    %8 = arith.maximumf %6, %7 : vector<8x1056xf32>
    %c0_6 = arith.constant 0 : index
    %c0_7 = arith.constant 0 : index
    %9 = vector.load %arg4[%c0_6, %c0_7] : memref<8x1056xf32, #tpu.memory_space<vmem>>, vector<8x1056xf32>
    tpu.vector_store %arg4[%c0_6, %c0_7], %8 {strides = array<i32>} : memref<8x1056xf32, #tpu.memory_space<vmem>>, vector<8x1056xf32>,
    return
  }
  func.func @transform_0(%arg0: i32) -> (i32, i32) {
    %c0_i32 = arith.constant 0 : i32
    %c0_i32_0 = arith.constant 0 : i32
    return %arg0, %c0_i32 : i32, i32
  }
  func.func @transform_1(%arg0: i32) -> (i32, i32) {
    %c0_i32 = arith.constant 0 : i32
    %c0_i32_0 = arith.constant 0 : i32
    %c0_i32_1 = arith.constant 0 : i32
    return %c0_i32, %c0_i32_0 : i32, i32
  }
  func.func @transform_2(%arg0: i32) -> (i32, i32) {
    %c0_i32 = arith.constant 0 : i32
    %c0_i32_0 = arith.constant 0 : i32
    return %arg0, %c0_i32 : i32, i32
  }
  func.func @transform_3(%arg0: i32) -> (i32, i32) {
    %c0_i32 = arith.constant 0 : i32
    %c0_i32_0 = arith.constant 0 : i32
    return %arg0, %c0_i32 : i32, i32
  }
}

module attributes {stable_mosaic.version = 11 : i64} {
  func.func @_conv_gemm_kernel(%arg0: i32, %arg1: memref<32x256xf32, #tpu.memory_space<vmem>>, %arg2: memref<256x220xbf16, #tpu.memory_space<vmem>>, %arg3: memref<32x1xf32, #tpu.memory_space<vmem>>, %arg4: memref<32x220xf32, #tpu.memory_space<vmem>>) attributes {dimension_semantics = [#tpu.dimension_semantics<parallel>], iteration_bounds = array<i64: 1>, scalar_prefetch = 0 : i64, scratch_operands = 0 : i64, tpu.core_type = #tpu.core_type<tc>, window_params = [{transform_indices = @transform_0, window_bounds = array<i64: 32, 256>}, {pipeline_mode = #tpu.pipeline_mode<synchronous>, transform_indices = @transform_1, window_bounds = array<i64: 256, 220>}, {transform_indices = @transform_2, window_bounds = array<i64: 32, 1>}, {transform_indices = @transform_3, window_bounds = array<i64: 32, 220>}]} {
    %c0 = arith.constant 0 : index
    %c0_0 = arith.constant 0 : index
    %0 = vector.load %arg1[%c0, %c0_0] : memref<32x256xf32, #tpu.memory_space<vmem>>, vector<32x256xf32>
    %1 = arith.truncf %0 : vector<32x256xf32> to vector<32x256xbf16>
    %c0_1 = arith.constant 0 : index
    %c0_2 = arith.constant 0 : index
    %2 = vector.load %arg2[%c0_1, %c0_2] : memref<256x220xbf16, #tpu.memory_space<vmem>>, vector<256x220xbf16>
    %cst = arith.constant dense<0.000000e+00> : vector<32x220xf32>
    %3 = tpu.matmul %1, %2, %cst {dimension_numbers = #tpu.dot_dimension_numbers<[1], [0], [0], [1], [0, 0, 1, 1], [], []>} : vector<32x256xbf16>, vector<256x220xbf16>, vector<32x220xf32> -> vector<32x220xf32>
    %c0_3 = arith.constant 0 : index
    %c0_4 = arith.constant 0 : index
    %4 = vector.load %arg3[%c0_3, %c0_4] : memref<32x1xf32, #tpu.memory_space<vmem>>, vector<32x1xf32>
    %5 = vector.broadcast %4 : vector<32x1xf32> to vector<32x220xf32>
    %6 = arith.addf %3, %5 : vector<32x220xf32>
    %cst_5 = arith.constant 0.000000e+00 : f32
    %7 = vector.broadcast %cst_5 : f32 to vector<32x220xf32>
    %8 = arith.maximumf %6, %7 : vector<32x220xf32>
    %c0_6 = arith.constant 0 : index
    %c0_7 = arith.constant 0 : index
    %9 = vector.load %arg4[%c0_6, %c0_7] : memref<32x220xf32, #tpu.memory_space<vmem>>, vector<32x220xf32>
    tpu.vector_store %arg4[%c0_6, %c0_7], %8 {strides = array<i32>} : memref<32x220xf32, #tpu.memory_space<vmem>>, vector<32x220xf32>,
    return
  }
  func.func @transform_0(%arg0: i32) -> (i32, i32) {
    %c0_i32 = arith.constant 0 : i32
    %c0_i32_0 = arith.constant 0 : i32
    return %arg0, %c0_i32 : i32, i32
  }
  func.func @transform_1(%arg0: i32) -> (i32, i32) {
    %c0_i32 = arith.constant 0 : i32
    %c0_i32_0 = arith.constant 0 : i32
    %c0_i32_1 = arith.constant 0 : i32
    return %c0_i32, %c0_i32_0 : i32, i32
  }
  func.func @transform_2(%arg0: i32) -> (i32, i32) {
    %c0_i32 = arith.constant 0 : i32
    %c0_i32_0 = arith.constant 0 : i32
    return %arg0, %c0_i32 : i32, i32
  }
  func.func @transform_3(%arg0: i32) -> (i32, i32) {
    %c0_i32 = arith.constant 0 : i32
    %c0_i32_0 = arith.constant 0 : i32
    return %arg0, %c0_i32 : i32, i32
  }
}

module attributes {stable_mosaic.version = 11 : i64} {
  func.func @_mlp_kernel(%arg0: i32, %arg1: memref<2x3520xbf16, #tpu.memory_space<vmem>>, %arg2: memref<3520x256xbf16, #tpu.memory_space<vmem>>, %arg3: memref<1x256xf32, #tpu.memory_space<vmem>>, %arg4: memref<256x128xbf16, #tpu.memory_space<vmem>>, %arg5: memref<1x128xf32, #tpu.memory_space<vmem>>, %arg6: memref<2x128xf32, #tpu.memory_space<vmem>>) attributes {dimension_semantics = [#tpu.dimension_semantics<arbitrary>], iteration_bounds = array<i64: 1>, scalar_prefetch = 0 : i64, scratch_operands = 0 : i64, tpu.core_type = #tpu.core_type<tc>, window_params = [{pipeline_mode = #tpu.pipeline_mode<synchronous>, transform_indices = @transform_0, window_bounds = array<i64: 2, 3520>}, {pipeline_mode = #tpu.pipeline_mode<synchronous>, transform_indices = @transform_1, window_bounds = array<i64: 3520, 256>}, {pipeline_mode = #tpu.pipeline_mode<synchronous>, transform_indices = @transform_2, window_bounds = array<i64: 1, 256>}, {pipeline_mode = #tpu.pipeline_mode<synchronous>, transform_indices = @transform_3, window_bounds = array<i64: 256, 128>}, {pipeline_mode = #tpu.pipeline_mode<synchronous>, transform_indices = @transform_4, window_bounds = array<i64: 1, 128>}, {pipeline_mode = #tpu.pipeline_mode<synchronous>, transform_indices = @transform_5, window_bounds = array<i64: 2, 128>}]} {
    %c0 = arith.constant 0 : index
    %c0_0 = arith.constant 0 : index
    %0 = vector.load %arg1[%c0, %c0_0] : memref<2x3520xbf16, #tpu.memory_space<vmem>>, vector<2x3520xbf16>
    %c0_1 = arith.constant 0 : index
    %c0_2 = arith.constant 0 : index
    %1 = vector.load %arg2[%c0_1, %c0_2] : memref<3520x256xbf16, #tpu.memory_space<vmem>>, vector<3520x256xbf16>
    %cst = arith.constant dense<0.000000e+00> : vector<2x256xf32>
    %2 = tpu.matmul %0, %1, %cst {dimension_numbers = #tpu.dot_dimension_numbers<[1], [0], [0], [1], [0, 0, 1, 1], [], []>} : vector<2x3520xbf16>, vector<3520x256xbf16>, vector<2x256xf32> -> vector<2x256xf32>
    %c0_3 = arith.constant 0 : index
    %c0_4 = arith.constant 0 : index
    %3 = vector.load %arg3[%c0_3, %c0_4] : memref<1x256xf32, #tpu.memory_space<vmem>>, vector<1x256xf32>
    %4 = vector.broadcast %3 : vector<1x256xf32> to vector<2x256xf32>
    %5 = arith.addf %2, %4 : vector<2x256xf32>
    %cst_5 = arith.constant 0.000000e+00 : f32
    %6 = vector.broadcast %cst_5 : f32 to vector<2x256xf32>
    %7 = arith.maximumf %5, %6 : vector<2x256xf32>
    %8 = arith.truncf %7 : vector<2x256xf32> to vector<2x256xbf16>
    %c0_6 = arith.constant 0 : index
    %c0_7 = arith.constant 0 : index
    %9 = vector.load %arg4[%c0_6, %c0_7] : memref<256x128xbf16, #tpu.memory_space<vmem>>, vector<256x128xbf16>
    %cst_8 = arith.constant dense<0.000000e+00> : vector<2x128xf32>
    %10 = tpu.matmul %8, %9, %cst_8 {dimension_numbers = #tpu.dot_dimension_numbers<[1], [0], [0], [1], [0, 0, 1, 1], [], []>} : vector<2x256xbf16>, vector<256x128xbf16>, vector<2x128xf32> -> vector<2x128xf32>
    %c0_9 = arith.constant 0 : index
    %c0_10 = arith.constant 0 : index
    %11 = vector.load %arg5[%c0_9, %c0_10] : memref<1x128xf32, #tpu.memory_space<vmem>>, vector<1x128xf32>
    %12 = vector.broadcast %11 : vector<1x128xf32> to vector<2x128xf32>
    %13 = arith.addf %10, %12 : vector<2x128xf32>
    %c0_11 = arith.constant 0 : index
    %c0_12 = arith.constant 0 : index
    %14 = vector.load %arg6[%c0_11, %c0_12] : memref<2x128xf32, #tpu.memory_space<vmem>>, vector<2x128xf32>
    tpu.vector_store %arg6[%c0_11, %c0_12], %13 {strides = array<i32>} : memref<2x128xf32, #tpu.memory_space<vmem>>, vector<2x128xf32>,
    return
  }
  func.func @transform_0(%arg0: i32) -> (i32, i32) {
    %c0_i32 = arith.constant 0 : i32
    %c0_i32_0 = arith.constant 0 : i32
    %c0_i32_1 = arith.constant 0 : i32
    return %c0_i32, %c0_i32_0 : i32, i32
  }
  func.func @transform_1(%arg0: i32) -> (i32, i32) {
    %c0_i32 = arith.constant 0 : i32
    %c0_i32_0 = arith.constant 0 : i32
    %c0_i32_1 = arith.constant 0 : i32
    return %c0_i32, %c0_i32_0 : i32, i32
  }
  func.func @transform_2(%arg0: i32) -> (i32, i32) {
    %c0_i32 = arith.constant 0 : i32
    %c0_i32_0 = arith.constant 0 : i32
    %c0_i32_1 = arith.constant 0 : i32
    return %c0_i32, %c0_i32_0 : i32, i32
  }
  func.func @transform_3(%arg0: i32) -> (i32, i32) {
    %c0_i32 = arith.constant 0 : i32
    %c0_i32_0 = arith.constant 0 : i32
    %c0_i32_1 = arith.constant 0 : i32
    return %c0_i32, %c0_i32_0 : i32, i32
  }
  func.func @transform_4(%arg0: i32) -> (i32, i32) {
    %c0_i32 = arith.constant 0 : i32
    %c0_i32_0 = arith.constant 0 : i32
    %c0_i32_1 = arith.constant 0 : i32
    return %c0_i32, %c0_i32_0 : i32, i32
  }
  func.func @transform_5(%arg0: i32) -> (i32, i32) {
    %c0_i32 = arith.constant 0 : i32
    %c0_i32_0 = arith.constant 0 : i32
    %c0_i32_1 = arith.constant 0 : i32
    return %c0_i32, %c0_i32_0 : i32, i32
  }
}

</mosaic_0001>

<bundles_post_ra>
// kernel: dqn_forward.3
= control target key start
LH: loop header
LB: loop body
LE: loop exit
PB: predicated region body
PF: predicated region fallthrough
CT: control target
= control target key end

     0   :  { %s1811_s12 = smov 0   ;;  %s2301_s0 = inlined_call_operand.vmem [shape: f32[16,256], index: 0, kind: input, shape index: {}]   ;;  %s2302_s1 = inlined_call_operand.vmem [shape: bf16[256,1056], index: 1, kind: input, shape index: {}]   ;;  %s2303_s2 = inlined_call_operand.vmem [shape: f32[16,1], index: 2, kind: input, shape index: {}]   ;;  %s2304_s3 = inlined_call_operand.vmem [shape: f32[16,1056], index: 3, kind: output, shape index: {}]  }
   0x1 LB: > { %s1385_s13 = sadd.s32 4294967295, %s1788_s12   ;;  %p1389_p0 = scmp.ge.s32.totalorder %s1788_s12, 1  ;;  %s1788_s12 = sphi %s1811_s12, %s13_s12  }
   0x2   : > { %p146_p1 = scmp.lt.s32.totalorder %s1788_s12, 3 }
   0x4   : > { %p147_p2 = pnand %p1389_p0, %p146_p1 }
   0x5   : > { %v1574_v0 = vld [vmem:[%s2302_s1 + $0x4] ss:$36 sps:$4 sm:$0xff] (!%p147_p2)   ;;  %v1577_v2 = vld [vmem:[%s2302_s1 + $0x4c] ss:$36 sps:$4 sm:$0xff] (!%p147_p2)   ;;  %v1580_v4 = vld [vmem:[%s2302_s1 + $0x94] ss:$36 sps:$4 sm:$0xff] (!%p147_p2)  }
   0x6   : > { %150 = sbr.rel (%p147_p2) target bundleno = 386 (0x182), region = 32  ;;  %v1576_v1 = vld [vmem:[%s2302_s1] ss:$36 sps:$4 sm:$0xff] (!%p147_p2)   ;;  %1095 = vmatprep.subr.bf16.mxu0 (!%p147_p2), %v1574_v0  ;;  %v1579_v3 = vld [vmem:[%s2302_s1 + $0x48] ss:$36 sps:$4 sm:$0xff] (!%p147_p2)   ;;  %p174_p3 = scmp.lt.s32.totalorder (!%p147_p2), %s1385_s13, 1 }
   0x7   : > { %1096 = vmatpush1.bf16.msra.mxu0 (!%p147_p2), %v1576_v1  ;;  %v1582_v5 = vld [vmem:[%s2302_s1 + $0x90] ss:$36 sps:$4 sm:$0xff] (!%p147_p2)   ;;  %v1583_v6 = vld [vmem:[%s2302_s1 + $0xdc] ss:$36 sps:$4 sm:$0xff] (!%p147_p2)   ;;  %v1586_v9 = vld [vmem:[%s2302_s1 + $0x124] ss:$36 sps:$4 sm:$0xff] (!%p147_p2)  }
   0x8   : > { %1097 = vmatprep.subr.bf16.mxu0 (!%p147_p2), %v1577_v2  ;;  %v1585_v7 = vld [vmem:[%s2302_s1 + $0xd8] ss:$36 sps:$4 sm:$0xff] (!%p147_p2)   ;;  %v1598_v8 = vld [vmem:[%s2302_s1 + $0xc] ss:$36 sps:$4 sm:$0xff] (!%p147_p2)   ;;  %v1588_v12 = vld [vmem:[%s2302_s1 + $0x120] ss:$36 sps:$4 sm:$0xff] (!%p147_p2)  }
   0x9   : > { %v1602_v10 = vld [vmem:[%s2302_s1 + $0x8] ss:$36 sps:$4 sm:$0xff] (!%p147_p2)   ;;  %1136 = vmatprep.subr.bf16.mxu1 (!%p147_p2), %v1598_v8  ;;  %v1604_v11 = vld [vmem:[%s2302_s1 + $0x54] ss:$36 sps:$4 sm:$0xff] (!%p147_p2)   ;;  %v1610_v15 = vld [vmem:[%s2302_s1 + $0x9c] ss:$36 sps:$4 sm:$0xff] (!%p147_p2)  }
   0xa   : > { %1137 = vmatpush1.bf16.msra.mxu1 (!%p147_p2), %v1602_v10  ;;  %v1589_v13 = vld [vmem:[%s2302_s1 + $0x16c] ss:$36 sps:$4 sm:$0xff] (!%p147_p2)   ;;  %v1614_v17 = vld [vmem:[%s2302_s1 + $0x98] ss:$36 sps:$4 sm:$0xff] (!%p147_p2)   ;;  %v1616_v18 = vld [vmem:[%s2302_s1 + $0xe4] ss:$36 sps:$4 sm:$0xff] (!%p147_p2)  }
   0xb   : > { %1098 = vmatpush1.bf16.msra.mxu0 (!%p147_p2), %v1579_v3  ;;  %v1608_v14 = vld [vmem:[%s2302_s1 + $0x50] ss:$36 sps:$4 sm:$0xff] (!%p147_p2)   ;;  %1138 = vmatprep.subr.bf16.mxu1 (!%p147_p2), %v1604_v11  ;;  %v1591_v16 = vld [vmem:[%s2302_s1 + $0x168] ss:$36 sps:$4 sm:$0xff] (!%p147_p2)   ;;  %v1790_v20 = vmov (!%p147_p2), 0   ;;  %vm1316_vm0 = vcmask (!%p147_p2), 261120  }
   0xc   : > { %1099 = vmatprep.subr.bf16.mxu0 (!%p147_p2), %v1580_v4  ;;  %v1592_v19 = vld [vmem:[%s2302_s1 + $0x1b4] ss:$36 sps:$4 sm:$0xff] (!%p147_p2)   ;;  %1573 = vset.pattern.permute.xlu0 (!%p147_p2), %v1790_v20  ;;  %v1620_v21 = vld [vmem:[%s2302_s1 + $0xe0] ss:$36 sps:$4 sm:$0xff] (!%p147_p2)   ;;  %v1622_v23 = vld [vmem:[%s2302_s1 + $0x12c] ss:$36 sps:$4 sm:$0xff] (!%p147_p2)  }
   0xd   : > { %s2306_s13 = smov (!%p174_p3, %s1385_s13), 1  ;;  %v1594_v22 = vld [vmem:[%s2302_s1 + $0x1b0] ss:$36 sps:$4 sm:$0xff]   ;;  %v1595_v24 = vld [vmem:[%s2302_s1 + $0x1fc] ss:$36 sps:$4 sm:$0xff]  }
   0xe   : > { %1139 = vmatpush1.bf16.msra.mxu1 %v1608_v14  ;;  %v1597_v25 = vld [vmem:[%s2302_s1 + $0x1f8] ss:$36 sps:$4 sm:$0xff]   ;;  %v1626_v26 = vld [vmem:[%s2302_s1 + $0x128] ss:$36 sps:$4 sm:$0xff]   ;;  %s1540_s16 = sshll.u32 %s2306_s13, 4  ;;  %s1392_s20 = sshll.u32 %s2306_s13, 3 }
   0xf   : > { %1100 = vmatpush1.bf16.msra.mxu0 %v1582_v5  ;;  %1140 = vmatprep.subr.bf16.mxu1 %v1610_v15  ;;  %v1628_v27 = vld [vmem:[%s2302_s1 + $0x174] ss:$36 sps:$4 sm:$0xff]   ;;  %v1600_v28 = vld [vmem:[%s2302_s1 + $0x244] ss:$36 sps:$4 sm:$0xff]   ;;  %s1913_s23 = scalar_lea.vmem %s2301_s0, %s1540_s16  ;;  %v1606_v31 = vld [vmem:[%s2302_s1 + $0x28c] ss:$36 sps:$4 sm:$0xff]   ;;  %s182_s30 = scalar_lea.vmem %s2303_s2, %s1392_s20 }
  0x10   : > { %1101 = vmatprep.subr.bf16.mxu0 %v1583_v6  ;;  %v1632_v29 = vld [vmem:[%s2302_s1 + $0x170] ss:$36 sps:$4 sm:$0xff]   ;;  %v1603_v30 = vld [vmem:[%s2302_s1 + $0x240] ss:$36 sps:$4 sm:$0xff]   ;;  %v190_v33 = vld [vmem:[%s1913_s23 + $0x8] sm:$0xff]  ;;  %s1563_s10 = smul.u32 72, %s2306_s13 }
  0x11   : > { %v1634_v32 = vld [vmem:[%s2302_s1 + $0x1bc] ss:$36 sps:$4 sm:$0xff]   ;;  %v1609_v34 = vld [vmem:[%s2302_s1 + $0x288] ss:$36 sps:$4 sm:$0xff]   ;;  %v1931_v35 = vpack.c.bf16 %v190_v33, %v190_v33  ;;  %v1612_v38 = vld [vmem:[%s2302_s1 + $0x2d4] ss:$36 sps:$4 sm:$0xff]  }
  0x12   : > { %1141 = vmatpush1.bf16.msra.mxu1 %v1614_v17  ;;  %v1638_v36 = vld [vmem:[%s2302_s1 + $0x1b8] ss:$36 sps:$4 sm:$0xff]   ;;  %v1640_v37 = vld [vmem:[%s2302_s1 + $0x204] ss:$36 sps:$4 sm:$0xff]   ;;  %v1615_v39 = vld [vmem:[%s2302_s1 + $0x2d0] ss:$36 sps:$4 sm:$0xff]   ;;  %s2287_s15 = scalar_lea.vmem %s2304_s3, %s1563_s10 }
  0x13   : > { %1102 = vmatpush1.bf16.msra.mxu0 %v1585_v7  ;;  %1142 = vmatprep.subr.bf16.mxu1 %v1616_v18  ;;  %v1644_v40 = vld [vmem:[%s2302_s1 + $0x200] ss:$36 sps:$4 sm:$0xff]   ;;  %v1646_v41 = vld [vmem:[%s2302_s1 + $0x24c] ss:$36 sps:$4 sm:$0xff]   ;;  %v1621_v43 = vld [vmem:[%s2302_s1 + $0x318] ss:$36 sps:$4 sm:$0xff]  }
  0x14   : > { %1103 = vmatprep.subr.bf16.mxu0 %v1586_v9  ;;  %1127 = vmatprep.mubr.bf16.mxu0 %v1931_v35  ;;  %v1618_v42 = vld [vmem:[%s2302_s1 + $0x31c] ss:$36 sps:$4 sm:$0xff]   ;;  %v1648_v44 = vld [vmem:[%s2302_s1 + $0x248] ss:$36 sps:$4 sm:$0xff]   ;;  %v1652_v45 = vld [vmem:[%s2302_s1 + $0x294] ss:$36 sps:$4 sm:$0xff]  }
  0x15   : > { %1168 = vmatprep.mubr.bf16.mxu1 %v1931_v35  ;;  %v1624_v46 = vld [vmem:[%s2302_s1 + $0x364] ss:$36 sps:$4 sm:$0xff]   ;;  %v1654_v48 = vld [vmem:[%s2302_s1 + $0x290] ss:$36 sps:$4 sm:$0xff]   ;;  %v1658_v49 = vld [vmem:[%s2302_s1 + $0x2dc] ss:$36 sps:$4 sm:$0xff]  }
  0x16   : > { %1143 = vmatpush1.bf16.msra.mxu1 %v1620_v21  ;;  %v1627_v47 = vld [vmem:[%s2302_s1 + $0x360] ss:$36 sps:$4 sm:$0xff]   ;;  %v1630_v50 = vld [vmem:[%s2302_s1 + $0x3ac] ss:$36 sps:$4 sm:$0xff]   ;;  %v1660_v52 = vld [vmem:[%s2302_s1 + $0x2d8] ss:$36 sps:$4 sm:$0xff]  }
  0x17   : > { %1104 = vmatpush1.bf16.msra.mxu0 %v1588_v12  ;;  %1144 = vmatprep.subr.bf16.mxu1 %v1622_v23  ;;  %v1633_v51 = vld [vmem:[%s2302_s1 + $0x3a8] ss:$36 sps:$4 sm:$0xff]   ;;  %v1636_v54 = vld [vmem:[%s2302_s1 + $0x3f4] ss:$36 sps:$4 sm:$0xff]   ;;  %v1666_v56 = vld [vmem:[%s2302_s1 + $0x320] ss:$36 sps:$4 sm:$0xff]  }
  0x18   : > { %1105 = vmatprep.subr.bf16.mxu0 %v1589_v13  ;;  %v1664_v53 = vld [vmem:[%s2302_s1 + $0x324] ss:$36 sps:$4 sm:$0xff]   ;;  %v1639_v55 = vld [vmem:[%s2302_s1 + $0x3f0] ss:$36 sps:$4 sm:$0xff]   ;;  %v1642_v58 = vld [vmem:[%s2302_s1 + $0x43c] ss:$36 sps:$4 sm:$0xff]  }
  0x19   : > { %v1670_v57 = vld [vmem:[%s2302_s1 + $0x36c] ss:$36 sps:$4 sm:$0xff]   ;;  %v1645_v59 = vld [vmem:[%s2302_s1 + $0x438] ss:$36 sps:$4 sm:$0xff]   ;;  %v189_v60 = vld [vmem:[%s1913_s23] sm:$0xff] }
  0x1a   : > { %1145 = vmatpush1.bf16.msra.mxu1 %v1626_v26  ;;  %v1672_v61 = vld [vmem:[%s2302_s1 + $0x368] ss:$36 sps:$4 sm:$0xff]   ;;  %v1676_v62 = vld [vmem:[%s2302_s1 + $0x3b4] ss:$36 sps:$4 sm:$0xff]   ;;  %v2020_v1 = vpack.c.bf16 %v189_v60, %v189_v60  ;;  %v1682_v3 = vld [vmem:[%s2302_s1 + $0x3fc] ss:$36 sps:$4 sm:$0xff]  }
  0x1b   : > { %1106 = vmatpush1.bf16.msra.mxu0 %v1591_v16  ;;  %1146 = vmatprep.subr.bf16.mxu1 %v1628_v27  ;;  %v1651_v63 = vld [vmem:[%s2302_s1 + $0x14] ss:$36 sps:$4 sm:$0xff]   ;;  %v1657_v4 = vld [vmem:[%s2302_s1 + $0x5c] ss:$36 sps:$4 sm:$0xff]   ;;  %v1688_v7 = vld [vmem:[%s2302_s1 + $0x444] ss:$36 sps:$4 sm:$0xff]  }
  0x1c   : > { %1107 = vmatprep.subr.bf16.mxu0 %v1592_v19  ;;  %v1649_v0 = vld [vmem:[%s2302_s1 + $0x10] ss:$36 sps:$4 sm:$0xff]   ;;  %v1655_v5 = vld [vmem:[%s2302_s1 + $0x58] ss:$36 sps:$4 sm:$0xff]   ;;  %v1663_v8 = vld [vmem:[%s2302_s1 + $0xa4] ss:$36 sps:$4 sm:$0xff]  }
  0x1d   : > { %v1678_v2 = vld [vmem:[%s2302_s1 + $0x3b0] ss:$36 sps:$4 sm:$0xff]   ;;  %v1684_v6 = vld [vmem:[%s2302_s1 + $0x3f8] ss:$36 sps:$4 sm:$0xff]   ;;  %v1661_v9 = vld [vmem:[%s2302_s1 + $0xa0] ss:$36 sps:$4 sm:$0xff]  }
  0x1e   : > { %1147 = vmatpush1.bf16.msra.mxu1 %v1632_v29  ;;  %v1690_v10 = vld [vmem:[%s2302_s1 + $0x440] ss:$36 sps:$4 sm:$0xff]   ;;  %v1669_v12 = vld [vmem:[%s2302_s1 + $0xec] ss:$36 sps:$4 sm:$0xff]   ;;  %v1694_v14 = vld [vmem:[%s2302_s1 + $0x18] ss:$36 sps:$4 sm:$0xff]  }
  0x1f   : > { %1108 = vmatpush1.bf16.msra.mxu0 %v1594_v22  ;;  %1148 = vmatprep.subr.bf16.mxu1 %v1634_v32  ;;  %v1696_v11 = vld [vmem:[%s2302_s1 + $0x1c] ss:$36 sps:$4 sm:$0xff]   ;;  %v1667_v13 = vld [vmem:[%s2302_s1 + $0xe8] ss:$36 sps:$4 sm:$0xff]   ;;  %v1675_v16 = vld [vmem:[%s2302_s1 + $0x134] ss:$36 sps:$4 sm:$0xff]  }
  0x20   : > { %1109 = vmatprep.subr.bf16.mxu0 %v1595_v24  ;;  %v1702_v15 = vld [vmem:[%s2302_s1 + $0x64] ss:$36 sps:$4 sm:$0xff]   ;;  %v1673_v18 = vld [vmem:[%s2302_s1 + $0x130] ss:$36 sps:$4 sm:$0xff]   ;;  %v1681_v20 = vld [vmem:[%s2302_s1 + $0x17c] ss:$36 sps:$4 sm:$0xff]  }
  0x21   : > { %v1700_v17 = vld [vmem:[%s2302_s1 + $0x60] ss:$36 sps:$4 sm:$0xff]   ;;  %v1708_v19 = vld [vmem:[%s2302_s1 + $0xac] ss:$36 sps:$4 sm:$0xff]   ;;  %v1679_v21 = vld [vmem:[%s2302_s1 + $0x178] ss:$36 sps:$4 sm:$0xff]  }
  0x22   : > { %1149 = vmatpush1.bf16.msra.mxu1 %v1638_v36  ;;  %v1706_v22 = vld [vmem:[%s2302_s1 + $0xa8] ss:$36 sps:$4 sm:$0xff]   ;;  %v1714_v23 = vld [vmem:[%s2302_s1 + $0xf4] ss:$36 sps:$4 sm:$0xff]   ;;  %v1720_v27 = vld [vmem:[%s2302_s1 + $0x13c] ss:$36 sps:$4 sm:$0xff]  }
  0x23   : > { %1110 = vmatpush1.bf16.msra.mxu0 %v1597_v25  ;;  %1150 = vmatprep.subr.bf16.mxu1 %v1640_v37  ;;  %v1687_v24 = vld [vmem:[%s2302_s1 + $0x1c4] ss:$36 sps:$4 sm:$0xff]   ;;  %v1712_v26 = vld [vmem:[%s2302_s1 + $0xf0] ss:$36 sps:$4 sm:$0xff]  }
  0x24   : > { %1111 = vmatprep.subr.bf16.mxu0 %v1600_v28  ;;  %v1685_v25 = vld [vmem:[%s2302_s1 + $0x1c0] ss:$36 sps:$4 sm:$0xff]   ;;  %v1693_v28 = vld [vmem:[%s2302_s1 + $0x20c] ss:$36 sps:$4 sm:$0xff]   ;;  %v1699_v32 = vld [vmem:[%s2302_s1 + $0x254] ss:$36 sps:$4 sm:$0xff]  }
  0x25   : > { %v1691_v29 = vld [vmem:[%s2302_s1 + $0x208] ss:$36 sps:$4 sm:$0xff]   ;;  %v1697_v33 = vld [vmem:[%s2302_s1 + $0x250] ss:$36 sps:$4 sm:$0xff]   ;;  %v353_v36 = vld [vmem:[%s182_s30] sm:$0xff] }
  0x26   : > { %1151 = vmatpush1.bf16.msra.mxu1 %v1644_v40  ;;  %v1732_v37 = vld [vmem:[%s2302_s1 + $0x1cc] ss:$36 sps:$4 sm:$0xff]   ;;  %356 = vperm.xlu0 %1573, %v353_v36   ;;  %v1733_v60 = vld [vmem:[%s2302_s1 + $0x400] ss:$36 sps:$4 sm:$0xff]  }
  0x27   : > { %1112 = vmatpush1.bf16.msra.mxu0 %v1603_v30  ;;  %1152 = vmatprep.subr.bf16.mxu1 %v1646_v41  ;;  %v1718_v30 = vld [vmem:[%s2302_s1 + $0x138] ss:$36 sps:$4 sm:$0xff]   ;;  %v1730_v40 = vld [vmem:[%s2302_s1 + $0x1c8] ss:$36 sps:$4 sm:$0xff]  }
  0x28   : > { %1113 = vmatprep.subr.bf16.mxu0 %v1606_v31  ;;  %v1726_v31 = vld [vmem:[%s2302_s1 + $0x184] ss:$36 sps:$4 sm:$0xff]   ;;  %v1738_v41 = vld [vmem:[%s2302_s1 + $0x214] ss:$36 sps:$4 sm:$0xff]  }
  0x2a   : > { %1153 = vmatpush1.bf16.msra.mxu1 %v1648_v44  ;;  %v1709_v44 = vld [vmem:[%s2302_s1 + $0x2e0] ss:$36 sps:$4 sm:$0xff]  }
  0x2b   : > { %1114 = vmatpush1.bf16.msra.mxu0 %v1609_v34  ;;  %1154 = vmatprep.subr.bf16.mxu1 %v1652_v45  ;;  %v1724_v34 = vld [vmem:[%s2302_s1 + $0x180] ss:$36 sps:$4 sm:$0xff]  }
  0x2c   : > { %1115 = vmatprep.subr.bf16.mxu0 %v1612_v38  ;;  %v1705_v38 = vld [vmem:[%s2302_s1 + $0x29c] ss:$36 sps:$4 sm:$0xff]  }
  0x2d   : > { %v1744_v45 = vld [vmem:[%s2302_s1 + $0x25c] ss:$36 sps:$4 sm:$0xff]  }
  0x2e   : > { %1155 = vmatpush1.bf16.msra.mxu1 %v1654_v48  ;;  %v1715_v48 = vld [vmem:[%s2302_s1 + $0x328] ss:$36 sps:$4 sm:$0xff]  }
  0x2f   : > { %1116 = vmatpush1.bf16.msra.mxu0 %v1615_v39  ;;  %1156 = vmatprep.subr.bf16.mxu1 %v1658_v49  ;;  %v1703_v39 = vld [vmem:[%s2302_s1 + $0x298] ss:$36 sps:$4 sm:$0xff]   ;;  %v1749_v49 = vld [vmem:[%s2302_s1 + $0x2a4] ss:$36 sps:$4 sm:$0xff]  }
  0x30   : > { %1117 = vmatprep.subr.bf16.mxu0 %v1618_v42  ;;  %v1711_v42 = vld [vmem:[%s2302_s1 + $0x2e4] ss:$36 sps:$4 sm:$0xff]  }
  0x32   : > { %1157 = vmatpush1.bf16.msra.mxu1 %v1660_v52  ;;  %v1721_v52 = vld [vmem:[%s2302_s1 + $0x370] ss:$36 sps:$4 sm:$0xff]  }
  0x33   : > { %1118 = vmatpush1.bf16.msra.mxu0 %v1621_v43  ;;  %1158 = vmatprep.subr.bf16.mxu1 %v1664_v53  ;;  %v1736_v43 = vld [vmem:[%s2302_s1 + $0x210] ss:$36 sps:$4 sm:$0xff]  }
  0x34   : > { %1119 = vmatprep.subr.bf16.mxu0 %v1624_v46  ;;  %v1717_v46 = vld [vmem:[%s2302_s1 + $0x32c] ss:$36 sps:$4 sm:$0xff]  }
  0x35   : > { %v1754_v53 = vld [vmem:[%s2302_s1 + $0x2ec] ss:$36 sps:$4 sm:$0xff]  }
  0x36   : > { %1159 = vmatpush1.bf16.msra.mxu1 %v1666_v56  ;;  %v1727_v56 = vld [vmem:[%s2302_s1 + $0x3b8] ss:$36 sps:$4 sm:$0xff]  }
  0x37   : > { %1120 = vmatpush1.bf16.msra.mxu0 %v1627_v47  ;;  %1160 = vmatprep.subr.bf16.mxu1 %v1670_v57  ;;  %v1742_v47 = vld [vmem:[%s2302_s1 + $0x258] ss:$36 sps:$4 sm:$0xff]  }
  0x38   : > { %1121 = vmatprep.subr.bf16.mxu0 %v1630_v50  ;;  %v1723_v50 = vld [vmem:[%s2302_s1 + $0x374] ss:$36 sps:$4 sm:$0xff]  }
  0x39   : > { %v1759_v57 = vld [vmem:[%s2302_s1 + $0x334] ss:$36 sps:$4 sm:$0xff]  }
  0x3a   : > { %1161 = vmatpush1.bf16.msra.mxu1 %v1672_v61  ;;  %v1764_v61 = vld [vmem:[%s2302_s1 + $0x37c] ss:$36 sps:$4 sm:$0xff]  }
  0x3b   : > { %1122 = vmatpush1.bf16.msra.mxu0 %v1633_v51  ;;  %1162 = vmatprep.subr.bf16.mxu1 %v1676_v62  ;;  %v1747_v51 = vld [vmem:[%s2302_s1 + $0x2a0] ss:$36 sps:$4 sm:$0xff]   ;;  %v1741_v62 = vld [vmem:[%s2302_s1 + $0x44c] ss:$36 sps:$4 sm:$0xff]  }
  0x3c   : > { %1123 = vmatprep.subr.bf16.mxu0 %v1636_v54  ;;  %v1729_v54 = vld [vmem:[%s2302_s1 + $0x3bc] ss:$36 sps:$4 sm:$0xff]  }
  0x3e   : > { %1163 = vmatpush1.bf16.msra.mxu1 %v1678_v2  ;;  %v1769_v2 = vld [vmem:[%s2302_s1 + $0x3c4] ss:$36 sps:$4 sm:$0xff]  }
  0x3f   : > { %1124 = vmatpush1.bf16.msra.mxu0 %v1639_v55  ;;  %1164 = vmatprep.subr.bf16.mxu1 %v1682_v3  ;;  %v1752_v55 = vld [vmem:[%s2302_s1 + $0x2e8] ss:$36 sps:$4 sm:$0xff]   ;;  %v1745_v3 = vld [vmem:[%s2302_s1 + $0x260] ss:$36 sps:$4 sm:$0xff]  }
  0x40   : > { %1125 = vmatprep.subr.bf16.mxu0 %v1642_v58  ;;  %v1735_v58 = vld [vmem:[%s2302_s1 + $0x404] ss:$36 sps:$4 sm:$0xff]  }
  0x42   : > { %1165 = vmatpush1.bf16.msra.mxu1 %v1684_v6  ;;  %v1774_v6 = vld [vmem:[%s2302_s1 + $0x40c] ss:$36 sps:$4 sm:$0xff]  }
  0x43   : > { %1126 = vmatpush1.bf16.msra.mxu0 %v1645_v59  ;;  %1166 = vmatprep.subr.bf16.mxu1 %v1688_v7  ;;  %v1757_v59 = vld [vmem:[%s2302_s1 + $0x330] ss:$36 sps:$4 sm:$0xff]   ;;  %v1750_v7 = vld [vmem:[%s2302_s1 + $0x2a8] ss:$36 sps:$4 sm:$0xff]  }
  0x44   : > { %1177 = vmatprep.subr.bf16.mxu0 %v1651_v63  ;;  %v1762_v63 = vld [vmem:[%s2302_s1 + $0x378] ss:$36 sps:$4 sm:$0xff]  }
  0x46   : > { %1128 = vmatmul.mubr.bf16.vlgmr.msra.gmra.mrb[0].mxu0 %v2020_v1  ;;  %1167 = vmatpush1.bf16.msra.mxu1 %v1690_v10  ;;  %v1779_v10 = vld [vmem:[%s2302_s1 + $0x454] ss:$36 sps:$4 sm:$0xff]  }
  0x47   : > { %1178 = vmatpush1.bf16.msra.mxu0 %v1649_v0  ;;  %1209 = vmatprep.mubr.bf16.mxu0 %v1931_v35  ;;  %v1739_v0 = vld [vmem:[%s2302_s1 + $0x448] ss:$36 sps:$4 sm:$0xff]  }
  0x48   : > { %1179 = vmatprep.subr.bf16.mxu0 %v1657_v4  ;;  %1218 = vmatprep.subr.bf16.mxu1 %v1696_v11  ;;  %v1767_v4 = vld [vmem:[%s2302_s1 + $0x3c0] ss:$36 sps:$4 sm:$0xff]   ;;  %v1755_v11 = vld [vmem:[%s2302_s1 + $0x2f0] ss:$36 sps:$4 sm:$0xff]  }
  0x49   : > { %1169 = vmatmul.mubr.bf16.vlgmr.msra.gmra.mrb[0].mxu1 %v2020_v1 }
  0x4a   : > { %1219 = vmatpush1.bf16.msra.mxu1 %v1694_v14  ;;  %1250 = vmatprep.mubr.bf16.mxu1 %v1931_v35  ;;  %v1760_v14 = vld [vmem:[%s2302_s1 + $0x338] ss:$36 sps:$4 sm:$0xff]  }
  0x4b   : > { %1180 = vmatpush1.bf16.msra.mxu0 %v1655_v5  ;;  %1220 = vmatprep.subr.bf16.mxu1 %v1702_v15  ;;  %v1746_v5 = vld [vmem:[%s2302_s1 + $0x20] ss:$36 sps:$4 sm:$0xff]  }
  0x4c   : > { %1181 = vmatprep.subr.bf16.mxu0 %v1663_v8  ;;  %v1772_v8 = vld [vmem:[%s2302_s1 + $0x408] ss:$36 sps:$4 sm:$0xff]   ;;  %v1765_v15 = vld [vmem:[%s2302_s1 + $0x380] ss:$36 sps:$4 sm:$0xff]  }
  0x4e   : > { %1221 = vmatpush1.bf16.msra.mxu1 %v1700_v17  ;;  %v1770_v17 = vld [vmem:[%s2302_s1 + $0x3c8] ss:$36 sps:$4 sm:$0xff]  }
  0x4f   : > { %1182 = vmatpush1.bf16.msra.mxu0 %v1661_v9  ;;  %1222 = vmatprep.subr.bf16.mxu1 %v1708_v19  ;;  %v1751_v9 = vld [vmem:[%s2302_s1 + $0x68] ss:$36 sps:$4 sm:$0xff]   ;;  %v1775_v19 = vld [vmem:[%s2302_s1 + $0x410] ss:$36 sps:$4 sm:$0xff]  }
  0x50   : > { %1183 = vmatprep.subr.bf16.mxu0 %v1669_v12  ;;  %v1777_v12 = vld [vmem:[%s2302_s1 + $0x450] ss:$36 sps:$4 sm:$0xff]  }
  0x52   : > { %1223 = vmatpush1.bf16.msra.mxu1 %v1706_v22  ;;  %v1781_v22 = vld [vmem:[%s2302_s1 + $0x218] ss:$36 sps:$4 sm:$0xff]  }
  0x53   : > { %1184 = vmatpush1.bf16.msra.mxu0 %v1667_v13  ;;  %1224 = vmatprep.subr.bf16.mxu1 %v1714_v23  ;;  %v1756_v13 = vld [vmem:[%s2302_s1 + $0xb0] ss:$36 sps:$4 sm:$0xff]  }
  0x54   : > { %1185 = vmatprep.subr.bf16.mxu0 %v1675_v16  ;;  %v1766_v16 = vld [vmem:[%s2302_s1 + $0x140] ss:$36 sps:$4 sm:$0xff]  }
  0x56   : > { %1225 = vmatpush1.bf16.msra.mxu1 %v1712_v26 }
  0x57   : > { %1186 = vmatpush1.bf16.msra.mxu0 %v1673_v18  ;;  %1226 = vmatprep.subr.bf16.mxu1 %v1720_v27  ;;  %v1771_v18 = vld [vmem:[%s2302_s1 + $0x188] ss:$36 sps:$4 sm:$0xff]  }
  0x58   : > { %1187 = vmatprep.subr.bf16.mxu0 %v1681_v20  ;;  %v1776_v20 = vld [vmem:[%s2302_s1 + $0x1d0] ss:$36 sps:$4 sm:$0xff]  }
  0x5a   : > { %1227 = vmatpush1.bf16.msra.mxu1 %v1718_v30 }
  0x5b   : > { %1188 = vmatpush1.bf16.msra.mxu0 %v1679_v21  ;;  %1228 = vmatprep.subr.bf16.mxu1 %v1726_v31  ;;  %v1780_v21 = vld [vmem:[%s2302_s1 + $0x458] ss:$36 sps:$4 sm:$0xff]  }
  0x5c   : > { %1189 = vmatprep.subr.bf16.mxu0 %v1687_v24 }
  0x5e   : > { %1229 = vmatpush1.bf16.msra.mxu1 %v1724_v34 }
  0x5f   : > { %1190 = vmatpush1.bf16.msra.mxu0 %v1685_v25  ;;  %1230 = vmatprep.subr.bf16.mxu1 %v1732_v37 }
  0x60   : > { %1191 = vmatprep.subr.bf16.mxu0 %v1693_v28 }
  0x62   : > { %1231 = vmatpush1.bf16.msra.mxu1 %v1730_v40 }
  0x63   : > { %1192 = vmatpush1.bf16.msra.mxu0 %v1691_v29  ;;  %1232 = vmatprep.subr.bf16.mxu1 %v1738_v41 }
  0x64   : > { %1193 = vmatprep.subr.bf16.mxu0 %v1699_v32 }
  0x66   : > { %1233 = vmatpush1.bf16.msra.mxu1 %v1736_v43 }
  0x67   : > { %1194 = vmatpush1.bf16.msra.mxu0 %v1697_v33  ;;  %1234 = vmatprep.subr.bf16.mxu1 %v1744_v45 }
  0x68   : > { %1195 = vmatprep.subr.bf16.mxu0 %v1705_v38 }
  0x6a   : > { %1235 = vmatpush1.bf16.msra.mxu1 %v1742_v47 }
  0x6b   : > { %1196 = vmatpush1.bf16.msra.mxu0 %v1703_v39  ;;  %1236 = vmatprep.subr.bf16.mxu1 %v1749_v49 }
  0x6c   : > { %1197 = vmatprep.subr.bf16.mxu0 %v1711_v42 }
  0x6e   : > { %1237 = vmatpush1.bf16.msra.mxu1 %v1747_v51 }
  0x6f   : > { %1198 = vmatpush1.bf16.msra.mxu0 %v1709_v44  ;;  %1238 = vmatprep.subr.bf16.mxu1 %v1754_v53 }
  0x70   : > { %1199 = vmatprep.subr.bf16.mxu0 %v1717_v46 }
  0x72   : > { %1239 = vmatpush1.bf16.msra.mxu1 %v1752_v55 }
  0x73   : > { %1200 = vmatpush1.bf16.msra.mxu0 %v1715_v48  ;;  %1240 = vmatprep.subr.bf16.mxu1 %v1759_v57 }
  0x74   : > { %1201 = vmatprep.subr.bf16.mxu0 %v1723_v50 }
  0x76   : > { %1241 = vmatpush1.bf16.msra.mxu1 %v1757_v59 }
  0x77   : > { %1202 = vmatpush1.bf16.msra.mxu0 %v1721_v52  ;;  %1242 = vmatprep.subr.bf16.mxu1 %v1764_v61 }
  0x78   : > { %1203 = vmatprep.subr.bf16.mxu0 %v1729_v54 }
  0x7a   : > { %1243 = vmatpush1.bf16.msra.mxu1 %v1762_v63 }
  0x7b   : > { %1204 = vmatpush1.bf16.msra.mxu0 %v1727_v56  ;;  %1244 = vmatprep.subr.bf16.mxu1 %v1769_v2 }
  0x7c   : > { %1205 = vmatprep.subr.bf16.mxu0 %v1735_v58 }
  0x7e   : > { %1245 = vmatpush1.bf16.msra.mxu1 %v1767_v4 }
  0x7f   : > { %1206 = vmatpush1.bf16.msra.mxu0 %v1733_v60  ;;  %1246 = vmatprep.subr.bf16.mxu1 %v1774_v6 }
  0x80   : > { %1207 = vmatprep.subr.bf16.mxu0 %v1741_v62 }
  0x82   : > { %1247 = vmatpush1.bf16.msra.mxu1 %v1772_v8 }
  0x83   : > { %1208 = vmatpush1.bf16.msra.mxu0 %v1739_v0  ;;  %1248 = vmatprep.subr.bf16.mxu1 %v1779_v10 }
  0x84   : > { %1541 = vmatprep.subr.bf16.mxu0 %v1745_v3 }
  0x86   : > { %1210 = vmatmul.mubr.bf16.vlgmr.msra.gmra.mrb[4].mxu0 %v2020_v1  ;;  %1249 = vmatpush1.bf16.msra.mxu1 %v1777_v12 }
  0x87   : > { %1542 = vmatpush3.bf16.msra.mxu0 %v1746_v5  ;;  %1291 = vmatprep.mubr.bf16.mxu0 %v1931_v35  ;;  %v1761_v35 = vld [vmem:[%s2302_s1 + $0xf8] ss:$36 sps:$4 sm:$0xff]  }
  0x88   : > { %1543 = vmatprep.subr.bf16.mxu0 %v1750_v7 }
  0x89   : > { %1251 = vmatmul.mubr.bf16.vlgmr.msra.gmra.mrb[4].mxu1 %v2020_v1 }
  0x8b   : > { %1544 = vmatpush3.bf16.msra.mxu0 %v1751_v9 }
  0x8c   : > { %1545 = vmatprep.subr.bf16.mxu0 %v1755_v11 }
  0x8f   : > { %1546 = vmatpush3.bf16.msra.mxu0 %v1756_v13 }
  0x90   : > { %1547 = vmatprep.subr.bf16.mxu0 %v1760_v14 }
  0x93   : > { %1548 = vmatpush3.bf16.msra.mxu0 %v1761_v35 }
  0x94   : > { %1549 = vmatprep.subr.bf16.mxu0 %v1765_v15 }
  0x97   : > { %1550 = vmatpush3.bf16.msra.mxu0 %v1766_v16 }
  0x98   : > { %1551 = vmatprep.subr.bf16.mxu0 %v1770_v17 }
  0x9b   : > { %1552 = vmatpush3.bf16.msra.mxu0 %v1771_v18 }
  0x9c   : > { %1553 = vmatprep.subr.bf16.mxu0 %v1775_v19 }
  0x9f   : > { %1554 = vmatpush3.bf16.msra.mxu0 %v1776_v20 }
  0xa0   : > { %1555 = vmatprep.subr.bf16.mxu0 %v1780_v21 }
  0xa3   : > { %1556 = vmatpush3.bf16.msra.mxu0 %v1781_v22 }
  0xa5   : > { %v357_v23 = vpop.permute.xlu0 %356 }
  0xa6   : > { %1292 = vmatmul.mubr.bf16.vlgmr.msra.gmra.mrb[8].mxu0 %v2020_v1 }
 0x119   : > { %v1129_v24 = vpop.f32.mrb[0].mxu0 }
 0x11a   : > { %v1130_v25 = vadd.f32 %v1129_v24, %v357_v23  ;;  %v1131_v26 = vpop.f32.mrb[1].mxu0 }
 0x11b   : > { %v1132_v27 = vadd.f32 %v1131_v26, %v357_v23  ;;  %v1133_v28 = vpop.f32.mrb[2].mxu0 }
 0x11c   : > { %v1299_v29 = vmax.f32 %v1130_v25, 0.0  ;;  %v1134_v30 = vpop.f32.mrb[3].mxu0  ;;  %v1170_v1 = vpop.f32.mrb[0].mxu1 }
 0x11d   : > { %v1300_v31 = vmax.f32 %v1132_v27, 0.0  ;;  %v1171_v32 = vadd.f32 %v1170_v1, %v357_v23  ;;  %v1172_v33 = vpop.f32.mrb[1].mxu1 }
 0x11e   : > { %1308 = vst [vmem:[%s2287_s15] sm:$0xff] %v1299_v29  ;;  %v1173_v34 = vadd.f32 %v1172_v33, %v357_v23  ;;  %v1174_v36 = vpop.f32.mrb[2].mxu1 }
 0x11f   : > { %1309 = vst [vmem:[%s2287_s15 + $0x8] sm:$0xff] %v1300_v31  ;;  %v1301_v37 = vmax.f32 %v1171_v32, 0.0  ;;  %v1175_v38 = vpop.f32.mrb[3].mxu1 }
 0x120   : > { %v1302_v39 = vmax.f32 %v1173_v34, 0.0 }
 0x121   : > { %1310 = vst [vmem:[%s2287_s15 + $0x10] sm:$0xff] %v1301_v37 }
 0x122   : > { %1311 = vst [vmem:[%s2287_s15 + $0x18] sm:$0xff] %v1302_v39 }
 0x159   : > { %v1211_v40 = vpop.f32.mrb[4].mxu0 }
 0x15a   : > { %v1212_v41 = vadd.f32 %v1211_v40, %v357_v23  ;;  %v1213_v42 = vpop.f32.mrb[5].mxu0 }
 0x15b   : > { %v1214_v43 = vadd.f32 %v1213_v42, %v357_v23  ;;  %v1215_v44 = vpop.f32.mrb[6].mxu0 }
 0x15c   : > { %v1303_v45 = vmax.f32 %v1212_v41, 0.0  ;;  %v1216_v46 = vpop.f32.mrb[7].mxu0  ;;  %v1252_v48 = vpop.f32.mrb[4].mxu1 }
 0x15d   : > { %v1304_v47 = vmax.f32 %v1214_v43, 0.0  ;;  %v1253_v49 = vadd.f32 %v1252_v48, %v357_v23  ;;  %v1254_v50 = vpop.f32.mrb[5].mxu1 }
 0x15e   : > { %1312 = vst [vmem:[%s2287_s15 + $0x20] sm:$0xff] %v1303_v45  ;;  %v1255_v51 = vadd.f32 %v1254_v50, %v357_v23  ;;  %v1256_v52 = vpop.f32.mrb[6].mxu1 }
 0x15f   : > { %1313 = vst [vmem:[%s2287_s15 + $0x28] sm:$0xff] %v1304_v47  ;;  %v1305_v53 = vmax.f32 %v1253_v49, 0.0  ;;  %v1257_v54 = vpop.f32.mrb[7].mxu1 }
 0x160   : > { %v1306_v55 = vmax.f32 %v1255_v51, 0.0 }
 0x161   : > { %1314 = vst [vmem:[%s2287_s15 + $0x30] sm:$0xff] %v1305_v53 }
 0x162   : > { %1315 = vst [vmem:[%s2287_s15 + $0x38] sm:$0xff] %v1306_v55 }
 0x179   : > { %v1557_v56 = vpop.f32.mrb[8].mxu0 }
 0x17a   : > { %v1558_v57 = vpop.f32.mrb[9].mxu0 }
 0x17b   : > { %v1559_v58 = vadd.f32 %v1558_v57, %v1557_v56  ;;  %v1560_v59 = vpop.f32.mrb[10].mxu0 }
 0x17c   : > { %v1561_v60 = vpop.f32.mrb[11].mxu0 }
 0x17d   : > { %v1294_v61 = vadd.f32 %v1559_v58, %v357_v23 }
 0x17f   : > { %v1307_v62 = vmax.f32 %v1294_v61, 0.0 }
 0x181   : > { %1317 = vst.msk [vmem:[%s2287_s15 + $0x40] sm:$0xff] %vm1316_vm0, %v1307_v62 }
 0x182 PF: > { %s13_s12 = sadd.s32 1, %s1788_s12  }
 0x183   : > { %p10_p4 = scmp.ge.s32.totalorder %s13_s12, 4  }
 0x185   :  { %12 = sbr.rel (!%p10_p4) target bundleno = 1 (0x1), region = 65 }

// kernel: dqn_forward.4
= control target key start
LH: loop header
LB: loop body
LE: loop exit
PB: predicated region body
PF: predicated region fallthrough
CT: control target
= control target key end

     0   :  { %v431_v1 = vmov 0   ;;  %vm304_vm0 = vcmask 752640   ;;  %s612_s1 = inlined_call_operand.vmem [shape: bf16[256,220], index: 1, kind: input, shape index: {}]   ;;  %s613_s0 = inlined_call_operand.vmem [shape: f32[32,256], index: 0, kind: input, shape index: {}]   ;;  %s614_s2 = inlined_call_operand.vmem [shape: f32[32,1], index: 2, kind: input, shape index: {}]   ;;  %s615_s3 = inlined_call_operand.vmem [shape: f32[32,220], index: 3, kind: output, shape index: {}]  }
   0x1   :  { %v383_v0 = vld [vmem:[%s612_s1 + $0x4] ss:$8 sps:$4 sm:$0xff]   ;;  %382 = vset.pattern.permute.xlu1 %v431_v1  ;;  %381 = vset.pattern.permute.xlu0 %v431_v1  ;;  %v385_v2 = vld [vmem:[%s612_s1] ss:$8 sps:$4 sm:$0xff]   ;;  %v386_v3 = vld [vmem:[%s612_s1 + $0x14] ss:$8 sps:$4 sm:$0xff]  }
   0x2   :  { %242 = vmatprep.subr.bf16.mxu0 %v383_v0  ;;  %348 = vmatprep.subr.bf16.mxu1 %v383_v0  ;;  %v388_v4 = vld [vmem:[%s612_s1 + $0x10] ss:$8 sps:$4 sm:$0xff]   ;;  %v389_v5 = vld [vmem:[%s612_s1 + $0x24] ss:$8 sps:$4 sm:$0xff]   ;;  %v391_v6 = vld [vmem:[%s612_s1 + $0x20] ss:$8 sps:$4 sm:$0xff]  }
   0x3   :  { %243 = vmatpush1.bf16.msra.mxu0 %v385_v2  ;;  %364 = vmatpush1.bf16.msra.mxu1 %v385_v2  ;;  %v392_v7 = vld [vmem:[%s612_s1 + $0x34] ss:$8 sps:$4 sm:$0xff]   ;;  %v394_v8 = vld [vmem:[%s612_s1 + $0x30] ss:$8 sps:$4 sm:$0xff]   ;;  %v395_v9 = vld [vmem:[%s612_s1 + $0x44] ss:$8 sps:$4 sm:$0xff]  }
   0x4   :  { %244 = vmatprep.subr.bf16.mxu0 %v386_v3  ;;  %349 = vmatprep.subr.bf16.mxu1 %v386_v3  ;;  %v397_v10 = vld [vmem:[%s612_s1 + $0x40] ss:$8 sps:$4 sm:$0xff]   ;;  %v398_v11 = vld [vmem:[%s612_s1 + $0x54] ss:$8 sps:$4 sm:$0xff]   ;;  %v400_v12 = vld [vmem:[%s612_s1 + $0x50] ss:$8 sps:$4 sm:$0xff]  }
   0x5   :  { %v401_v13 = vld [vmem:[%s612_s1 + $0x64] ss:$8 sps:$4 sm:$0xff]   ;;  %v17_v15 = vld [vmem:[%s613_s0 + $0x18] sm:$0xff]  ;;  %v403_v19 = vld [vmem:[%s612_s1 + $0x60] ss:$8 sps:$4 sm:$0xff]  }
   0x6   :  { %v15_v14 = vld [vmem:[%s613_s0 + $0x8] sm:$0xff]  ;;  %v21_v18 = vld [vmem:[%s613_s0 + $0x38] sm:$0xff]  ;;  %v60_v22 = vld [vmem:[%s614_s2 + $0x10] sm:$0xff] }
   0x7   :  { %245 = vmatpush1.bf16.msra.mxu0 %v388_v4  ;;  %365 = vmatpush1.bf16.msra.mxu1 %v388_v4  ;;  %v23_v16 = vpack.c.bf16 %v17_v15, %v15_v14  ;;  %v19_v17 = vld [vmem:[%s613_s0 + $0x28] sm:$0xff]  ;;  %v404_v21 = vld [vmem:[%s612_s1 + $0x74] ss:$8 sps:$4 sm:$0xff]   ;;  %v58_v23 = vld [vmem:[%s614_s2] sm:$0xff] }
   0x8   :  { %246 = vmatprep.subr.bf16.mxu0 %v389_v5  ;;  %350 = vmatprep.subr.bf16.mxu1 %v389_v5  ;;  %v25_v20 = vpack.c.bf16 %v21_v18, %v19_v17  ;;  %v406_v24 = vld [vmem:[%s612_s1 + $0x70] ss:$8 sps:$4 sm:$0xff]   ;;  %v59_v26 = vld [vmem:[%s614_s2 + $0x8] sm:$0xff]  ;;  %v410_v29 = vld [vmem:[%s612_s1 + $0x94] ss:$8 sps:$4 sm:$0xff]  }
   0x9   :  { %274 = vmatprep.mubr.bf16.mxu0 %v23_v16  ;;  %74 = vperm.xlu1 %382, %v60_v22   ;;  %v61_v25 = vld [vmem:[%s614_s2 + $0x18] sm:$0xff]  ;;  %v407_v27 = vld [vmem:[%s612_s1 + $0x84] ss:$8 sps:$4 sm:$0xff]   ;;  %v409_v28 = vld [vmem:[%s612_s1 + $0x80] ss:$8 sps:$4 sm:$0xff]  }
   0xa   :  { %284 = vmatprep.mubr.bf16.mxu1 %v25_v20  ;;  %64 = vperm.xlu0 %381, %v58_v23   ;;  %v412_v30 = vld [vmem:[%s612_s1 + $0x90] ss:$8 sps:$4 sm:$0xff]   ;;  %v413_v31 = vld [vmem:[%s612_s1 + $0xa4] ss:$8 sps:$4 sm:$0xff]   ;;  %v415_v32 = vld [vmem:[%s612_s1 + $0xa0] ss:$8 sps:$4 sm:$0xff]  }
   0xb   :  { %247 = vmatpush1.bf16.msra.mxu0 %v391_v6  ;;  %366 = vmatpush1.bf16.msra.mxu1 %v391_v6  ;;  %v416_v33 = vld [vmem:[%s612_s1 + $0xb4] ss:$8 sps:$4 sm:$0xff]   ;;  %v418_v34 = vld [vmem:[%s612_s1 + $0xb0] ss:$8 sps:$4 sm:$0xff]   ;;  %v419_v35 = vld [vmem:[%s612_s1 + $0xc4] ss:$8 sps:$4 sm:$0xff]  }
   0xc   :  { %248 = vmatprep.subr.bf16.mxu0 %v392_v7  ;;  %351 = vmatprep.subr.bf16.mxu1 %v392_v7  ;;  %v421_v36 = vld [vmem:[%s612_s1 + $0xc0] ss:$8 sps:$4 sm:$0xff]   ;;  %v422_v37 = vld [vmem:[%s612_s1 + $0xd4] ss:$8 sps:$4 sm:$0xff]   ;;  %v424_v38 = vld [vmem:[%s612_s1 + $0xd0] ss:$8 sps:$4 sm:$0xff]  }
   0xd   :  { %79 = vperm.xlu1 %382, %v61_v25   ;;  %v425_v39 = vld [vmem:[%s612_s1 + $0xe4] ss:$8 sps:$4 sm:$0xff]   ;;  %v427_v40 = vld [vmem:[%s612_s1 + $0xe0] ss:$8 sps:$4 sm:$0xff]   ;;  %v428_v41 = vld [vmem:[%s612_s1 + $0xf4] ss:$8 sps:$4 sm:$0xff]  }
   0xe   :  { %69 = vperm.xlu0 %381, %v59_v26   ;;  %v430_v42 = vld [vmem:[%s612_s1 + $0xf0] ss:$8 sps:$4 sm:$0xff]   ;;  %v14_v43 = vld [vmem:[%s613_s0] sm:$0xff] }
   0xf   :  { %249 = vmatpush1.bf16.msra.mxu0 %v394_v8  ;;  %367 = vmatpush1.bf16.msra.mxu1 %v394_v8  ;;  %v16_v44 = vld [vmem:[%s613_s0 + $0x10] sm:$0xff]  ;;  %v18_v45 = vld [vmem:[%s613_s0 + $0x20] sm:$0xff] }
  0x10   :  { %250 = vmatprep.subr.bf16.mxu0 %v395_v9  ;;  %352 = vmatprep.subr.bf16.mxu1 %v395_v9  ;;  %v20_v46 = vld [vmem:[%s613_s0 + $0x30] sm:$0xff]  ;;  %v22_v47 = vpack.c.bf16 %v16_v44, %v14_v43 }
  0x11   :  { %v24_v48 = vpack.c.bf16 %v20_v46, %v18_v45 }
  0x13   :  { %251 = vmatpush1.bf16.msra.mxu0 %v397_v10  ;;  %368 = vmatpush1.bf16.msra.mxu1 %v397_v10 }
  0x14   :  { %252 = vmatprep.subr.bf16.mxu0 %v398_v11  ;;  %353 = vmatprep.subr.bf16.mxu1 %v398_v11 }
  0x17   :  { %253 = vmatpush1.bf16.msra.mxu0 %v400_v12  ;;  %369 = vmatpush1.bf16.msra.mxu1 %v400_v12 }
  0x18   :  { %254 = vmatprep.subr.bf16.mxu0 %v401_v13  ;;  %354 = vmatprep.subr.bf16.mxu1 %v401_v13 }
  0x1b   :  { %255 = vmatpush1.bf16.msra.mxu0 %v403_v19  ;;  %370 = vmatpush1.bf16.msra.mxu1 %v403_v19 }
  0x1c   :  { %256 = vmatprep.subr.bf16.mxu0 %v404_v21  ;;  %355 = vmatprep.subr.bf16.mxu1 %v404_v21 }
  0x1f   :  { %257 = vmatpush1.bf16.msra.mxu0 %v406_v24  ;;  %371 = vmatpush1.bf16.msra.mxu1 %v406_v24 }
  0x20   :  { %258 = vmatprep.subr.bf16.mxu0 %v407_v27  ;;  %356 = vmatprep.subr.bf16.mxu1 %v407_v27 }
  0x23   :  { %259 = vmatpush1.bf16.msra.mxu0 %v409_v28  ;;  %372 = vmatpush1.bf16.msra.mxu1 %v409_v28 }
  0x24   :  { %260 = vmatprep.subr.bf16.mxu0 %v410_v29  ;;  %357 = vmatprep.subr.bf16.mxu1 %v410_v29 }
  0x27   :  { %261 = vmatpush1.bf16.msra.mxu0 %v412_v30  ;;  %373 = vmatpush1.bf16.msra.mxu1 %v412_v30 }
  0x28   :  { %262 = vmatprep.subr.bf16.mxu0 %v413_v31  ;;  %358 = vmatprep.subr.bf16.mxu1 %v413_v31 }
  0x2b   :  { %263 = vmatpush1.bf16.msra.mxu0 %v415_v32  ;;  %374 = vmatpush1.bf16.msra.mxu1 %v415_v32 }
  0x2c   :  { %264 = vmatprep.subr.bf16.mxu0 %v416_v33  ;;  %359 = vmatprep.subr.bf16.mxu1 %v416_v33 }
  0x2f   :  { %265 = vmatpush1.bf16.msra.mxu0 %v418_v34  ;;  %375 = vmatpush1.bf16.msra.mxu1 %v418_v34 }
  0x30   :  { %266 = vmatprep.subr.bf16.mxu0 %v419_v35  ;;  %360 = vmatprep.subr.bf16.mxu1 %v419_v35 }
  0x33   :  { %267 = vmatpush1.bf16.msra.mxu0 %v421_v36  ;;  %376 = vmatpush1.bf16.msra.mxu1 %v421_v36 }
  0x34   :  { %268 = vmatprep.subr.bf16.mxu0 %v422_v37  ;;  %361 = vmatprep.subr.bf16.mxu1 %v422_v37 }
  0x37   :  { %269 = vmatpush1.bf16.msra.mxu0 %v424_v38  ;;  %377 = vmatpush1.bf16.msra.mxu1 %v424_v38 }
  0x38   :  { %270 = vmatprep.subr.bf16.mxu0 %v425_v39  ;;  %362 = vmatprep.subr.bf16.mxu1 %v425_v39 }
  0x3b   :  { %271 = vmatpush1.bf16.msra.mxu0 %v427_v40  ;;  %378 = vmatpush1.bf16.msra.mxu1 %v427_v40 }
  0x3c   :  { %272 = vmatprep.subr.bf16.mxu0 %v428_v41  ;;  %363 = vmatprep.subr.bf16.mxu1 %v428_v41 }
  0x3f   :  { %273 = vmatpush1.bf16.msra.mxu0 %v430_v42  ;;  %379 = vmatpush1.bf16.msra.mxu1 %v430_v42 }
  0x42   :  { %275 = vmatmul.mubr.bf16.vlgmr.msra.gmra.mrb[0].mxu0 %v22_v47  ;;  %285 = vmatmul.mubr.bf16.vlgmr.msra.gmra.mrb[0].mxu1 %v24_v48 }
  0x88   :  { %v75_v49 = vpop.permute.xlu1 %74 }
  0x89   :  { %v65_v50 = vpop.permute.xlu0 %64 }
  0x8c   :  { %v80_v51 = vpop.permute.xlu1 %79 }
  0x8d   :  { %v70_v52 = vpop.permute.xlu0 %69 }
 0x115   :  { %v276_v53 = vpop.f32.mrb[0].mxu0  ;;  %v286_v54 = vpop.f32.mrb[0].mxu1 }
 0x116   :  { %v277_v55 = vadd.f32 %v276_v53, %v65_v50  ;;  %v287_v56 = vadd.f32 %v286_v54, %v75_v49  ;;  %v278_v57 = vpop.f32.mrb[1].mxu0  ;;  %v288_v58 = vpop.f32.mrb[1].mxu1 }
 0x117   :  { %v279_v59 = vadd.f32 %v278_v57, %v65_v50  ;;  %v289_v60 = vadd.f32 %v288_v58, %v75_v49  ;;  %v280_v61 = vpop.f32.mrb[2].mxu0  ;;  %v290_v62 = vpop.f32.mrb[2].mxu1 }
 0x118   :  { %v295_v63 = vmax.f32 %v277_v55, 0.0  ;;  %v299_v0 = vmax.f32 %v287_v56, 0.0  ;;  %v281_v1 = vadd.f32 %v280_v61, %v70_v52  ;;  %v291_v2 = vadd.f32 %v290_v62, %v80_v51  ;;  %v282_v3 = vpop.f32.mrb[3].mxu0  ;;  %v292_v4 = vpop.f32.mrb[3].mxu1 }
 0x119   :  { %v296_v5 = vmax.f32 %v279_v59, 0.0  ;;  %v300_v6 = vmax.f32 %v289_v60, 0.0  ;;  %v283_v7 = vadd.f32 %v282_v3, %v70_v52  ;;  %v293_v8 = vadd.f32 %v292_v4, %v80_v51 }
 0x11a   :  { %303 = vst [vmem:[%s615_s3] sm:$0xff] %v295_v63  ;;  %308 = vst [vmem:[%s615_s3 + $0x20] sm:$0xff] %v299_v0  ;;  %v297_v9 = vmax.f32 %v281_v1, 0.0  ;;  %v301_v10 = vmax.f32 %v291_v2, 0.0 }
 0x11b   :  { %305 = vst.msk [vmem:[%s615_s3 + $0x8] sm:$0xff] %vm304_vm0, %v296_v5  ;;  %309 = vst.msk [vmem:[%s615_s3 + $0x28] sm:$0xff] %vm304_vm0, %v300_v6  ;;  %v298_v11 = vmax.f32 %v283_v7, 0.0  ;;  %v302_v12 = vmax.f32 %v293_v8, 0.0 }
 0x11c   :  { %306 = vst [vmem:[%s615_s3 + $0x10] sm:$0xff] %v297_v9  ;;  %310 = vst [vmem:[%s615_s3 + $0x30] sm:$0xff] %v301_v10 }
 0x11d   :  { %307 = vst.msk [vmem:[%s615_s3 + $0x18] sm:$0xff] %vm304_vm0, %v298_v11  ;;  %311 = vst.msk [vmem:[%s615_s3 + $0x38] sm:$0xff] %vm304_vm0, %v302_v12 }

// kernel: dqn_forward.5
= control target key start
LH: loop header
LB: loop body
LE: loop exit
PB: predicated region body
PF: predicated region fallthrough
CT: control target
= control target key end

     0   :  { %v468_v36 = vlaneseq  ;;  %v4890_v37 = vmov 1966171168   ;;  %s6434_s0 = inlined_call_operand.vmem [shape: bf16[2,3520], index: 0, kind: input, shape index: {}]   ;;  %s6435_s1 = inlined_call_operand.vmem [shape: bf16[3520,256], index: 1, kind: input, shape index: {}]   ;;  %s6436_s2 = inlined_call_operand.vmem [shape: f32[1,256], index: 2, kind: input, shape index: {}]   ;;  %s6437_s3 = inlined_call_operand.vmem [shape: bf16[256,128], index: 3, kind: input, shape index: {}]   ;;  %s6438_s4 = inlined_call_operand.vmem [shape: f32[1,128], index: 4, kind: input, shape index: {}]   ;;  %s6439_s5 = inlined_call_operand.hbm [shape: f32[2,128], index: 5, kind: output, shape index: {}]  }
   0x1   :  { %v4185_v0 = vld [vmem:[%s6435_s1 + $0x4] ss:$8 sps:$4 sm:$0xff]   ;;  %v4189_v2 = vld [vmem:[%s6435_s1] ss:$8 sps:$4 sm:$0xff]   ;;  %v4191_v4 = vld [vmem:[%s6435_s1 + $0x14] ss:$8 sps:$4 sm:$0xff]   ;;  %v484_v38 = vunpack.c.l.s4 %v4890_v37 }
   0x2   :  { %v4187_v1 = vld [vmem:[%s6435_s1 + $0x604] ss:$8 sps:$4 sm:$0xff]   ;;  %2884 = vmatprep.subr.bf16.mxu1 %v4185_v0  ;;  %v4190_v3 = vld [vmem:[%s6435_s1 + $0x600] ss:$8 sps:$4 sm:$0xff]   ;;  %v4193_v5 = vld [vmem:[%s6435_s1 + $0x614] ss:$8 sps:$4 sm:$0xff]  }
   0x3   :  { %3130 = vmatprep.subr.bf16.mxu0 %v4187_v1  ;;  %2885 = vmatpush1.bf16.msra.mxu1 %v4189_v2  ;;  %v4195_v6 = vld [vmem:[%s6435_s1 + $0x10] ss:$8 sps:$4 sm:$0xff]   ;;  %v4197_v8 = vld [vmem:[%s6435_s1 + $0x24] ss:$8 sps:$4 sm:$0xff]   ;;  %v4201_v10 = vld [vmem:[%s6435_s1 + $0x20] ss:$8 sps:$4 sm:$0xff]   ;;  %v485_v43 = vunpack.c.0.s8 %v484_v38 }
   0x4   :  { %3131 = vmatpush1.bf16.msra.mxu0 %v4190_v3  ;;  %2886 = vmatprep.subr.bf16.mxu1 %v4191_v4  ;;  %v4196_v7 = vld [vmem:[%s6435_s1 + $0x610] ss:$8 sps:$4 sm:$0xff]   ;;  %v4199_v9 = vld [vmem:[%s6435_s1 + $0x624] ss:$8 sps:$4 sm:$0xff]   ;;  %v4202_v11 = vld [vmem:[%s6435_s1 + $0x620] ss:$8 sps:$4 sm:$0xff]  }
   0x5   :  { %3132 = vmatprep.subr.bf16.mxu0 %v4193_v5  ;;  %v4203_v12 = vld [vmem:[%s6435_s1 + $0x34] ss:$8 sps:$4 sm:$0xff]   ;;  %v4207_v14 = vld [vmem:[%s6435_s1 + $0x30] ss:$8 sps:$4 sm:$0xff]   ;;  %v4209_v16 = vld [vmem:[%s6435_s1 + $0x44] ss:$8 sps:$4 sm:$0xff]  }
   0x6   :  { %v4205_v13 = vld [vmem:[%s6435_s1 + $0x634] ss:$8 sps:$4 sm:$0xff]   ;;  %v4208_v15 = vld [vmem:[%s6435_s1 + $0x630] ss:$8 sps:$4 sm:$0xff]   ;;  %v4211_v17 = vld [vmem:[%s6435_s1 + $0x644] ss:$8 sps:$4 sm:$0xff]  }
   0x7   :  { %2887 = vmatpush1.bf16.msra.mxu1 %v4195_v6  ;;  %v4213_v18 = vld [vmem:[%s6435_s1 + $0x40] ss:$8 sps:$4 sm:$0xff]   ;;  %v4215_v20 = vld [vmem:[%s6435_s1 + $0x54] ss:$8 sps:$4 sm:$0xff]   ;;  %v4219_v22 = vld [vmem:[%s6435_s1 + $0x50] ss:$8 sps:$4 sm:$0xff]  }
   0x8   :  { %3133 = vmatpush1.bf16.msra.mxu0 %v4196_v7  ;;  %2888 = vmatprep.subr.bf16.mxu1 %v4197_v8  ;;  %v4214_v19 = vld [vmem:[%s6435_s1 + $0x640] ss:$8 sps:$4 sm:$0xff]   ;;  %v4217_v21 = vld [vmem:[%s6435_s1 + $0x654] ss:$8 sps:$4 sm:$0xff]   ;;  %v4220_v23 = vld [vmem:[%s6435_s1 + $0x650] ss:$8 sps:$4 sm:$0xff]  }
   0x9   :  { %3134 = vmatprep.subr.bf16.mxu0 %v4199_v9  ;;  %v4221_v24 = vld [vmem:[%s6435_s1 + $0x64] ss:$8 sps:$4 sm:$0xff]   ;;  %v4225_v26 = vld [vmem:[%s6435_s1 + $0x60] ss:$8 sps:$4 sm:$0xff]   ;;  %v4227_v28 = vld [vmem:[%s6435_s1 + $0x74] ss:$8 sps:$4 sm:$0xff]  }
   0xa   :  { %v4223_v25 = vld [vmem:[%s6435_s1 + $0x664] ss:$8 sps:$4 sm:$0xff]   ;;  %v4226_v27 = vld [vmem:[%s6435_s1 + $0x660] ss:$8 sps:$4 sm:$0xff]   ;;  %v4229_v29 = vld [vmem:[%s6435_s1 + $0x674] ss:$8 sps:$4 sm:$0xff]  }
   0xb   :  { %2889 = vmatpush1.bf16.msra.mxu1 %v4201_v10  ;;  %v4231_v30 = vld [vmem:[%s6435_s1 + $0x70] ss:$8 sps:$4 sm:$0xff]   ;;  %v4233_v32 = vld [vmem:[%s6435_s1 + $0x84] ss:$8 sps:$4 sm:$0xff]   ;;  %v4237_v34 = vld [vmem:[%s6435_s1 + $0x80] ss:$8 sps:$4 sm:$0xff]  }
   0xc   :  { %3135 = vmatpush1.bf16.msra.mxu0 %v4202_v11  ;;  %2890 = vmatprep.subr.bf16.mxu1 %v4203_v12  ;;  %v4232_v31 = vld [vmem:[%s6435_s1 + $0x670] ss:$8 sps:$4 sm:$0xff]   ;;  %v4235_v33 = vld [vmem:[%s6435_s1 + $0x684] ss:$8 sps:$4 sm:$0xff]   ;;  %v4238_v35 = vld [vmem:[%s6435_s1 + $0x680] ss:$8 sps:$4 sm:$0xff]  }
   0xd   :  { %3136 = vmatprep.subr.bf16.mxu0 %v4205_v13  ;;  %v4239_v39 = vld [vmem:[%s6435_s1 + $0x94] ss:$8 sps:$4 sm:$0xff]   ;;  %v4243_v41 = vld [vmem:[%s6435_s1 + $0x90] ss:$8 sps:$4 sm:$0xff]   ;;  %v5039_v42 = vshrl.u32 %v468_v36, 7  ;;  %v5068_v52 = vld [vmem:[%s6434_s0] sm:$0xff] }
   0xe   :  { %v4241_v40 = vld [vmem:[%s6435_s1 + $0x694] ss:$8 sps:$4 sm:$0xff]   ;;  %v4244_v44 = vld [vmem:[%s6435_s1 + $0x690] ss:$8 sps:$4 sm:$0xff]   ;;  %v4245_v45 = vld [vmem:[%s6435_s1 + $0xa4] ss:$8 sps:$4 sm:$0xff]  }
   0xf   :  { %2891 = vmatpush1.bf16.msra.mxu1 %v4207_v14  ;;  %v4247_v46 = vld [vmem:[%s6435_s1 + $0x6a4] ss:$8 sps:$4 sm:$0xff]   ;;  %v4249_v47 = vld [vmem:[%s6435_s1 + $0xa0] ss:$8 sps:$4 sm:$0xff]   ;;  %v5057_v49 = vsub.s32 %v485_v43, %v5039_v42  ;;  %v4251_v50 = vld [vmem:[%s6435_s1 + $0xb4] ss:$8 sps:$4 sm:$0xff]  }
  0x10   :  { %3137 = vmatpush1.bf16.msra.mxu0 %v4208_v15  ;;  %2892 = vmatprep.subr.bf16.mxu1 %v4209_v16  ;;  %v4250_v48 = vld [vmem:[%s6435_s1 + $0x6a0] ss:$8 sps:$4 sm:$0xff]   ;;  %v4253_v51 = vld [vmem:[%s6435_s1 + $0x6b4] ss:$8 sps:$4 sm:$0xff]   ;;  %v4255_v53 = vld [vmem:[%s6435_s1 + $0xb0] ss:$8 sps:$4 sm:$0xff]  }
  0x11   :  { %3138 = vmatprep.subr.bf16.mxu0 %v4211_v17  ;;  %v489_v54 = vrot.slane %v5068_v52, %v5057_v49  ;;  %v4256_v55 = vld [vmem:[%s6435_s1 + $0x6b0] ss:$8 sps:$4 sm:$0xff]   ;;  %v23_v56 = vld [vmem:[%s6434_s0 + $0x8] sm:$0xff]  ;;  %v4263_v1 = vld [vmem:[%s6435_s1 + $0xd4] ss:$8 sps:$4 sm:$0xff]  }
  0x12   :  { %v4257_v57 = vld [vmem:[%s6435_s1 + $0xc4] ss:$8 sps:$4 sm:$0xff]   ;;  %v531_v60 = vcombine.high %v23_v56, %v23_v56  ;;  %v4261_v63 = vld [vmem:[%s6435_s1 + $0xc0] ss:$8 sps:$4 sm:$0xff]   ;;  %v4265_v2 = vld [vmem:[%s6435_s1 + $0x6d4] ss:$8 sps:$4 sm:$0xff]  }
  0x13   :  { %2893 = vmatpush1.bf16.msra.mxu1 %v4213_v18  ;;  %v4259_v58 = vld [vmem:[%s6435_s1 + $0x6c4] ss:$8 sps:$4 sm:$0xff]   ;;  %v497_v59 = vcombine.high %v489_v54, %v489_v54  ;;  %v4262_v0 = vld [vmem:[%s6435_s1 + $0x6c0] ss:$8 sps:$4 sm:$0xff]   ;;  %v4267_v5 = vld [vmem:[%s6435_s1 + $0xd0] ss:$8 sps:$4 sm:$0xff]   ;;  %v5139_v17 = vrot.slane %v489_v54, %v5057_v49 }
  0x14   :  { %3139 = vmatpush1.bf16.msra.mxu0 %v4214_v19  ;;  %2894 = vmatprep.subr.bf16.mxu1 %v4215_v20  ;;  %v545_v62 = vrot.slane %v531_v60, %v5057_v49  ;;  %v4268_v6 = vld [vmem:[%s6435_s1 + $0x6d0] ss:$8 sps:$4 sm:$0xff]   ;;  %v4269_v7 = vld [vmem:[%s6435_s1 + $0xe4] ss:$8 sps:$4 sm:$0xff]   ;;  %v4273_v9 = vld [vmem:[%s6435_s1 + $0xe0] ss:$8 sps:$4 sm:$0xff]  }
  0x15   :  { %3140 = vmatprep.subr.bf16.mxu0 %v4217_v21  ;;  %v519_v61 = vrot.slane %v497_v59, %v5057_v49  ;;  %v4271_v8 = vld [vmem:[%s6435_s1 + $0x6e4] ss:$8 sps:$4 sm:$0xff]   ;;  %v4274_v10 = vld [vmem:[%s6435_s1 + $0x6e0] ss:$8 sps:$4 sm:$0xff]   ;;  %v4275_v11 = vld [vmem:[%s6435_s1 + $0xf4] ss:$8 sps:$4 sm:$0xff]  }
  0x16   :  { %v547_v3 = vcombine.high %v545_v62, %v545_v62  ;;  %v4277_v12 = vld [vmem:[%s6435_s1 + $0x6f4] ss:$8 sps:$4 sm:$0xff]   ;;  %v4279_v13 = vld [vmem:[%s6435_s1 + $0xf0] ss:$8 sps:$4 sm:$0xff]   ;;  %v4284_v15 = vld [vmem:[%s6435_s1 + $0x104] ss:$8 sps:$4 sm:$0xff]   ;;  %v5142_v18 = vrot.slane %v545_v62, %v5057_v49 }
  0x17   :  { %2895 = vmatpush1.bf16.msra.mxu1 %v4219_v22  ;;  %2916 = vmatprep.mubr.bf16.mxu1 %v519_v61  ;;  %v4280_v14 = vld [vmem:[%s6435_s1 + $0x6f0] ss:$8 sps:$4 sm:$0xff]   ;;  %v4288_v16 = vld [vmem:[%s6435_s1 + $0x704] ss:$8 sps:$4 sm:$0xff]   ;;  %v4282_v19 = vld [vmem:[%s6435_s1 + $0x100] ss:$8 sps:$4 sm:$0xff]  }
  0x18   :  { %3141 = vmatpush1.bf16.msra.mxu0 %v4220_v23  ;;  %2896 = vmatprep.subr.bf16.mxu1 %v4221_v24  ;;  %v575_v4 = vrot.slane %v547_v3, %v5057_v49  ;;  %v4286_v20 = vld [vmem:[%s6435_s1 + $0x700] ss:$8 sps:$4 sm:$0xff]   ;;  %v4291_v21 = vld [vmem:[%s6435_s1 + $0x114] ss:$8 sps:$4 sm:$0xff]   ;;  %v529_v23 = vcombine.high %v519_v61, %v519_v61  ;;  %v4312_v36 = vld [vmem:[%s6435_s1 + $0x744] ss:$8 sps:$4 sm:$0xff]  }
  0x19   :  { %3142 = vmatprep.subr.bf16.mxu0 %v4223_v25  ;;  %v4294_v22 = vld [vmem:[%s6435_s1 + $0x714] ss:$8 sps:$4 sm:$0xff]   ;;  %v4289_v25 = vld [vmem:[%s6435_s1 + $0x110] ss:$8 sps:$4 sm:$0xff]   ;;  %v4307_v37 = vld [vmem:[%s6435_s1 + $0x140] ss:$8 sps:$4 sm:$0xff]  }
  0x1a   :  { %3162 = vmatprep.mubr.bf16.mxu0 %v575_v4  ;;  %v579_v24 = vcombine.high %v575_v4, %v575_v4  ;;  %v4310_v38 = vld [vmem:[%s6435_s1 + $0x740] ss:$8 sps:$4 sm:$0xff]   ;;  %v4316_v43 = vld [vmem:[%s6435_s1 + $0x750] ss:$8 sps:$4 sm:$0xff]   ;;  %v4333_v54 = vld [vmem:[%s6435_s1 + $0x184] ss:$8 sps:$4 sm:$0xff]  }
  0x1b   :  { %2897 = vmatpush1.bf16.msra.mxu1 %v4225_v26  ;;  %v4292_v26 = vld [vmem:[%s6435_s1 + $0x710] ss:$8 sps:$4 sm:$0xff]   ;;  %v4331_v56 = vld [vmem:[%s6435_s1 + $0x180] ss:$8 sps:$4 sm:$0xff]   ;;  %v4342_v59 = vld [vmem:[%s6435_s1 + $0x794] ss:$8 sps:$4 sm:$0xff]  }
  0x1c   :  { %3143 = vmatpush1.bf16.msra.mxu0 %v4226_v27  ;;  %2898 = vmatprep.subr.bf16.mxu1 %v4227_v28  ;;  %v4297_v27 = vld [vmem:[%s6435_s1 + $0x124] ss:$8 sps:$4 sm:$0xff]   ;;  %v4337_v60 = vld [vmem:[%s6435_s1 + $0x190] ss:$8 sps:$4 sm:$0xff]   ;;  %v4354_v3 = vld [vmem:[%s6435_s1 + $0x7b4] ss:$8 sps:$4 sm:$0xff]  }
  0x1d   :  { %3144 = vmatprep.subr.bf16.mxu0 %v4229_v29  ;;  %v4300_v28 = vld [vmem:[%s6435_s1 + $0x724] ss:$8 sps:$4 sm:$0xff]   ;;  %v4295_v29 = vld [vmem:[%s6435_s1 + $0x120] ss:$8 sps:$4 sm:$0xff]   ;;  %v4340_v61 = vld [vmem:[%s6435_s1 + $0x790] ss:$8 sps:$4 sm:$0xff]  }
  0x1e   :  { %v4345_v62 = vld [vmem:[%s6435_s1 + $0x1a4] ss:$8 sps:$4 sm:$0xff]   ;;  %v4349_v4 = vld [vmem:[%s6435_s1 + $0x1b0] ss:$8 sps:$4 sm:$0xff]  }
  0x1f   :  { %2899 = vmatpush1.bf16.msra.mxu1 %v4231_v30  ;;  %v4298_v30 = vld [vmem:[%s6435_s1 + $0x720] ss:$8 sps:$4 sm:$0xff]  }
  0x20   :  { %3145 = vmatpush1.bf16.msra.mxu0 %v4232_v31  ;;  %2900 = vmatprep.subr.bf16.mxu1 %v4233_v32  ;;  %v4303_v31 = vld [vmem:[%s6435_s1 + $0x134] ss:$8 sps:$4 sm:$0xff]  }
  0x21   :  { %3146 = vmatprep.subr.bf16.mxu0 %v4235_v33  ;;  %v4306_v32 = vld [vmem:[%s6435_s1 + $0x734] ss:$8 sps:$4 sm:$0xff]   ;;  %v4301_v33 = vld [vmem:[%s6435_s1 + $0x130] ss:$8 sps:$4 sm:$0xff]  }
  0x23   :  { %2901 = vmatpush1.bf16.msra.mxu1 %v4237_v34  ;;  %v4304_v34 = vld [vmem:[%s6435_s1 + $0x730] ss:$8 sps:$4 sm:$0xff]  }
  0x24   :  { %3147 = vmatpush1.bf16.msra.mxu0 %v4238_v35  ;;  %2902 = vmatprep.subr.bf16.mxu1 %v4239_v39  ;;  %v4309_v35 = vld [vmem:[%s6435_s1 + $0x144] ss:$8 sps:$4 sm:$0xff]   ;;  %v4315_v39 = vld [vmem:[%s6435_s1 + $0x154] ss:$8 sps:$4 sm:$0xff]  }
  0x25   :  { %3148 = vmatprep.subr.bf16.mxu0 %v4241_v40  ;;  %v4318_v40 = vld [vmem:[%s6435_s1 + $0x754] ss:$8 sps:$4 sm:$0xff]  }
  0x27   :  { %2903 = vmatpush1.bf16.msra.mxu1 %v4243_v41  ;;  %v4313_v41 = vld [vmem:[%s6435_s1 + $0x150] ss:$8 sps:$4 sm:$0xff]  }
  0x28   :  { %3149 = vmatpush1.bf16.msra.mxu0 %v4244_v44  ;;  %2904 = vmatprep.subr.bf16.mxu1 %v4245_v45  ;;  %v4321_v44 = vld [vmem:[%s6435_s1 + $0x164] ss:$8 sps:$4 sm:$0xff]  }
  0x29   :  { %3150 = vmatprep.subr.bf16.mxu0 %v4247_v46  ;;  %v4324_v45 = vld [vmem:[%s6435_s1 + $0x764] ss:$8 sps:$4 sm:$0xff]   ;;  %v4319_v46 = vld [vmem:[%s6435_s1 + $0x160] ss:$8 sps:$4 sm:$0xff]  }
  0x2b   :  { %2905 = vmatpush1.bf16.msra.mxu1 %v4249_v47  ;;  %v4322_v47 = vld [vmem:[%s6435_s1 + $0x760] ss:$8 sps:$4 sm:$0xff]  }
  0x2c   :  { %3151 = vmatpush1.bf16.msra.mxu0 %v4250_v48  ;;  %2906 = vmatprep.subr.bf16.mxu1 %v4251_v50  ;;  %v4327_v48 = vld [vmem:[%s6435_s1 + $0x174] ss:$8 sps:$4 sm:$0xff]  }
  0x2d   :  { %3152 = vmatprep.subr.bf16.mxu0 %v4253_v51  ;;  %v4330_v50 = vld [vmem:[%s6435_s1 + $0x774] ss:$8 sps:$4 sm:$0xff]   ;;  %v4325_v51 = vld [vmem:[%s6435_s1 + $0x170] ss:$8 sps:$4 sm:$0xff]  }
  0x2f   :  { %2907 = vmatpush1.bf16.msra.mxu1 %v4255_v53  ;;  %v4328_v53 = vld [vmem:[%s6435_s1 + $0x770] ss:$8 sps:$4 sm:$0xff]  }
  0x30   :  { %3153 = vmatpush1.bf16.msra.mxu0 %v4256_v55  ;;  %2908 = vmatprep.subr.bf16.mxu1 %v4257_v57  ;;  %v4336_v55 = vld [vmem:[%s6435_s1 + $0x784] ss:$8 sps:$4 sm:$0xff]   ;;  %v4334_v57 = vld [vmem:[%s6435_s1 + $0x780] ss:$8 sps:$4 sm:$0xff]  }
  0x31   :  { %3154 = vmatprep.subr.bf16.mxu0 %v4259_v58  ;;  %v4339_v58 = vld [vmem:[%s6435_s1 + $0x194] ss:$8 sps:$4 sm:$0xff]  }
  0x33   :  { %2909 = vmatpush1.bf16.msra.mxu1 %v4261_v63  ;;  %v4348_v63 = vld [vmem:[%s6435_s1 + $0x7a4] ss:$8 sps:$4 sm:$0xff]  }
  0x34   :  { %3155 = vmatpush1.bf16.msra.mxu0 %v4262_v0  ;;  %2910 = vmatprep.subr.bf16.mxu1 %v4263_v1  ;;  %v4343_v0 = vld [vmem:[%s6435_s1 + $0x1a0] ss:$8 sps:$4 sm:$0xff]  }
  0x35   :  { %3156 = vmatprep.subr.bf16.mxu0 %v4265_v2  ;;  %v4346_v1 = vld [vmem:[%s6435_s1 + $0x7a0] ss:$8 sps:$4 sm:$0xff]   ;;  %v4351_v2 = vld [vmem:[%s6435_s1 + $0x1b4] ss:$8 sps:$4 sm:$0xff]  }
  0x37   :  { %2911 = vmatpush1.bf16.msra.mxu1 %v4267_v5  ;;  %v4352_v5 = vld [vmem:[%s6435_s1 + $0x7b0] ss:$8 sps:$4 sm:$0xff]  }
  0x38   :  { %3157 = vmatpush1.bf16.msra.mxu0 %v4268_v6  ;;  %2912 = vmatprep.subr.bf16.mxu1 %v4269_v7  ;;  %v4357_v6 = vld [vmem:[%s6435_s1 + $0x1c4] ss:$8 sps:$4 sm:$0xff]  }
  0x39   :  { %3158 = vmatprep.subr.bf16.mxu0 %v4271_v8  ;;  %v4360_v7 = vld [vmem:[%s6435_s1 + $0x7c4] ss:$8 sps:$4 sm:$0xff]   ;;  %v4355_v8 = vld [vmem:[%s6435_s1 + $0x1c0] ss:$8 sps:$4 sm:$0xff]  }
  0x3b   :  { %2913 = vmatpush1.bf16.msra.mxu1 %v4273_v9  ;;  %v4358_v9 = vld [vmem:[%s6435_s1 + $0x7c0] ss:$8 sps:$4 sm:$0xff]  }
  0x3c   :  { %3159 = vmatpush1.bf16.msra.mxu0 %v4274_v10  ;;  %2914 = vmatprep.subr.bf16.mxu1 %v4275_v11  ;;  %v4363_v10 = vld [vmem:[%s6435_s1 + $0x1d4] ss:$8 sps:$4 sm:$0xff]  }
  0x3d   :  { %3160 = vmatprep.subr.bf16.mxu0 %v4277_v12  ;;  %v4366_v11 = vld [vmem:[%s6435_s1 + $0x7d4] ss:$8 sps:$4 sm:$0xff]   ;;  %v4361_v12 = vld [vmem:[%s6435_s1 + $0x1d0] ss:$8 sps:$4 sm:$0xff]  }
  0x3f   :  { %2915 = vmatpush1.bf16.msra.mxu1 %v4279_v13  ;;  %v4364_v13 = vld [vmem:[%s6435_s1 + $0x7d0] ss:$8 sps:$4 sm:$0xff]  }
  0x40   :  { %3161 = vmatpush1.bf16.msra.mxu0 %v4280_v14  ;;  %2925 = vmatprep.subr.bf16.mxu1 %v4284_v15  ;;  %v4369_v14 = vld [vmem:[%s6435_s1 + $0x1e4] ss:$8 sps:$4 sm:$0xff]  }
  0x41   :  { %3171 = vmatprep.subr.bf16.mxu0 %v4288_v16  ;;  %v4372_v15 = vld [vmem:[%s6435_s1 + $0x7e4] ss:$8 sps:$4 sm:$0xff]   ;;  %v482_v16 = vcombine.high %v5068_v52, %v5068_v52  ;;  %v4378_v52 = vld [vmem:[%s6435_s1 + $0x7f4] ss:$8 sps:$4 sm:$0xff]  }
  0x42   :  { %2917 = vmatmul.mubr.bf16.vlgmr.msra.gmra.mrb[0].mxu1 %v5139_v17 }
  0x43   :  { %3163 = vmatmul.mubr.bf16.vlgmr.msra.gmra.mrb[0].mxu0 %v5142_v18  ;;  %2926 = vmatpush1.bf16.msra.mxu1 %v4282_v19  ;;  %v4367_v19 = vld [vmem:[%s6435_s1 + $0x1e0] ss:$8 sps:$4 sm:$0xff]  }
  0x44   :  { %3172 = vmatpush1.bf16.msra.mxu0 %v4286_v20  ;;  %2927 = vmatprep.subr.bf16.mxu1 %v4291_v21  ;;  %v4370_v20 = vld [vmem:[%s6435_s1 + $0x7e0] ss:$8 sps:$4 sm:$0xff]   ;;  %v4375_v21 = vld [vmem:[%s6435_s1 + $0x1f4] ss:$8 sps:$4 sm:$0xff]  }
  0x45   :  { %3173 = vmatprep.subr.bf16.mxu0 %v4294_v22  ;;  %2957 = vmatprep.mubr.bf16.mxu1 %v529_v23  ;;  %v5329_v22 = vrot.slane %v482_v16, %v5057_v49  ;;  %v4373_v23 = vld [vmem:[%s6435_s1 + $0x1f0] ss:$8 sps:$4 sm:$0xff]  }
  0x46   :  { %3203 = vmatprep.mubr.bf16.mxu0 %v579_v24  ;;  %v4376_v24 = vld [vmem:[%s6435_s1 + $0x7f0] ss:$8 sps:$4 sm:$0xff]  }
  0x47   :  { %2928 = vmatpush1.bf16.msra.mxu1 %v4289_v25  ;;  %v4381_v25 = vld [vmem:[%s6435_s1 + $0x204] ss:$8 sps:$4 sm:$0xff]   ;;  %v4445_v16 = vld [vmem:[%s6435_s1 + $0x2b0] ss:$8 sps:$4 sm:$0xff]  }
  0x48   :  { %3174 = vmatpush1.bf16.msra.mxu0 %v4292_v26  ;;  %2929 = vmatprep.subr.bf16.mxu1 %v4297_v27  ;;  %v4384_v26 = vld [vmem:[%s6435_s1 + $0x804] ss:$8 sps:$4 sm:$0xff]   ;;  %v498_v27 = vcombine.high %v5329_v22, %v5329_v22 }
  0x49   :  { %3175 = vmatprep.subr.bf16.mxu0 %v4300_v28  ;;  %v527_v28 = vcombine.high %v5139_v17, %v5139_v17  ;;  %v4390_v17 = vld [vmem:[%s6435_s1 + $0x814] ss:$8 sps:$4 sm:$0xff]  }
  0x4b   :  { %2930 = vmatpush1.bf16.msra.mxu1 %v4295_v29  ;;  %v577_v29 = vcombine.high %v5142_v18, %v5142_v18  ;;  %v5362_v18 = vrot.slane %v498_v27, %v5057_v49  ;;  %v4460_v27 = vld [vmem:[%s6435_s1 + $0x8d0] ss:$8 sps:$4 sm:$0xff]  }
  0x4c   :  { %3176 = vmatpush1.bf16.msra.mxu0 %v4298_v30  ;;  %2931 = vmatprep.subr.bf16.mxu1 %v4303_v31  ;;  %v4379_v30 = vld [vmem:[%s6435_s1 + $0x200] ss:$8 sps:$4 sm:$0xff]  }
  0x4d   :  { %3177 = vmatprep.subr.bf16.mxu0 %v4306_v32  ;;  %v4382_v31 = vld [vmem:[%s6435_s1 + $0x800] ss:$8 sps:$4 sm:$0xff]   ;;  %v4387_v32 = vld [vmem:[%s6435_s1 + $0x214] ss:$8 sps:$4 sm:$0xff]  }
  0x4f   :  { %2932 = vmatpush1.bf16.msra.mxu1 %v4301_v33  ;;  %v5367_v33 = vld [vmem:[%s6434_s0 + $0x10] sm:$0xff] }
  0x50   :  { %3178 = vmatpush1.bf16.msra.mxu0 %v4304_v34  ;;  %2933 = vmatprep.subr.bf16.mxu1 %v4309_v35  ;;  %v4385_v34 = vld [vmem:[%s6435_s1 + $0x210] ss:$8 sps:$4 sm:$0xff]   ;;  %v5374_v35 = vrot.slane %v5367_v33, %v5057_v49 }
  0x51   :  { %3179 = vmatprep.subr.bf16.mxu0 %v4312_v36  ;;  %v4388_v36 = vld [vmem:[%s6435_s1 + $0x810] ss:$8 sps:$4 sm:$0xff]  }
  0x53   :  { %2934 = vmatpush1.bf16.msra.mxu1 %v4307_v37  ;;  %v4393_v37 = vld [vmem:[%s6435_s1 + $0x224] ss:$8 sps:$4 sm:$0xff]  }
  0x54   :  { %3180 = vmatpush1.bf16.msra.mxu0 %v4310_v38  ;;  %2935 = vmatprep.subr.bf16.mxu1 %v4315_v39  ;;  %v4396_v38 = vld [vmem:[%s6435_s1 + $0x824] ss:$8 sps:$4 sm:$0xff]   ;;  %v595_v39 = vcombine.high %v5374_v35, %v5374_v35 }
  0x55   :  { %3181 = vmatprep.subr.bf16.mxu0 %v4318_v40  ;;  %v4391_v40 = vld [vmem:[%s6435_s1 + $0x220] ss:$8 sps:$4 sm:$0xff]  }
  0x57   :  { %2936 = vmatpush1.bf16.msra.mxu1 %v4313_v41  ;;  %v5392_v41 = vrot.slane %v595_v39, %v5057_v49  ;;  %v4475_v39 = vld [vmem:[%s6435_s1 + $0x300] ss:$8 sps:$4 sm:$0xff]  }
  0x58   :  { %3182 = vmatpush1.bf16.msra.mxu0 %v4316_v43  ;;  %2937 = vmatprep.subr.bf16.mxu1 %v4321_v44  ;;  %v4394_v43 = vld [vmem:[%s6435_s1 + $0x820] ss:$8 sps:$4 sm:$0xff]   ;;  %v4399_v44 = vld [vmem:[%s6435_s1 + $0x234] ss:$8 sps:$4 sm:$0xff]  }
  0x59   :  { %3183 = vmatprep.subr.bf16.mxu0 %v4324_v45  ;;  %v4402_v45 = vld [vmem:[%s6435_s1 + $0x834] ss:$8 sps:$4 sm:$0xff]  }
  0x5b   :  { %2938 = vmatpush1.bf16.msra.mxu1 %v4319_v46  ;;  %v4397_v46 = vld [vmem:[%s6435_s1 + $0x230] ss:$8 sps:$4 sm:$0xff]  }
  0x5c   :  { %3184 = vmatpush1.bf16.msra.mxu0 %v4322_v47  ;;  %2939 = vmatprep.subr.bf16.mxu1 %v4327_v48  ;;  %v4400_v47 = vld [vmem:[%s6435_s1 + $0x830] ss:$8 sps:$4 sm:$0xff]   ;;  %v4405_v48 = vld [vmem:[%s6435_s1 + $0x244] ss:$8 sps:$4 sm:$0xff]  }
  0x5d   :  { %3185 = vmatprep.subr.bf16.mxu0 %v4330_v50  ;;  %v4408_v50 = vld [vmem:[%s6435_s1 + $0x844] ss:$8 sps:$4 sm:$0xff]  }
  0x5f   :  { %2940 = vmatpush1.bf16.msra.mxu1 %v4325_v51  ;;  %v4403_v51 = vld [vmem:[%s6435_s1 + $0x240] ss:$8 sps:$4 sm:$0xff]  }
  0x60   :  { %3186 = vmatpush1.bf16.msra.mxu0 %v4328_v53  ;;  %2941 = vmatprep.subr.bf16.mxu1 %v4333_v54  ;;  %v4406_v53 = vld [vmem:[%s6435_s1 + $0x840] ss:$8 sps:$4 sm:$0xff]   ;;  %v4411_v54 = vld [vmem:[%s6435_s1 + $0x254] ss:$8 sps:$4 sm:$0xff]  }
  0x61   :  { %3187 = vmatprep.subr.bf16.mxu0 %v4336_v55  ;;  %v4414_v55 = vld [vmem:[%s6435_s1 + $0x854] ss:$8 sps:$4 sm:$0xff]  }
  0x63   :  { %2942 = vmatpush1.bf16.msra.mxu1 %v4331_v56  ;;  %v4409_v56 = vld [vmem:[%s6435_s1 + $0x250] ss:$8 sps:$4 sm:$0xff]  }
  0x64   :  { %3188 = vmatpush1.bf16.msra.mxu0 %v4334_v57  ;;  %2943 = vmatprep.subr.bf16.mxu1 %v4339_v58  ;;  %v4412_v57 = vld [vmem:[%s6435_s1 + $0x850] ss:$8 sps:$4 sm:$0xff]   ;;  %v4417_v58 = vld [vmem:[%s6435_s1 + $0x264] ss:$8 sps:$4 sm:$0xff]  }
  0x65   :  { %3189 = vmatprep.subr.bf16.mxu0 %v4342_v59  ;;  %v4420_v59 = vld [vmem:[%s6435_s1 + $0x864] ss:$8 sps:$4 sm:$0xff]  }
  0x67   :  { %2944 = vmatpush1.bf16.msra.mxu1 %v4337_v60  ;;  %v4415_v60 = vld [vmem:[%s6435_s1 + $0x260] ss:$8 sps:$4 sm:$0xff]  }
  0x68   :  { %3190 = vmatpush1.bf16.msra.mxu0 %v4340_v61  ;;  %2945 = vmatprep.subr.bf16.mxu1 %v4345_v62  ;;  %v4418_v61 = vld [vmem:[%s6435_s1 + $0x860] ss:$8 sps:$4 sm:$0xff]   ;;  %v4423_v62 = vld [vmem:[%s6435_s1 + $0x274] ss:$8 sps:$4 sm:$0xff]  }
  0x69   :  { %3191 = vmatprep.subr.bf16.mxu0 %v4348_v63  ;;  %v4426_v63 = vld [vmem:[%s6435_s1 + $0x874] ss:$8 sps:$4 sm:$0xff]  }
  0x6b   :  { %2946 = vmatpush1.bf16.msra.mxu1 %v4343_v0  ;;  %v4421_v0 = vld [vmem:[%s6435_s1 + $0x270] ss:$8 sps:$4 sm:$0xff]  }
  0x6c   :  { %3192 = vmatpush1.bf16.msra.mxu0 %v4346_v1  ;;  %2947 = vmatprep.subr.bf16.mxu1 %v4351_v2  ;;  %v4424_v1 = vld [vmem:[%s6435_s1 + $0x870] ss:$8 sps:$4 sm:$0xff]   ;;  %v4429_v2 = vld [vmem:[%s6435_s1 + $0x284] ss:$8 sps:$4 sm:$0xff]  }
  0x6d   :  { %3193 = vmatprep.subr.bf16.mxu0 %v4354_v3  ;;  %v4432_v3 = vld [vmem:[%s6435_s1 + $0x884] ss:$8 sps:$4 sm:$0xff]  }
  0x6f   :  { %2948 = vmatpush1.bf16.msra.mxu1 %v4349_v4  ;;  %v4427_v4 = vld [vmem:[%s6435_s1 + $0x280] ss:$8 sps:$4 sm:$0xff]  }
  0x70   :  { %3194 = vmatpush1.bf16.msra.mxu0 %v4352_v5  ;;  %2949 = vmatprep.subr.bf16.mxu1 %v4357_v6  ;;  %v4430_v5 = vld [vmem:[%s6435_s1 + $0x880] ss:$8 sps:$4 sm:$0xff]   ;;  %v4435_v6 = vld [vmem:[%s6435_s1 + $0x294] ss:$8 sps:$4 sm:$0xff]  }
  0x71   :  { %3195 = vmatprep.subr.bf16.mxu0 %v4360_v7  ;;  %v4438_v7 = vld [vmem:[%s6435_s1 + $0x894] ss:$8 sps:$4 sm:$0xff]  }
  0x73   :  { %2950 = vmatpush1.bf16.msra.mxu1 %v4355_v8  ;;  %v4433_v8 = vld [vmem:[%s6435_s1 + $0x290] ss:$8 sps:$4 sm:$0xff]  }
  0x74   :  { %3196 = vmatpush1.bf16.msra.mxu0 %v4358_v9  ;;  %2951 = vmatprep.subr.bf16.mxu1 %v4363_v10  ;;  %v4436_v9 = vld [vmem:[%s6435_s1 + $0x890] ss:$8 sps:$4 sm:$0xff]   ;;  %v4441_v10 = vld [vmem:[%s6435_s1 + $0x2a4] ss:$8 sps:$4 sm:$0xff]  }
  0x75   :  { %3197 = vmatprep.subr.bf16.mxu0 %v4366_v11  ;;  %v4444_v11 = vld [vmem:[%s6435_s1 + $0x8a4] ss:$8 sps:$4 sm:$0xff]  }
  0x77   :  { %2952 = vmatpush1.bf16.msra.mxu1 %v4361_v12  ;;  %v4439_v12 = vld [vmem:[%s6435_s1 + $0x2a0] ss:$8 sps:$4 sm:$0xff]  }
  0x78   :  { %3198 = vmatpush1.bf16.msra.mxu0 %v4364_v13  ;;  %2953 = vmatprep.subr.bf16.mxu1 %v4369_v14  ;;  %v4442_v13 = vld [vmem:[%s6435_s1 + $0x8a0] ss:$8 sps:$4 sm:$0xff]   ;;  %v4447_v14 = vld [vmem:[%s6435_s1 + $0x2b4] ss:$8 sps:$4 sm:$0xff]  }
  0x79   :  { %3199 = vmatprep.subr.bf16.mxu0 %v4372_v15  ;;  %v4450_v15 = vld [vmem:[%s6435_s1 + $0x8b4] ss:$8 sps:$4 sm:$0xff]  }
  0x7b   :  { %2954 = vmatpush1.bf16.msra.mxu1 %v4367_v19  ;;  %v4448_v19 = vld [vmem:[%s6435_s1 + $0x8b0] ss:$8 sps:$4 sm:$0xff]  }
  0x7c   :  { %3200 = vmatpush1.bf16.msra.mxu0 %v4370_v20  ;;  %2955 = vmatprep.subr.bf16.mxu1 %v4375_v21  ;;  %v4453_v20 = vld [vmem:[%s6435_s1 + $0x2c4] ss:$8 sps:$4 sm:$0xff]  }
  0x7d   :  { %3201 = vmatprep.subr.bf16.mxu0 %v4378_v52  ;;  %v4456_v21 = vld [vmem:[%s6435_s1 + $0x8c4] ss:$8 sps:$4 sm:$0xff]   ;;  %v4451_v52 = vld [vmem:[%s6435_s1 + $0x2c0] ss:$8 sps:$4 sm:$0xff]  }
  0x7f   :  { %2956 = vmatpush1.bf16.msra.mxu1 %v4373_v23  ;;  %v4454_v23 = vld [vmem:[%s6435_s1 + $0x8c0] ss:$8 sps:$4 sm:$0xff]  }
  0x80   :  { %3202 = vmatpush1.bf16.msra.mxu0 %v4376_v24  ;;  %2966 = vmatprep.subr.bf16.mxu1 %v4381_v25  ;;  %v4459_v24 = vld [vmem:[%s6435_s1 + $0x2d4] ss:$8 sps:$4 sm:$0xff]  }
  0x81   :  { %3212 = vmatprep.subr.bf16.mxu0 %v4384_v26  ;;  %v4462_v25 = vld [vmem:[%s6435_s1 + $0x8d4] ss:$8 sps:$4 sm:$0xff]   ;;  %v4457_v26 = vld [vmem:[%s6435_s1 + $0x2d0] ss:$8 sps:$4 sm:$0xff]  }
  0x82   :  { %2958 = vmatmul.mubr.bf16.vlgmr.msra.gmra.mrb[0].mxu1 %v527_v28  ;;  %v4465_v28 = vld [vmem:[%s6435_s1 + $0x2e4] ss:$8 sps:$4 sm:$0xff]  }
  0x83   :  { %3204 = vmatmul.mubr.bf16.vlgmr.msra.gmra.mrb[0].mxu0 %v577_v29  ;;  %2967 = vmatpush1.bf16.msra.mxu1 %v4379_v30  ;;  %v4468_v29 = vld [vmem:[%s6435_s1 + $0x8e4] ss:$8 sps:$4 sm:$0xff]   ;;  %v4463_v30 = vld [vmem:[%s6435_s1 + $0x2e0] ss:$8 sps:$4 sm:$0xff]  }
  0x84   :  { %3213 = vmatpush1.bf16.msra.mxu0 %v4382_v31  ;;  %2968 = vmatprep.subr.bf16.mxu1 %v4387_v32  ;;  %v4466_v31 = vld [vmem:[%s6435_s1 + $0x8e0] ss:$8 sps:$4 sm:$0xff]   ;;  %v4471_v32 = vld [vmem:[%s6435_s1 + $0x2f4] ss:$8 sps:$4 sm:$0xff]  }
  0x85   :  { %3214 = vmatprep.subr.bf16.mxu0 %v4390_v17  ;;  %2998 = vmatprep.mubr.bf16.mxu1 %v5362_v18  ;;  %v4474_v17 = vld [vmem:[%s6435_s1 + $0x8f4] ss:$8 sps:$4 sm:$0xff]  }
  0x86   :  { %3244 = vmatprep.mubr.bf16.mxu0 %v5392_v41 }
  0x87   :  { %2969 = vmatpush1.bf16.msra.mxu1 %v4385_v34  ;;  %v4469_v34 = vld [vmem:[%s6435_s1 + $0x2f0] ss:$8 sps:$4 sm:$0xff]  }
  0x88   :  { %3215 = vmatpush1.bf16.msra.mxu0 %v4388_v36  ;;  %2970 = vmatprep.subr.bf16.mxu1 %v4393_v37  ;;  %v4472_v36 = vld [vmem:[%s6435_s1 + $0x8f0] ss:$8 sps:$4 sm:$0xff]   ;;  %v4477_v37 = vld [vmem:[%s6435_s1 + $0x304] ss:$8 sps:$4 sm:$0xff]  }
  0x89   :  { %3216 = vmatprep.subr.bf16.mxu0 %v4396_v38  ;;  %v4480_v38 = vld [vmem:[%s6435_s1 + $0x904] ss:$8 sps:$4 sm:$0xff]  }
  0x8b   :  { %2971 = vmatpush1.bf16.msra.mxu1 %v4391_v40  ;;  %v5565_v40 = vrot.slane %v5329_v22, %v5057_v49  ;;  %v4486_v22 = vld [vmem:[%s6435_s1 + $0x914] ss:$8 sps:$4 sm:$0xff]  }
  0x8c   :  { %3217 = vmatpush1.bf16.msra.mxu0 %v4394_v43  ;;  %2972 = vmatprep.subr.bf16.mxu1 %v4399_v44  ;;  %v5569_v43 = vrot.slane %v5374_v35, %v5057_v49  ;;  %v4478_v44 = vld [vmem:[%s6435_s1 + $0x900] ss:$8 sps:$4 sm:$0xff]   ;;  %v530_v35 = vcombine.high %v5362_v18, %v5362_v18  ;;  %v4489_v18 = vld [vmem:[%s6435_s1 + $0x324] ss:$8 sps:$4 sm:$0xff]  }
  0x8d   :  { %3218 = vmatprep.subr.bf16.mxu0 %v4402_v45  ;;  %v4483_v45 = vld [vmem:[%s6435_s1 + $0x314] ss:$8 sps:$4 sm:$0xff]  }
  0x8f   :  { %2973 = vmatpush1.bf16.msra.mxu1 %v4397_v46  ;;  %v627_v46 = vcombine.high %v5392_v41, %v5392_v41  ;;  %v4492_v41 = vld [vmem:[%s6435_s1 + $0x924] ss:$8 sps:$4 sm:$0xff]  }
  0x90   :  { %3219 = vmatpush1.bf16.msra.mxu0 %v4400_v47  ;;  %2974 = vmatprep.subr.bf16.mxu1 %v4405_v48  ;;  %v4481_v47 = vld [vmem:[%s6435_s1 + $0x310] ss:$8 sps:$4 sm:$0xff]  }
  0x91   :  { %3220 = vmatprep.subr.bf16.mxu0 %v4408_v50  ;;  %v4484_v48 = vld [vmem:[%s6435_s1 + $0x910] ss:$8 sps:$4 sm:$0xff]   ;;  %v4487_v50 = vld [vmem:[%s6435_s1 + $0x320] ss:$8 sps:$4 sm:$0xff]  }
  0x93   :  { %2975 = vmatpush1.bf16.msra.mxu1 %v4403_v51  ;;  %v4490_v51 = vld [vmem:[%s6435_s1 + $0x920] ss:$8 sps:$4 sm:$0xff]  }
  0x94   :  { %3221 = vmatpush1.bf16.msra.mxu0 %v4406_v53  ;;  %2976 = vmatprep.subr.bf16.mxu1 %v4411_v54  ;;  %v4495_v53 = vld [vmem:[%s6435_s1 + $0x334] ss:$8 sps:$4 sm:$0xff]  }
  0x95   :  { %3222 = vmatprep.subr.bf16.mxu0 %v4414_v55  ;;  %v4498_v54 = vld [vmem:[%s6435_s1 + $0x934] ss:$8 sps:$4 sm:$0xff]   ;;  %v4493_v55 = vld [vmem:[%s6435_s1 + $0x330] ss:$8 sps:$4 sm:$0xff]  }
  0x97   :  { %2977 = vmatpush1.bf16.msra.mxu1 %v4409_v56  ;;  %v4496_v56 = vld [vmem:[%s6435_s1 + $0x930] ss:$8 sps:$4 sm:$0xff]  }
  0x98   :  { %3223 = vmatpush1.bf16.msra.mxu0 %v4412_v57  ;;  %2978 = vmatprep.subr.bf16.mxu1 %v4417_v58  ;;  %v4501_v57 = vld [vmem:[%s6435_s1 + $0x344] ss:$8 sps:$4 sm:$0xff]  }
  0x99   :  { %3224 = vmatprep.subr.bf16.mxu0 %v4420_v59  ;;  %v4504_v58 = vld [vmem:[%s6435_s1 + $0x944] ss:$8 sps:$4 sm:$0xff]   ;;  %v4499_v59 = vld [vmem:[%s6435_s1 + $0x340] ss:$8 sps:$4 sm:$0xff]  }
  0x9b   :  { %2979 = vmatpush1.bf16.msra.mxu1 %v4415_v60  ;;  %v4502_v60 = vld [vmem:[%s6435_s1 + $0x940] ss:$8 sps:$4 sm:$0xff]  }
  0x9c   :  { %3225 = vmatpush1.bf16.msra.mxu0 %v4418_v61  ;;  %2980 = vmatprep.subr.bf16.mxu1 %v4423_v62  ;;  %v4507_v61 = vld [vmem:[%s6435_s1 + $0x354] ss:$8 sps:$4 sm:$0xff]  }
  0x9d   :  { %3226 = vmatprep.subr.bf16.mxu0 %v4426_v63  ;;  %v4510_v62 = vld [vmem:[%s6435_s1 + $0x954] ss:$8 sps:$4 sm:$0xff]   ;;  %v4505_v63 = vld [vmem:[%s6435_s1 + $0x350] ss:$8 sps:$4 sm:$0xff]  }
  0x9f   :  { %2981 = vmatpush1.bf16.msra.mxu1 %v4421_v0  ;;  %v4508_v0 = vld [vmem:[%s6435_s1 + $0x950] ss:$8 sps:$4 sm:$0xff]  }
  0xa0   :  { %3227 = vmatpush1.bf16.msra.mxu0 %v4424_v1  ;;  %2982 = vmatprep.subr.bf16.mxu1 %v4429_v2  ;;  %v4513_v1 = vld [vmem:[%s6435_s1 + $0x364] ss:$8 sps:$4 sm:$0xff]  }
  0xa1   :  { %3228 = vmatprep.subr.bf16.mxu0 %v4432_v3  ;;  %v4516_v2 = vld [vmem:[%s6435_s1 + $0x964] ss:$8 sps:$4 sm:$0xff]   ;;  %v4511_v3 = vld [vmem:[%s6435_s1 + $0x360] ss:$8 sps:$4 sm:$0xff]  }
  0xa3   :  { %2983 = vmatpush1.bf16.msra.mxu1 %v4427_v4  ;;  %v4514_v4 = vld [vmem:[%s6435_s1 + $0x960] ss:$8 sps:$4 sm:$0xff]  }
  0xa4   :  { %3229 = vmatpush1.bf16.msra.mxu0 %v4430_v5  ;;  %2984 = vmatprep.subr.bf16.mxu1 %v4435_v6  ;;  %v4519_v5 = vld [vmem:[%s6435_s1 + $0x374] ss:$8 sps:$4 sm:$0xff]  }
  0xa5   :  { %3230 = vmatprep.subr.bf16.mxu0 %v4438_v7  ;;  %v4522_v6 = vld [vmem:[%s6435_s1 + $0x974] ss:$8 sps:$4 sm:$0xff]   ;;  %v4517_v7 = vld [vmem:[%s6435_s1 + $0x370] ss:$8 sps:$4 sm:$0xff]  }
  0xa7   :  { %2985 = vmatpush1.bf16.msra.mxu1 %v4433_v8  ;;  %v4520_v8 = vld [vmem:[%s6435_s1 + $0x970] ss:$8 sps:$4 sm:$0xff]  }
  0xa8   :  { %3231 = vmatpush1.bf16.msra.mxu0 %v4436_v9  ;;  %2986 = vmatprep.subr.bf16.mxu1 %v4441_v10  ;;  %v4525_v9 = vld [vmem:[%s6435_s1 + $0x384] ss:$8 sps:$4 sm:$0xff]  }
  0xa9   :  { %3232 = vmatprep.subr.bf16.mxu0 %v4444_v11  ;;  %v4528_v10 = vld [vmem:[%s6435_s1 + $0x984] ss:$8 sps:$4 sm:$0xff]   ;;  %v4523_v11 = vld [vmem:[%s6435_s1 + $0x380] ss:$8 sps:$4 sm:$0xff]  }
  0xab   :  { %2987 = vmatpush1.bf16.msra.mxu1 %v4439_v12  ;;  %v4526_v12 = vld [vmem:[%s6435_s1 + $0x980] ss:$8 sps:$4 sm:$0xff]  }
  0xac   :  { %3233 = vmatpush1.bf16.msra.mxu0 %v4442_v13  ;;  %2988 = vmatprep.subr.bf16.mxu1 %v4447_v14  ;;  %v4531_v13 = vld [vmem:[%s6435_s1 + $0x394] ss:$8 sps:$4 sm:$0xff]  }
  0xad   :  { %3234 = vmatprep.subr.bf16.mxu0 %v4450_v15  ;;  %v4534_v14 = vld [vmem:[%s6435_s1 + $0x994] ss:$8 sps:$4 sm:$0xff]   ;;  %v4529_v15 = vld [vmem:[%s6435_s1 + $0x390] ss:$8 sps:$4 sm:$0xff]  }
  0xaf   :  { %2989 = vmatpush1.bf16.msra.mxu1 %v4445_v16  ;;  %v4532_v16 = vld [vmem:[%s6435_s1 + $0x990] ss:$8 sps:$4 sm:$0xff]  }
  0xb0   :  { %3235 = vmatpush1.bf16.msra.mxu0 %v4448_v19  ;;  %2990 = vmatprep.subr.bf16.mxu1 %v4453_v20  ;;  %v4537_v19 = vld [vmem:[%s6435_s1 + $0x3a4] ss:$8 sps:$4 sm:$0xff]  }
  0xb1   :  { %3236 = vmatprep.subr.bf16.mxu0 %v4456_v21  ;;  %v4540_v20 = vld [vmem:[%s6435_s1 + $0x9a4] ss:$8 sps:$4 sm:$0xff]   ;;  %v4535_v21 = vld [vmem:[%s6435_s1 + $0x3a0] ss:$8 sps:$4 sm:$0xff]  }
  0xb3   :  { %2991 = vmatpush1.bf16.msra.mxu1 %v4451_v52  ;;  %v4538_v52 = vld [vmem:[%s6435_s1 + $0x9a0] ss:$8 sps:$4 sm:$0xff]  }
  0xb4   :  { %3237 = vmatpush1.bf16.msra.mxu0 %v4454_v23  ;;  %2992 = vmatprep.subr.bf16.mxu1 %v4459_v24  ;;  %v4543_v23 = vld [vmem:[%s6435_s1 + $0x3b4] ss:$8 sps:$4 sm:$0xff]  }
  0xb5   :  { %3238 = vmatprep.subr.bf16.mxu0 %v4462_v25  ;;  %v4546_v24 = vld [vmem:[%s6435_s1 + $0x9b4] ss:$8 sps:$4 sm:$0xff]   ;;  %v4541_v25 = vld [vmem:[%s6435_s1 + $0x3b0] ss:$8 sps:$4 sm:$0xff]  }
  0xb7   :  { %2993 = vmatpush1.bf16.msra.mxu1 %v4457_v26  ;;  %v4544_v26 = vld [vmem:[%s6435_s1 + $0x9b0] ss:$8 sps:$4 sm:$0xff]  }
  0xb8   :  { %3239 = vmatpush1.bf16.msra.mxu0 %v4460_v27  ;;  %2994 = vmatprep.subr.bf16.mxu1 %v4465_v28  ;;  %v4549_v27 = vld [vmem:[%s6435_s1 + $0x3c4] ss:$8 sps:$4 sm:$0xff]  }
  0xb9   :  { %3240 = vmatprep.subr.bf16.mxu0 %v4468_v29  ;;  %v4552_v28 = vld [vmem:[%s6435_s1 + $0x9c4] ss:$8 sps:$4 sm:$0xff]   ;;  %v4547_v29 = vld [vmem:[%s6435_s1 + $0x3c0] ss:$8 sps:$4 sm:$0xff]  }
  0xbb   :  { %2995 = vmatpush1.bf16.msra.mxu1 %v4463_v30  ;;  %v4550_v30 = vld [vmem:[%s6435_s1 + $0x9c0] ss:$8 sps:$4 sm:$0xff]  }
  0xbc   :  { %3241 = vmatpush1.bf16.msra.mxu0 %v4466_v31  ;;  %2996 = vmatprep.subr.bf16.mxu1 %v4471_v32  ;;  %v4555_v31 = vld [vmem:[%s6435_s1 + $0x3d4] ss:$8 sps:$4 sm:$0xff]  }
  0xbd   :  { %3242 = vmatprep.subr.bf16.mxu0 %v4474_v17  ;;  %v4558_v32 = vld [vmem:[%s6435_s1 + $0x9d4] ss:$8 sps:$4 sm:$0xff]   ;;  %v4553_v17 = vld [vmem:[%s6435_s1 + $0x3d0] ss:$8 sps:$4 sm:$0xff]  }
  0xbf   :  { %2997 = vmatpush1.bf16.msra.mxu1 %v4469_v34  ;;  %v4556_v34 = vld [vmem:[%s6435_s1 + $0x9d0] ss:$8 sps:$4 sm:$0xff]  }
  0xc0   :  { %3243 = vmatpush1.bf16.msra.mxu0 %v4472_v36  ;;  %3007 = vmatprep.subr.bf16.mxu1 %v4477_v37  ;;  %v4561_v36 = vld [vmem:[%s6435_s1 + $0x3e4] ss:$8 sps:$4 sm:$0xff]  }
  0xc1   :  { %3253 = vmatprep.subr.bf16.mxu0 %v4480_v38  ;;  %v4564_v37 = vld [vmem:[%s6435_s1 + $0x9e4] ss:$8 sps:$4 sm:$0xff]   ;;  %v580_v38 = vcombine.high %v5367_v33, %v5367_v33  ;;  %v4570_v33 = vld [vmem:[%s6435_s1 + $0x9f4] ss:$8 sps:$4 sm:$0xff]  }
  0xc2   :  { %2999 = vmatmul.mubr.bf16.vlgmr.msra.gmra.mrb[0].mxu1 %v5565_v40 }
  0xc3   :  { %3245 = vmatmul.mubr.bf16.vlgmr.msra.gmra.mrb[0].mxu0 %v5569_v43  ;;  %3008 = vmatpush1.bf16.msra.mxu1 %v4475_v39  ;;  %v4559_v39 = vld [vmem:[%s6435_s1 + $0x3e0] ss:$8 sps:$4 sm:$0xff]  }
  0xc4   :  { %3254 = vmatpush1.bf16.msra.mxu0 %v4478_v44  ;;  %3009 = vmatprep.subr.bf16.mxu1 %v4483_v45  ;;  %v4562_v44 = vld [vmem:[%s6435_s1 + $0x9e0] ss:$8 sps:$4 sm:$0xff]   ;;  %v4567_v45 = vld [vmem:[%s6435_s1 + $0x3f4] ss:$8 sps:$4 sm:$0xff]  }
  0xc5   :  { %3255 = vmatprep.subr.bf16.mxu0 %v4486_v22  ;;  %3039 = vmatprep.mubr.bf16.mxu1 %v530_v35  ;;  %v5759_v22 = vld.sshfl [vmem:[%s6434_s0 + $0x8] sm:$0xff pattern:$0x75316420]  ;;  %v5762_v35 = vrot.slane %v580_v38, %v5057_v49 }
  0xc6   :  { %3285 = vmatprep.mubr.bf16.mxu0 %v627_v46  ;;  %v4565_v46 = vld [vmem:[%s6435_s1 + $0x3f0] ss:$8 sps:$4 sm:$0xff]  }
  0xc7   :  { %3010 = vmatpush1.bf16.msra.mxu1 %v4481_v47  ;;  %v4568_v47 = vld [vmem:[%s6435_s1 + $0x9f0] ss:$8 sps:$4 sm:$0xff]  }
  0xc8   :  { %3256 = vmatpush1.bf16.msra.mxu0 %v4484_v48  ;;  %3011 = vmatprep.subr.bf16.mxu1 %v4489_v18  ;;  %v4573_v48 = vld [vmem:[%s6435_s1 + $0x404] ss:$8 sps:$4 sm:$0xff]  }
  0xc9   :  { %3257 = vmatprep.subr.bf16.mxu0 %v4492_v41  ;;  %v4576_v18 = vld [vmem:[%s6435_s1 + $0xa04] ss:$8 sps:$4 sm:$0xff]   ;;  %v546_v41 = vcombine.high %v5759_v22, %v5759_v22 }
  0xcb   :  { %3012 = vmatpush1.bf16.msra.mxu1 %v4487_v50  ;;  %v596_v50 = vcombine.high %v5762_v35, %v5762_v35 }
  0xcc   :  { %3258 = vmatpush1.bf16.msra.mxu0 %v4490_v51  ;;  %3013 = vmatprep.subr.bf16.mxu1 %v4495_v53  ;;  %v4571_v51 = vld [vmem:[%s6435_s1 + $0x400] ss:$8 sps:$4 sm:$0xff]   ;;  %v528_v53 = vcombine.high %v5565_v40, %v5565_v40  ;;  %v4577_v40 = vld [vmem:[%s6435_s1 + $0x410] ss:$8 sps:$4 sm:$0xff]  }
  0xcd   :  { %3259 = vmatprep.subr.bf16.mxu0 %v4498_v54  ;;  %v625_v54 = vcombine.high %v5569_v43, %v5569_v43  ;;  %v4580_v43 = vld [vmem:[%s6435_s1 + $0xa10] ss:$8 sps:$4 sm:$0xff]  }
  0xcf   :  { %3014 = vmatpush1.bf16.msra.mxu1 %v4493_v55  ;;  %v4574_v55 = vld [vmem:[%s6435_s1 + $0xa00] ss:$8 sps:$4 sm:$0xff]  }
  0xd0   :  { %3260 = vmatpush1.bf16.msra.mxu0 %v4496_v56  ;;  %3015 = vmatprep.subr.bf16.mxu1 %v4501_v57  ;;  %v4579_v56 = vld [vmem:[%s6435_s1 + $0x414] ss:$8 sps:$4 sm:$0xff]  }
  0xd1   :  { %3261 = vmatprep.subr.bf16.mxu0 %v4504_v58  ;;  %v4582_v57 = vld [vmem:[%s6435_s1 + $0xa14] ss:$8 sps:$4 sm:$0xff]   ;;  %v5803_v58 = vrot.slane %v546_v41, %v5057_v49 }
  0xd3   :  { %3016 = vmatpush1.bf16.msra.mxu1 %v4499_v59  ;;  %v5806_v59 = vrot.slane %v596_v50, %v5057_v49 }
  0xd4   :  { %3262 = vmatpush1.bf16.msra.mxu0 %v4502_v60  ;;  %3017 = vmatprep.subr.bf16.mxu1 %v4507_v61  ;;  %v4585_v60 = vld [vmem:[%s6435_s1 + $0x424] ss:$8 sps:$4 sm:$0xff]  }
  0xd5   :  { %3263 = vmatprep.subr.bf16.mxu0 %v4510_v62  ;;  %v4588_v61 = vld [vmem:[%s6435_s1 + $0xa24] ss:$8 sps:$4 sm:$0xff]   ;;  %v4583_v62 = vld [vmem:[%s6435_s1 + $0x420] ss:$8 sps:$4 sm:$0xff]  }
  0xd7   :  { %3018 = vmatpush1.bf16.msra.mxu1 %v4505_v63  ;;  %v4586_v63 = vld [vmem:[%s6435_s1 + $0xa20] ss:$8 sps:$4 sm:$0xff]  }
  0xd8   :  { %3264 = vmatpush1.bf16.msra.mxu0 %v4508_v0  ;;  %3019 = vmatprep.subr.bf16.mxu1 %v4513_v1  ;;  %v4591_v0 = vld [vmem:[%s6435_s1 + $0x434] ss:$8 sps:$4 sm:$0xff]  }
  0xd9   :  { %3265 = vmatprep.subr.bf16.mxu0 %v4516_v2  ;;  %v4594_v1 = vld [vmem:[%s6435_s1 + $0xa34] ss:$8 sps:$4 sm:$0xff]   ;;  %v4589_v2 = vld [vmem:[%s6435_s1 + $0x430] ss:$8 sps:$4 sm:$0xff]  }
  0xdb   :  { %3020 = vmatpush1.bf16.msra.mxu1 %v4511_v3  ;;  %v4592_v3 = vld [vmem:[%s6435_s1 + $0xa30] ss:$8 sps:$4 sm:$0xff]  }
  0xdc   :  { %3266 = vmatpush1.bf16.msra.mxu0 %v4514_v4  ;;  %3021 = vmatprep.subr.bf16.mxu1 %v4519_v5  ;;  %v4597_v4 = vld [vmem:[%s6435_s1 + $0x444] ss:$8 sps:$4 sm:$0xff]  }
  0xdd   :  { %3267 = vmatprep.subr.bf16.mxu0 %v4522_v6  ;;  %v4600_v5 = vld [vmem:[%s6435_s1 + $0xa44] ss:$8 sps:$4 sm:$0xff]   ;;  %v4595_v6 = vld [vmem:[%s6435_s1 + $0x440] ss:$8 sps:$4 sm:$0xff]  }
  0xdf   :  { %3022 = vmatpush1.bf16.msra.mxu1 %v4517_v7  ;;  %v4598_v7 = vld [vmem:[%s6435_s1 + $0xa40] ss:$8 sps:$4 sm:$0xff]  }
  0xe0   :  { %3268 = vmatpush1.bf16.msra.mxu0 %v4520_v8  ;;  %3023 = vmatprep.subr.bf16.mxu1 %v4525_v9  ;;  %v4603_v8 = vld [vmem:[%s6435_s1 + $0x454] ss:$8 sps:$4 sm:$0xff]  }
  0xe1   :  { %3269 = vmatprep.subr.bf16.mxu0 %v4528_v10  ;;  %v4606_v9 = vld [vmem:[%s6435_s1 + $0xa54] ss:$8 sps:$4 sm:$0xff]   ;;  %v4601_v10 = vld [vmem:[%s6435_s1 + $0x450] ss:$8 sps:$4 sm:$0xff]  }
  0xe3   :  { %3024 = vmatpush1.bf16.msra.mxu1 %v4523_v11  ;;  %v4604_v11 = vld [vmem:[%s6435_s1 + $0xa50] ss:$8 sps:$4 sm:$0xff]  }
  0xe4   :  { %3270 = vmatpush1.bf16.msra.mxu0 %v4526_v12  ;;  %3025 = vmatprep.subr.bf16.mxu1 %v4531_v13  ;;  %v4609_v12 = vld [vmem:[%s6435_s1 + $0x464] ss:$8 sps:$4 sm:$0xff]  }
  0xe5   :  { %3271 = vmatprep.subr.bf16.mxu0 %v4534_v14  ;;  %v4612_v13 = vld [vmem:[%s6435_s1 + $0xa64] ss:$8 sps:$4 sm:$0xff]   ;;  %v4607_v14 = vld [vmem:[%s6435_s1 + $0x460] ss:$8 sps:$4 sm:$0xff]  }
  0xe7   :  { %3026 = vmatpush1.bf16.msra.mxu1 %v4529_v15  ;;  %v4610_v15 = vld [vmem:[%s6435_s1 + $0xa60] ss:$8 sps:$4 sm:$0xff]  }
  0xe8   :  { %3272 = vmatpush1.bf16.msra.mxu0 %v4532_v16  ;;  %3027 = vmatprep.subr.bf16.mxu1 %v4537_v19  ;;  %v4615_v16 = vld [vmem:[%s6435_s1 + $0x474] ss:$8 sps:$4 sm:$0xff]  }
  0xe9   :  { %3273 = vmatprep.subr.bf16.mxu0 %v4540_v20  ;;  %v4618_v19 = vld [vmem:[%s6435_s1 + $0xa74] ss:$8 sps:$4 sm:$0xff]   ;;  %v4613_v20 = vld [vmem:[%s6435_s1 + $0x470] ss:$8 sps:$4 sm:$0xff]  }
  0xeb   :  { %3028 = vmatpush1.bf16.msra.mxu1 %v4535_v21  ;;  %v4616_v21 = vld [vmem:[%s6435_s1 + $0xa70] ss:$8 sps:$4 sm:$0xff]  }
  0xec   :  { %3274 = vmatpush1.bf16.msra.mxu0 %v4538_v52  ;;  %3029 = vmatprep.subr.bf16.mxu1 %v4543_v23  ;;  %v4621_v52 = vld [vmem:[%s6435_s1 + $0x484] ss:$8 sps:$4 sm:$0xff]  }
  0xed   :  { %3275 = vmatprep.subr.bf16.mxu0 %v4546_v24  ;;  %v4624_v23 = vld [vmem:[%s6435_s1 + $0xa84] ss:$8 sps:$4 sm:$0xff]   ;;  %v4619_v24 = vld [vmem:[%s6435_s1 + $0x480] ss:$8 sps:$4 sm:$0xff]  }
  0xef   :  { %3030 = vmatpush1.bf16.msra.mxu1 %v4541_v25  ;;  %v4622_v25 = vld [vmem:[%s6435_s1 + $0xa80] ss:$8 sps:$4 sm:$0xff]  }
  0xf0   :  { %3276 = vmatpush1.bf16.msra.mxu0 %v4544_v26  ;;  %3031 = vmatprep.subr.bf16.mxu1 %v4549_v27  ;;  %v4627_v26 = vld [vmem:[%s6435_s1 + $0x494] ss:$8 sps:$4 sm:$0xff]  }
  0xf1   :  { %3277 = vmatprep.subr.bf16.mxu0 %v4552_v28  ;;  %v4630_v27 = vld [vmem:[%s6435_s1 + $0xa94] ss:$8 sps:$4 sm:$0xff]   ;;  %v4625_v28 = vld [vmem:[%s6435_s1 + $0x490] ss:$8 sps:$4 sm:$0xff]  }
  0xf3   :  { %3032 = vmatpush1.bf16.msra.mxu1 %v4547_v29  ;;  %v4628_v29 = vld [vmem:[%s6435_s1 + $0xa90] ss:$8 sps:$4 sm:$0xff]  }
  0xf4   :  { %3278 = vmatpush1.bf16.msra.mxu0 %v4550_v30  ;;  %3033 = vmatprep.subr.bf16.mxu1 %v4555_v31  ;;  %v4633_v30 = vld [vmem:[%s6435_s1 + $0x4a4] ss:$8 sps:$4 sm:$0xff]  }
  0xf5   :  { %3279 = vmatprep.subr.bf16.mxu0 %v4558_v32  ;;  %v4636_v31 = vld [vmem:[%s6435_s1 + $0xaa4] ss:$8 sps:$4 sm:$0xff]   ;;  %v4631_v32 = vld [vmem:[%s6435_s1 + $0x4a0] ss:$8 sps:$4 sm:$0xff]  }
  0xf7   :  { %3034 = vmatpush1.bf16.msra.mxu1 %v4553_v17  ;;  %v4634_v17 = vld [vmem:[%s6435_s1 + $0xaa0] ss:$8 sps:$4 sm:$0xff]  }
  0xf8   :  { %3280 = vmatpush1.bf16.msra.mxu0 %v4556_v34  ;;  %3035 = vmatprep.subr.bf16.mxu1 %v4561_v36  ;;  %v4639_v34 = vld [vmem:[%s6435_s1 + $0x4b4] ss:$8 sps:$4 sm:$0xff]  }
  0xf9   :  { %3281 = vmatprep.subr.bf16.mxu0 %v4564_v37  ;;  %v4642_v36 = vld [vmem:[%s6435_s1 + $0xab4] ss:$8 sps:$4 sm:$0xff]  }
  0xfb   :  { %3036 = vmatpush1.bf16.msra.mxu1 %v4559_v39 }
  0xfc   :  { %3282 = vmatpush1.bf16.msra.mxu0 %v4562_v44  ;;  %3037 = vmatprep.subr.bf16.mxu1 %v4567_v45 }
  0xfd   :  { %3283 = vmatprep.subr.bf16.mxu0 %v4570_v33 }
  0xff   :  { %3038 = vmatpush1.bf16.msra.mxu1 %v4565_v46 }
 0x100   :  { %3284 = vmatpush1.bf16.msra.mxu0 %v4568_v47  ;;  %3048 = vmatprep.subr.bf16.mxu1 %v4573_v48 }
 0x101   :  { %3294 = vmatprep.subr.bf16.mxu0 %v4576_v18 }
 0x102   :  { %3040 = vmatmul.mubr.bf16.vlgmr.msra.gmra.mrb[0].mxu1 %v528_v53 }
 0x103   :  { %3286 = vmatmul.mubr.bf16.vlgmr.msra.gmra.mrb[0].mxu0 %v625_v54  ;;  %3049 = vmatpush1.bf16.msra.mxu1 %v4571_v51 }
 0x104   :  { %3295 = vmatpush1.bf16.msra.mxu0 %v4574_v55  ;;  %3050 = vmatprep.subr.bf16.mxu1 %v4579_v56 }
 0x105   :  { %3296 = vmatprep.subr.bf16.mxu0 %v4582_v57  ;;  %3080 = vmatprep.mubr.bf16.mxu1 %v5803_v58 }
 0x106   :  { %3326 = vmatprep.mubr.bf16.mxu0 %v5806_v59 }
 0x107   :  { %3051 = vmatpush1.bf16.msra.mxu1 %v4577_v40 }
 0x108   :  { %3297 = vmatpush1.bf16.msra.mxu0 %v4580_v43  ;;  %3052 = vmatprep.subr.bf16.mxu1 %v4585_v60 }
 0x109   :  { %3298 = vmatprep.subr.bf16.mxu0 %v4588_v61 }
 0x10b   :  { %3053 = vmatpush1.bf16.msra.mxu1 %v4583_v62 }
 0x10c   :  { %3299 = vmatpush1.bf16.msra.mxu0 %v4586_v63  ;;  %3054 = vmatprep.subr.bf16.mxu1 %v4591_v0 }
 0x10d   :  { %3300 = vmatprep.subr.bf16.mxu0 %v4594_v1 }
 0x10f   :  { %3055 = vmatpush1.bf16.msra.mxu1 %v4589_v2 }
 0x110   :  { %3301 = vmatpush1.bf16.msra.mxu0 %v4592_v3  ;;  %3056 = vmatprep.subr.bf16.mxu1 %v4597_v4 }
 0x111   :  { %3302 = vmatprep.subr.bf16.mxu0 %v4600_v5 }
 0x113   :  { %3057 = vmatpush1.bf16.msra.mxu1 %v4595_v6 }
 0x114   :  { %3303 = vmatpush1.bf16.msra.mxu0 %v4598_v7  ;;  %3058 = vmatprep.subr.bf16.mxu1 %v4603_v8 }
 0x115   :  { %3304 = vmatprep.subr.bf16.mxu0 %v4606_v9 }
 0x117   :  { %3059 = vmatpush1.bf16.msra.mxu1 %v4601_v10 }
 0x118   :  { %3305 = vmatpush1.bf16.msra.mxu0 %v4604_v11  ;;  %3060 = vmatprep.subr.bf16.mxu1 %v4609_v12 }
 0x119   :  { %3306 = vmatprep.subr.bf16.mxu0 %v4612_v13 }
 0x11b   :  { %3061 = vmatpush1.bf16.msra.mxu1 %v4607_v14 }
 0x11c   :  { %3307 = vmatpush1.bf16.msra.mxu0 %v4610_v15  ;;  %3062 = vmatprep.subr.bf16.mxu1 %v4615_v16 }
 0x11d   :  { %3308 = vmatprep.subr.bf16.mxu0 %v4618_v19 }
 0x11f   :  { %3063 = vmatpush1.bf16.msra.mxu1 %v4613_v20 }
 0x120   :  { %3309 = vmatpush1.bf16.msra.mxu0 %v4616_v21  ;;  %3064 = vmatprep.subr.bf16.mxu1 %v4621_v52 }
 0x121   :  { %3310 = vmatprep.subr.bf16.mxu0 %v4624_v23 }
 0x123   :  { %3065 = vmatpush1.bf16.msra.mxu1 %v4619_v24 }
 0x124   :  { %3311 = vmatpush1.bf16.msra.mxu0 %v4622_v25  ;;  %3066 = vmatprep.subr.bf16.mxu1 %v4627_v26 }
 0x125   :  { %3312 = vmatprep.subr.bf16.mxu0 %v4630_v27 }
 0x127   :  { %3067 = vmatpush1.bf16.msra.mxu1 %v4625_v28 }
 0x128   :  { %3313 = vmatpush1.bf16.msra.mxu0 %v4628_v29  ;;  %3068 = vmatprep.subr.bf16.mxu1 %v4633_v30 }
 0x129   :  { %3314 = vmatprep.subr.bf16.mxu0 %v4636_v31 }
 0x12a   :  { %10 = vsyncpa [#allocation3], 0  ;;  %v4637_v37 = vld [vmem:[%s6435_s1 + $0x4b0] ss:$8 sps:$4 sm:$0xff]   ;;  %v4645_v39 = vld [vmem:[%s6435_s1 + $0x4c4] ss:$8 sps:$4 sm:$0xff]   ;;  %v5986_v60 = vrot.slane %v5759_v22, %v5057_v49  ;;  %v5990_v61 = vrot.slane %v5762_v35, %v5057_v49  ;;  %v578_v0 = vcombine.high %v5803_v58, %v5803_v58  ;;  %v628_v1 = vcombine.high %v5806_v59, %v5806_v59 }
 0x12b   :  { %3069 = vmatpush1.bf16.msra.mxu1 %v4631_v32  ;;  %v4640_v38 = vld [vmem:[%s6435_s1 + $0xab0] ss:$8 sps:$4 sm:$0xff]   ;;  %v4648_v44 = vld [vmem:[%s6435_s1 + $0xac4] ss:$8 sps:$4 sm:$0xff]   ;;  %v4643_v45 = vld [vmem:[%s6435_s1 + $0x4c0] ss:$8 sps:$4 sm:$0xff]  }
 0x12c   :  { %3315 = vmatpush1.bf16.msra.mxu0 %v4634_v17  ;;  %3070 = vmatprep.subr.bf16.mxu1 %v4639_v34  ;;  %v4646_v33 = vld [vmem:[%s6435_s1 + $0xac0] ss:$8 sps:$4 sm:$0xff]   ;;  %v4651_v46 = vld [vmem:[%s6435_s1 + $0x4d4] ss:$8 sps:$4 sm:$0xff]   ;;  %v4649_v48 = vld [vmem:[%s6435_s1 + $0x4d0] ss:$8 sps:$4 sm:$0xff]  }
 0x12d   :  { %3316 = vmatprep.subr.bf16.mxu0 %v4642_v36  ;;  %v4654_v47 = vld [vmem:[%s6435_s1 + $0xad4] ss:$8 sps:$4 sm:$0xff]   ;;  %v4652_v18 = vld [vmem:[%s6435_s1 + $0xad0] ss:$8 sps:$4 sm:$0xff]   ;;  %v4657_v41 = vld [vmem:[%s6435_s1 + $0x4e4] ss:$8 sps:$4 sm:$0xff]  }
 0x12e   :  { %v4660_v50 = vld [vmem:[%s6435_s1 + $0xae4] ss:$8 sps:$4 sm:$0xff]   ;;  %v4655_v51 = vld [vmem:[%s6435_s1 + $0x4e0] ss:$8 sps:$4 sm:$0xff]   ;;  %v4663_v54 = vld [vmem:[%s6435_s1 + $0x4f4] ss:$8 sps:$4 sm:$0xff]  }
 0x12f   :  { %3071 = vmatpush1.bf16.msra.mxu1 %v4637_v37  ;;  %v4658_v53 = vld [vmem:[%s6435_s1 + $0xae0] ss:$8 sps:$4 sm:$0xff]   ;;  %v4666_v55 = vld [vmem:[%s6435_s1 + $0xaf4] ss:$8 sps:$4 sm:$0xff]   ;;  %v4661_v56 = vld [vmem:[%s6435_s1 + $0x4f0] ss:$8 sps:$4 sm:$0xff]  }
 0x130   :  { %3317 = vmatpush1.bf16.msra.mxu0 %v4640_v38  ;;  %3072 = vmatprep.subr.bf16.mxu1 %v4645_v39  ;;  %v4664_v57 = vld [vmem:[%s6435_s1 + $0xaf0] ss:$8 sps:$4 sm:$0xff]   ;;  %v4669_v40 = vld [vmem:[%s6435_s1 + $0x504] ss:$8 sps:$4 sm:$0xff]   ;;  %v4667_v62 = vld [vmem:[%s6435_s1 + $0x500] ss:$8 sps:$4 sm:$0xff]  }
 0x131   :  { %3318 = vmatprep.subr.bf16.mxu0 %v4648_v44  ;;  %v4673_v43 = vld [vmem:[%s6435_s1 + $0xb04] ss:$8 sps:$4 sm:$0xff]   ;;  %v4671_v63 = vld [vmem:[%s6435_s1 + $0xb00] ss:$8 sps:$4 sm:$0xff]   ;;  %v4676_v22 = vld [vmem:[%s6435_s1 + $0x514] ss:$8 sps:$4 sm:$0xff]  }
 0x132   :  { %v4679_v35 = vld [vmem:[%s6435_s1 + $0xb14] ss:$8 sps:$4 sm:$0xff]   ;;  %v4674_v2 = vld [vmem:[%s6435_s1 + $0x510] ss:$8 sps:$4 sm:$0xff]   ;;  %v4682_v58 = vld [vmem:[%s6435_s1 + $0x524] ss:$8 sps:$4 sm:$0xff]  }
 0x133   :  { %3073 = vmatpush1.bf16.msra.mxu1 %v4643_v45  ;;  %v4677_v3 = vld [vmem:[%s6435_s1 + $0xb10] ss:$8 sps:$4 sm:$0xff]   ;;  %v4685_v59 = vld [vmem:[%s6435_s1 + $0xb24] ss:$8 sps:$4 sm:$0xff]   ;;  %v4680_v4 = vld [vmem:[%s6435_s1 + $0x520] ss:$8 sps:$4 sm:$0xff]  }
 0x134   :  { %3319 = vmatpush1.bf16.msra.mxu0 %v4646_v33  ;;  %3074 = vmatprep.subr.bf16.mxu1 %v4651_v46  ;;  %v4683_v5 = vld [vmem:[%s6435_s1 + $0xb20] ss:$8 sps:$4 sm:$0xff]   ;;  %v4688_v6 = vld [vmem:[%s6435_s1 + $0x534] ss:$8 sps:$4 sm:$0xff]   ;;  %v4686_v8 = vld [vmem:[%s6435_s1 + $0x530] ss:$8 sps:$4 sm:$0xff]  }
 0x135   :  { %3320 = vmatprep.subr.bf16.mxu0 %v4654_v47  ;;  %v4691_v7 = vld [vmem:[%s6435_s1 + $0xb34] ss:$8 sps:$4 sm:$0xff]   ;;  %v4689_v9 = vld [vmem:[%s6435_s1 + $0xb30] ss:$8 sps:$4 sm:$0xff]   ;;  %v4694_v10 = vld [vmem:[%s6435_s1 + $0x544] ss:$8 sps:$4 sm:$0xff]  }
 0x136   :  { %v4697_v11 = vld [vmem:[%s6435_s1 + $0xb44] ss:$8 sps:$4 sm:$0xff]   ;;  %v4692_v12 = vld [vmem:[%s6435_s1 + $0x540] ss:$8 sps:$4 sm:$0xff]   ;;  %v4700_v14 = vld [vmem:[%s6435_s1 + $0x554] ss:$8 sps:$4 sm:$0xff]  }
 0x137   :  { %3075 = vmatpush1.bf16.msra.mxu1 %v4649_v48  ;;  %v4695_v13 = vld [vmem:[%s6435_s1 + $0xb40] ss:$8 sps:$4 sm:$0xff]   ;;  %v4703_v15 = vld [vmem:[%s6435_s1 + $0xb54] ss:$8 sps:$4 sm:$0xff]   ;;  %v4698_v16 = vld [vmem:[%s6435_s1 + $0x550] ss:$8 sps:$4 sm:$0xff]  }
 0x138   :  { %3321 = vmatpush1.bf16.msra.mxu0 %v4652_v18  ;;  %3076 = vmatprep.subr.bf16.mxu1 %v4657_v41  ;;  %v4701_v19 = vld [vmem:[%s6435_s1 + $0xb50] ss:$8 sps:$4 sm:$0xff]   ;;  %v4706_v20 = vld [vmem:[%s6435_s1 + $0x564] ss:$8 sps:$4 sm:$0xff]   ;;  %v4704_v52 = vld [vmem:[%s6435_s1 + $0x560] ss:$8 sps:$4 sm:$0xff]  }
 0x139   :  { %3322 = vmatprep.subr.bf16.mxu0 %v4660_v50  ;;  %v4709_v21 = vld [vmem:[%s6435_s1 + $0xb64] ss:$8 sps:$4 sm:$0xff]   ;;  %v4707_v23 = vld [vmem:[%s6435_s1 + $0xb60] ss:$8 sps:$4 sm:$0xff]   ;;  %v4712_v24 = vld [vmem:[%s6435_s1 + $0x574] ss:$8 sps:$4 sm:$0xff]  }
 0x13a   :  { %v4715_v25 = vld [vmem:[%s6435_s1 + $0xb74] ss:$8 sps:$4 sm:$0xff]   ;;  %v4710_v26 = vld [vmem:[%s6435_s1 + $0x570] ss:$8 sps:$4 sm:$0xff]   ;;  %v4718_v28 = vld [vmem:[%s6435_s1 + $0x584] ss:$8 sps:$4 sm:$0xff]  }
 0x13b   :  { %3077 = vmatpush1.bf16.msra.mxu1 %v4655_v51  ;;  %v4713_v27 = vld [vmem:[%s6435_s1 + $0xb70] ss:$8 sps:$4 sm:$0xff]   ;;  %v4721_v29 = vld [vmem:[%s6435_s1 + $0xb84] ss:$8 sps:$4 sm:$0xff]   ;;  %v4716_v30 = vld [vmem:[%s6435_s1 + $0x580] ss:$8 sps:$4 sm:$0xff]  }
 0x13c   :  { %3323 = vmatpush1.bf16.msra.mxu0 %v4658_v53  ;;  %3078 = vmatprep.subr.bf16.mxu1 %v4663_v54  ;;  %v4719_v31 = vld [vmem:[%s6435_s1 + $0xb80] ss:$8 sps:$4 sm:$0xff]   ;;  %v4724_v32 = vld [vmem:[%s6435_s1 + $0x594] ss:$8 sps:$4 sm:$0xff]   ;;  %v4722_v34 = vld [vmem:[%s6435_s1 + $0x590] ss:$8 sps:$4 sm:$0xff]  }
 0x13d   :  { %3324 = vmatprep.subr.bf16.mxu0 %v4666_v55  ;;  %v4727_v17 = vld [vmem:[%s6435_s1 + $0xb94] ss:$8 sps:$4 sm:$0xff]   ;;  %v4725_v36 = vld [vmem:[%s6435_s1 + $0xb90] ss:$8 sps:$4 sm:$0xff]   ;;  %v4730_v37 = vld [vmem:[%s6435_s1 + $0x5a4] ss:$8 sps:$4 sm:$0xff]  }
 0x13e   :  { %v4733_v38 = vld [vmem:[%s6435_s1 + $0xba4] ss:$8 sps:$4 sm:$0xff]   ;;  %v4728_v39 = vld [vmem:[%s6435_s1 + $0x5a0] ss:$8 sps:$4 sm:$0xff]   ;;  %v4736_v45 = vld [vmem:[%s6435_s1 + $0x5b4] ss:$8 sps:$4 sm:$0xff]  }
 0x13f   :  { %3079 = vmatpush1.bf16.msra.mxu1 %v4661_v56  ;;  %v4731_v44 = vld [vmem:[%s6435_s1 + $0xba0] ss:$8 sps:$4 sm:$0xff]   ;;  %v4739_v33 = vld [vmem:[%s6435_s1 + $0xbb4] ss:$8 sps:$4 sm:$0xff]   ;;  %v4734_v46 = vld [vmem:[%s6435_s1 + $0x5b0] ss:$8 sps:$4 sm:$0xff]  }
 0x140   :  { %3325 = vmatpush1.bf16.msra.mxu0 %v4664_v57  ;;  %3089 = vmatprep.subr.bf16.mxu1 %v4669_v40  ;;  %v4737_v47 = vld [vmem:[%s6435_s1 + $0xbb0] ss:$8 sps:$4 sm:$0xff]   ;;  %v4742_v48 = vld [vmem:[%s6435_s1 + $0x5c4] ss:$8 sps:$4 sm:$0xff]   ;;  %v4740_v41 = vld [vmem:[%s6435_s1 + $0x5c0] ss:$8 sps:$4 sm:$0xff]  }
 0x141   :  { %3335 = vmatprep.subr.bf16.mxu0 %v4673_v43  ;;  %v4745_v18 = vld [vmem:[%s6435_s1 + $0xbc4] ss:$8 sps:$4 sm:$0xff]   ;;  %v4743_v50 = vld [vmem:[%s6435_s1 + $0xbc0] ss:$8 sps:$4 sm:$0xff]   ;;  %v4748_v51 = vld [vmem:[%s6435_s1 + $0x5d4] ss:$8 sps:$4 sm:$0xff]  }
 0x142   :  { %3081 = vmatmul.mubr.bf16.vlgmr.msra.gmra.mrb[0].mxu1 %v5986_v60  ;;  %v4751_v53 = vld [vmem:[%s6435_s1 + $0xbd4] ss:$8 sps:$4 sm:$0xff]   ;;  %v4746_v54 = vld [vmem:[%s6435_s1 + $0x5d0] ss:$8 sps:$4 sm:$0xff]   ;;  %v4754_v56 = vld [vmem:[%s6435_s1 + $0x5e4] ss:$8 sps:$4 sm:$0xff]  }
 0x143   :  { %3327 = vmatmul.mubr.bf16.vlgmr.msra.gmra.mrb[0].mxu0 %v5990_v61  ;;  %3090 = vmatpush1.bf16.msra.mxu1 %v4667_v62  ;;  %v4749_v55 = vld [vmem:[%s6435_s1 + $0xbd0] ss:$8 sps:$4 sm:$0xff]   ;;  %v4757_v57 = vld [vmem:[%s6435_s1 + $0xbe4] ss:$8 sps:$4 sm:$0xff]   ;;  %v4752_v43 = vld [vmem:[%s6435_s1 + $0x5e0] ss:$8 sps:$4 sm:$0xff]  }
 0x144   :  { %3336 = vmatpush1.bf16.msra.mxu0 %v4671_v63  ;;  %3091 = vmatprep.subr.bf16.mxu1 %v4676_v22  ;;  %v6169_v40 = vld.sshfl [vmem:[%s6434_s0 + $0x18] sm:$0x33 pattern:$0x75316420]  ;;  %v4755_v62 = vld [vmem:[%s6435_s1 + $0xbe0] ss:$8 sps:$4 sm:$0xff]  }
 0x145   :  { %3337 = vmatprep.subr.bf16.mxu0 %v4679_v35  ;;  %3121 = vmatprep.mubr.bf16.mxu1 %v578_v0  ;;  %v4760_v63 = vld [vmem:[%s6435_s1 + $0x5f4] ss:$8 sps:$4 sm:$0xff]   ;;  %v636_v35 = vcombine.high %v6169_v40, %v6169_v40  ;;  %v4758_v0 = vld [vmem:[%s6435_s1 + $0x5f0] ss:$8 sps:$4 sm:$0xff]   ;;  %vm2880_vm0 = vcmask 523264   ;;  %s4891_s10 = smov [#allocation2]  }
 0x146   :  { %3367 = vmatprep.mubr.bf16.mxu0 %v628_v1  ;;  %v4763_v22 = vld [vmem:[%s6435_s1 + $0xbf4] ss:$8 sps:$4 sm:$0xff]   ;;  %v4761_v1 = vld [vmem:[%s6435_s1 + $0xbf0] ss:$8 sps:$4 sm:$0xff]  }
 0x147   :  { %3092 = vmatpush1.bf16.msra.mxu1 %v4674_v2  ;;  %v4766_v2 = vld [vmem:[%s6435_s1 + $0xc04] ss:$8 sps:$4 sm:$0xff]  }
 0x148   :  { %3338 = vmatpush1.bf16.msra.mxu0 %v4677_v3  ;;  %3093 = vmatprep.subr.bf16.mxu1 %v4682_v58  ;;  %v4778_v3 = vld [vmem:[%s6435_s1 + $0xd04] ss:$8 sps:$4 sm:$0xff]   ;;  %v650_v58 = vrot.slane %v636_v35, %v5057_v49  ;;  %v4847_v35 = vld [vmem:[%s6435_s1 + $0xcf4] ss:$8 sps:$4 sm:$0xff]  }
 0x149   :  { %3339 = vmatprep.subr.bf16.mxu0 %v4685_v59  ;;  %v576_v59 = vcombine.high %v5986_v60, %v5986_v60  ;;  %v4784_v60 = vld [vmem:[%s6435_s1 + $0xd14] ss:$8 sps:$4 sm:$0xff]  }
 0x14b   :  { %3094 = vmatpush1.bf16.msra.mxu1 %v4680_v4  ;;  %v626_v4 = vcombine.high %v5990_v61, %v5990_v61  ;;  %v652_v61 = vcombine.high %v650_v58, %v650_v58 }
 0x14c   :  { %3340 = vmatpush1.bf16.msra.mxu0 %v4683_v5  ;;  %3095 = vmatprep.subr.bf16.mxu1 %v4688_v6  ;;  %v4764_v5 = vld [vmem:[%s6435_s1 + $0xc00] ss:$8 sps:$4 sm:$0xff]  }
 0x14d   :  { %3341 = vmatprep.subr.bf16.mxu0 %v4691_v7  ;;  %v4776_v6 = vld [vmem:[%s6435_s1 + $0xd00] ss:$8 sps:$4 sm:$0xff]   ;;  %v4769_v7 = vld [vmem:[%s6435_s1 + $0xc14] ss:$8 sps:$4 sm:$0xff]  }
 0x14f   :  { %3096 = vmatpush1.bf16.msra.mxu1 %v4686_v8  ;;  %v4767_v8 = vld [vmem:[%s6435_s1 + $0xc10] ss:$8 sps:$4 sm:$0xff]  }
 0x150   :  { %3342 = vmatpush1.bf16.msra.mxu0 %v4689_v9  ;;  %3097 = vmatprep.subr.bf16.mxu1 %v4694_v10  ;;  %v4782_v9 = vld [vmem:[%s6435_s1 + $0xd10] ss:$8 sps:$4 sm:$0xff]   ;;  %v4772_v10 = vld [vmem:[%s6435_s1 + $0xc24] ss:$8 sps:$4 sm:$0xff]  }
 0x151   :  { %3343 = vmatprep.subr.bf16.mxu0 %v4697_v11  ;;  %v4790_v11 = vld [vmem:[%s6435_s1 + $0xd24] ss:$8 sps:$4 sm:$0xff]  }
 0x153   :  { %3098 = vmatpush1.bf16.msra.mxu1 %v4692_v12  ;;  %v4770_v12 = vld [vmem:[%s6435_s1 + $0xc20] ss:$8 sps:$4 sm:$0xff]  }
 0x154   :  { %3344 = vmatpush1.bf16.msra.mxu0 %v4695_v13  ;;  %3099 = vmatprep.subr.bf16.mxu1 %v4700_v14  ;;  %v4788_v13 = vld [vmem:[%s6435_s1 + $0xd20] ss:$8 sps:$4 sm:$0xff]   ;;  %v4775_v14 = vld [vmem:[%s6435_s1 + $0xc34] ss:$8 sps:$4 sm:$0xff]  }
 0x155   :  { %3345 = vmatprep.subr.bf16.mxu0 %v4703_v15  ;;  %v4796_v15 = vld [vmem:[%s6435_s1 + $0xd34] ss:$8 sps:$4 sm:$0xff]  }
 0x157   :  { %3100 = vmatpush1.bf16.msra.mxu1 %v4698_v16  ;;  %v4773_v16 = vld [vmem:[%s6435_s1 + $0xc30] ss:$8 sps:$4 sm:$0xff]  }
 0x158   :  { %3346 = vmatpush1.bf16.msra.mxu0 %v4701_v19  ;;  %3101 = vmatprep.subr.bf16.mxu1 %v4706_v20  ;;  %v4794_v19 = vld [vmem:[%s6435_s1 + $0xd30] ss:$8 sps:$4 sm:$0xff]   ;;  %v4781_v20 = vld [vmem:[%s6435_s1 + $0xc44] ss:$8 sps:$4 sm:$0xff]  }
 0x159   :  { %3347 = vmatprep.subr.bf16.mxu0 %v4709_v21  ;;  %v4802_v21 = vld [vmem:[%s6435_s1 + $0xd44] ss:$8 sps:$4 sm:$0xff]  }
 0x15b   :  { %3102 = vmatpush1.bf16.msra.mxu1 %v4704_v52  ;;  %v4779_v52 = vld [vmem:[%s6435_s1 + $0xc40] ss:$8 sps:$4 sm:$0xff]  }
 0x15c   :  { %3348 = vmatpush1.bf16.msra.mxu0 %v4707_v23  ;;  %3103 = vmatprep.subr.bf16.mxu1 %v4712_v24  ;;  %v4800_v23 = vld [vmem:[%s6435_s1 + $0xd40] ss:$8 sps:$4 sm:$0xff]   ;;  %v4787_v24 = vld [vmem:[%s6435_s1 + $0xc54] ss:$8 sps:$4 sm:$0xff]  }
 0x15d   :  { %3349 = vmatprep.subr.bf16.mxu0 %v4715_v25  ;;  %v4808_v25 = vld [vmem:[%s6435_s1 + $0xd54] ss:$8 sps:$4 sm:$0xff]  }
 0x15f   :  { %3104 = vmatpush1.bf16.msra.mxu1 %v4710_v26  ;;  %v4785_v26 = vld [vmem:[%s6435_s1 + $0xc50] ss:$8 sps:$4 sm:$0xff]  }
 0x160   :  { %3350 = vmatpush1.bf16.msra.mxu0 %v4713_v27  ;;  %3105 = vmatprep.subr.bf16.mxu1 %v4718_v28  ;;  %v4806_v27 = vld [vmem:[%s6435_s1 + $0xd50] ss:$8 sps:$4 sm:$0xff]   ;;  %v4793_v28 = vld [vmem:[%s6435_s1 + $0xc64] ss:$8 sps:$4 sm:$0xff]  }
 0x161   :  { %3351 = vmatprep.subr.bf16.mxu0 %v4721_v29  ;;  %v4814_v29 = vld [vmem:[%s6435_s1 + $0xd64] ss:$8 sps:$4 sm:$0xff]  }
 0x163   :  { %3106 = vmatpush1.bf16.msra.mxu1 %v4716_v30  ;;  %v4791_v30 = vld [vmem:[%s6435_s1 + $0xc60] ss:$8 sps:$4 sm:$0xff]  }
 0x164   :  { %3352 = vmatpush1.bf16.msra.mxu0 %v4719_v31  ;;  %3107 = vmatprep.subr.bf16.mxu1 %v4724_v32  ;;  %v4812_v31 = vld [vmem:[%s6435_s1 + $0xd60] ss:$8 sps:$4 sm:$0xff]   ;;  %v4799_v32 = vld [vmem:[%s6435_s1 + $0xc74] ss:$8 sps:$4 sm:$0xff]  }
 0x165   :  { %3353 = vmatprep.subr.bf16.mxu0 %v4727_v17  ;;  %v4820_v17 = vld [vmem:[%s6435_s1 + $0xd74] ss:$8 sps:$4 sm:$0xff]  }
 0x167   :  { %3108 = vmatpush1.bf16.msra.mxu1 %v4722_v34  ;;  %v4797_v34 = vld [vmem:[%s6435_s1 + $0xc70] ss:$8 sps:$4 sm:$0xff]  }
 0x168   :  { %3354 = vmatpush1.bf16.msra.mxu0 %v4725_v36  ;;  %3109 = vmatprep.subr.bf16.mxu1 %v4730_v37  ;;  %v4818_v36 = vld [vmem:[%s6435_s1 + $0xd70] ss:$8 sps:$4 sm:$0xff]   ;;  %v4805_v37 = vld [vmem:[%s6435_s1 + $0xc84] ss:$8 sps:$4 sm:$0xff]  }
 0x169   :  { %3355 = vmatprep.subr.bf16.mxu0 %v4733_v38  ;;  %v4826_v38 = vld [vmem:[%s6435_s1 + $0xd84] ss:$8 sps:$4 sm:$0xff]  }
 0x16b   :  { %3110 = vmatpush1.bf16.msra.mxu1 %v4728_v39  ;;  %v4803_v39 = vld [vmem:[%s6435_s1 + $0xc80] ss:$8 sps:$4 sm:$0xff]  }
 0x16c   :  { %3356 = vmatpush1.bf16.msra.mxu0 %v4731_v44  ;;  %3111 = vmatprep.subr.bf16.mxu1 %v4736_v45  ;;  %v4824_v44 = vld [vmem:[%s6435_s1 + $0xd80] ss:$8 sps:$4 sm:$0xff]   ;;  %v4811_v45 = vld [vmem:[%s6435_s1 + $0xc94] ss:$8 sps:$4 sm:$0xff]  }
 0x16d   :  { %3357 = vmatprep.subr.bf16.mxu0 %v4739_v33  ;;  %v4832_v33 = vld [vmem:[%s6435_s1 + $0xd94] ss:$8 sps:$4 sm:$0xff]  }
 0x16f   :  { %3112 = vmatpush1.bf16.msra.mxu1 %v4734_v46  ;;  %v4809_v46 = vld [vmem:[%s6435_s1 + $0xc90] ss:$8 sps:$4 sm:$0xff]  }
 0x170   :  { %3358 = vmatpush1.bf16.msra.mxu0 %v4737_v47  ;;  %3113 = vmatprep.subr.bf16.mxu1 %v4742_v48  ;;  %v4830_v47 = vld [vmem:[%s6435_s1 + $0xd90] ss:$8 sps:$4 sm:$0xff]   ;;  %v4817_v48 = vld [vmem:[%s6435_s1 + $0xca4] ss:$8 sps:$4 sm:$0xff]  }
 0x171   :  { %3359 = vmatprep.subr.bf16.mxu0 %v4745_v18  ;;  %v4838_v18 = vld [vmem:[%s6435_s1 + $0xda4] ss:$8 sps:$4 sm:$0xff]  }
 0x173   :  { %3114 = vmatpush1.bf16.msra.mxu1 %v4740_v41  ;;  %v4815_v41 = vld [vmem:[%s6435_s1 + $0xca0] ss:$8 sps:$4 sm:$0xff]  }
 0x174   :  { %3360 = vmatpush1.bf16.msra.mxu0 %v4743_v50  ;;  %3115 = vmatprep.subr.bf16.mxu1 %v4748_v51  ;;  %v4836_v50 = vld [vmem:[%s6435_s1 + $0xda0] ss:$8 sps:$4 sm:$0xff]   ;;  %v4823_v51 = vld [vmem:[%s6435_s1 + $0xcb4] ss:$8 sps:$4 sm:$0xff]  }
 0x175   :  { %3361 = vmatprep.subr.bf16.mxu0 %v4751_v53  ;;  %v4844_v53 = vld [vmem:[%s6435_s1 + $0xdb4] ss:$8 sps:$4 sm:$0xff]  }
 0x177   :  { %3116 = vmatpush1.bf16.msra.mxu1 %v4746_v54  ;;  %v643_v54 = vrot.slane %v6169_v40, %v5057_v49  ;;  %v4827_v49 = vld [vmem:[%s6435_s1 + $0xcc0] ss:$8 sps:$4 sm:$0xff]   ;;  %v4835_v40 = vld [vmem:[%s6435_s1 + $0xcd4] ss:$8 sps:$4 sm:$0xff]  }
 0x178   :  { %3362 = vmatpush1.bf16.msra.mxu0 %v4749_v55  ;;  %3117 = vmatprep.subr.bf16.mxu1 %v4754_v56  ;;  %v4821_v55 = vld [vmem:[%s6435_s1 + $0xcb0] ss:$8 sps:$4 sm:$0xff]  }
 0x179   :  { %3363 = vmatprep.subr.bf16.mxu0 %v4757_v57  ;;  %v4842_v56 = vld [vmem:[%s6435_s1 + $0xdb0] ss:$8 sps:$4 sm:$0xff]   ;;  %v4829_v57 = vld [vmem:[%s6435_s1 + $0xcc4] ss:$8 sps:$4 sm:$0xff]  }
 0x17b   :  { %3118 = vmatpush1.bf16.msra.mxu1 %v4752_v43  ;;  %v651_v43 = vcombine.high %v643_v54, %v643_v54 }
 0x17c   :  { %3364 = vmatpush1.bf16.msra.mxu0 %v4755_v62  ;;  %3119 = vmatprep.subr.bf16.mxu1 %v4760_v63  ;;  %v4833_v62 = vld [vmem:[%s6435_s1 + $0xcd0] ss:$8 sps:$4 sm:$0xff]   ;;  %v4841_v63 = vld [vmem:[%s6435_s1 + $0xce4] ss:$8 sps:$4 sm:$0xff]  }
 0x17d   :  { %3365 = vmatprep.subr.bf16.mxu0 %v4763_v22  ;;  %v4839_v22 = vld [vmem:[%s6435_s1 + $0xce0] ss:$8 sps:$4 sm:$0xff]  }
 0x17f   :  { %3120 = vmatpush1.bf16.msra.mxu1 %v4758_v0  ;;  %v4845_v0 = vld [vmem:[%s6435_s1 + $0xcf0] ss:$8 sps:$4 sm:$0xff]   ;;  %s3644_s1 = sshll.u32 %s4891_s10, 4  ;;  %s3645_s1 = int_to_ptr.vmem [resolvable:$true] %s3644_s1 }
 0x180   :  { %3366 = vmatpush1.bf16.msra.mxu0 %v4761_v1  ;;  %3417 = vmatprep.subr.bf16.mxu1 %v4778_v3  ;;  %v4848_v1 = vld [vmem:[%s6437_s3 + $0x40] sm:$0xff]   ;;  %v4850_v3 = vld [vmem:[%s6437_s3 + $0x48] sm:$0xff]   ;;  %s4866_s11 = scalar_lea.vmem %s3645_s1, 32  ;;  %p4871_p1 = scmp.lt.s32.totalorder %s3645_s1, %s3645_s1 }
 0x181   :  { %3376 = vmatprep.subr.bf16.mxu0 %v4766_v2  ;;  %v4849_v2 = vld [vmem:[%s6437_s3] sm:$0xff]   ;;  %p4867_p0 = scmp.ne.s32.totalorder %s3645_s1, %s4866_s11  ;;  %p4872_p2 = scmp.lt.s32.totalorder %s4866_s11, %s4866_s11 }
 0x182   :  { %3122 = vmatmul.mubr.bf16.vlgmr.msra.gmra.mrb[0].mxu1 %v576_v59  ;;  %v4852_v59 = vld [vmem:[%s6437_s3 + $0x50] sm:$0xff]  }
 0x183   :  { %3368 = vmatmul.mubr.bf16.vlgmr.msra.gmra.mrb[0].mxu0 %v626_v4  ;;  %3418 = vmatpush1.bf16.msra.mxu1 %v4776_v6  ;;  %v4853_v4 = vld [vmem:[%s6437_s3 + $0x10] sm:$0xff]   ;;  %v4855_v6 = vld [vmem:[%s6437_s3 + $0x18] sm:$0xff]   ;;  %p4873_p3 = por %p4872_p2, %p4871_p1 }
 0x184   :  { %3377 = vmatpush1.bf16.msra.mxu0 %v4764_v5  ;;  %3419 = vmatprep.subr.bf16.mxu1 %v4784_v60  ;;  %v4854_v5 = vld [vmem:[%s6437_s3 + $0x58] sm:$0xff]   ;;  %v4857_v60 = vld [vmem:[%s6437_s3 + $0x20] sm:$0xff]  }
 0x185   :  { %3378 = vmatprep.subr.bf16.mxu0 %v4769_v7  ;;  %4093 = vmatprep.mubr.msk.bf16.mxu1 %vm2880_vm0, %v652_v61  ;;  %v4856_v7 = vld [vmem:[%s6437_s3 + $0x60] sm:$0xff]   ;;  %v4858_v61 = vld [vmem:[%s6437_s3 + $0x68] sm:$0xff]   ;;  %p4874_p4 = pnand %p4873_p3, %p4867_p0 }
 0x186   :  { %3408 = vmatprep.mubr.bf16.mxu0 %v650_v58  ;;  %v4851_v58 = vld [vmem:[%s6437_s3 + $0x8] sm:$0xff]  }
 0x187   :  { %3420 = vmatpush1.bf16.msra.mxu1 %v4782_v9  ;;  %v4860_v9 = vld [vmem:[%s6437_s3 + $0x70] sm:$0xff]  }
 0x188   :  { %3379 = vmatpush1.bf16.msra.mxu0 %v4767_v8  ;;  %3421 = vmatprep.subr.bf16.mxu1 %v4790_v11  ;;  %v4859_v8 = vld [vmem:[%s6437_s3 + $0x28] sm:$0xff]   ;;  %v4862_v11 = vld [vmem:[%s6437_s3 + $0x78] sm:$0xff]  }
 0x189   :  { %3380 = vmatprep.subr.bf16.mxu0 %v4772_v10  ;;  %v4861_v10 = vld [vmem:[%s6437_s3 + $0x30] sm:$0xff]  }
 0x18b   :  { %3422 = vmatpush1.bf16.msra.mxu1 %v4788_v13 }
 0x18c   :  { %3381 = vmatpush1.bf16.msra.mxu0 %v4770_v12  ;;  %3423 = vmatprep.subr.bf16.mxu1 %v4796_v15  ;;  %v4863_v12 = vld [vmem:[%s6437_s3 + $0x38] sm:$0xff]  }
 0x18d   :  { %3382 = vmatprep.subr.bf16.mxu0 %v4775_v14 }
 0x18f   :  { %3424 = vmatpush1.bf16.msra.mxu1 %v4794_v19 }
 0x190   :  { %3383 = vmatpush1.bf16.msra.mxu0 %v4773_v16  ;;  %3425 = vmatprep.subr.bf16.mxu1 %v4802_v21 }
 0x191   :  { %3384 = vmatprep.subr.bf16.mxu0 %v4781_v20 }
 0x193   :  { %3426 = vmatpush1.bf16.msra.mxu1 %v4800_v23  ;;  %v470_v23 = vsub.s32 0, %v5039_v42 }
 0x194   :  { %3385 = vmatpush1.bf16.msra.mxu0 %v4779_v52  ;;  %3427 = vmatprep.subr.bf16.mxu1 %v4808_v25  ;;  %v474_v25 = vsub.s32 1, %v5039_v42 }
 0x195   :  { %3386 = vmatprep.subr.bf16.mxu0 %v4787_v24  ;;  %v466_v24 = vld [vmem:[%s6436_s2] sm:$0x3] }
 0x197   :  { %3428 = vmatpush1.bf16.msra.mxu1 %v4806_v27  ;;  %v475_v27 = vrot.slane %v466_v24, %v474_v25 }
 0x198   :  { %3387 = vmatpush1.bf16.msra.mxu0 %v4785_v26  ;;  %3429 = vmatprep.subr.bf16.mxu1 %v4814_v29  ;;  %v471_v26 = vrot.slane %v466_v24, %v470_v23 }
 0x199   :  { %3388 = vmatprep.subr.bf16.mxu0 %v4793_v28 }
 0x19b   :  { %3430 = vmatpush1.bf16.msra.mxu1 %v4812_v31 }
 0x19c   :  { %3389 = vmatpush1.bf16.msra.mxu0 %v4791_v30  ;;  %3431 = vmatprep.subr.bf16.mxu1 %v4820_v17 }
 0x19d   :  { %3390 = vmatprep.subr.bf16.mxu0 %v4799_v32 }
 0x19f   :  { %3432 = vmatpush1.bf16.msra.mxu1 %v4818_v36 }
 0x1a0   :  { %3391 = vmatpush1.bf16.msra.mxu0 %v4797_v34  ;;  %3433 = vmatprep.subr.bf16.mxu1 %v4826_v38 }
 0x1a1   :  { %3392 = vmatprep.subr.bf16.mxu0 %v4805_v37 }
 0x1a3   :  { %3434 = vmatpush1.bf16.msra.mxu1 %v4824_v44 }
 0x1a4   :  { %3393 = vmatpush1.bf16.msra.mxu0 %v4803_v39  ;;  %3435 = vmatprep.subr.bf16.mxu1 %v4832_v33 }
 0x1a5   :  { %3394 = vmatprep.subr.bf16.mxu0 %v4811_v45 }
 0x1a7   :  { %3436 = vmatpush1.bf16.msra.mxu1 %v4830_v47  ;;  %v4094_v47 = vld [vmem:[%s6438_s4] ss:$0 sm:$0xff] }
 0x1a8   :  { %3395 = vmatpush1.bf16.msra.mxu0 %v4809_v46  ;;  %3437 = vmatprep.subr.bf16.mxu1 %v4838_v18 }
 0x1a9   :  { %3396 = vmatprep.subr.bf16.mxu0 %v4817_v48 }
 0x1ab   :  { %3438 = vmatpush1.bf16.msra.mxu1 %v4836_v50 }
 0x1ac   :  { %3397 = vmatpush1.bf16.msra.mxu0 %v4815_v41  ;;  %3439 = vmatprep.subr.bf16.mxu1 %v4844_v53 }
 0x1ad   :  { %3398 = vmatprep.subr.bf16.mxu0 %v4823_v51 }
 0x1af   :  { %3440 = vmatpush1.bf16.msra.mxu1 %v4842_v56 }
 0x1b0   :  { %3399 = vmatpush1.bf16.msra.mxu0 %v4821_v55  ;;  %4111 = vmatprep.subr.bf16.mxu1 %v4848_v1 }
 0x1b1   :  { %3400 = vmatprep.subr.bf16.mxu0 %v4829_v57 }
 0x1b2   :  { %3450 = vmatmul.mubr.bf16.vlgmr.msra.gmra.mrb[4].mxu1 %v651_v43 }
 0x1b3   :  { %4112 = vmatpush3.bf16.msra.mxu1 %v4849_v2 }
 0x1b4   :  { %3401 = vmatpush1.bf16.msra.mxu0 %v4827_v49  ;;  %4113 = vmatprep.subr.bf16.mxu1 %v4850_v3 }
 0x1b5   :  { %3402 = vmatprep.subr.bf16.mxu0 %v4835_v40 }
 0x1b7   :  { %4114 = vmatpush3.bf16.msra.mxu1 %v4851_v58 }
 0x1b8   :  { %3403 = vmatpush1.bf16.msra.mxu0 %v4833_v62  ;;  %4115 = vmatprep.subr.bf16.mxu1 %v4852_v59 }
 0x1b9   :  { %3404 = vmatprep.subr.bf16.mxu0 %v4841_v63 }
 0x1bb   :  { %4116 = vmatpush3.bf16.msra.mxu1 %v4853_v4 }
 0x1bc   :  { %3405 = vmatpush1.bf16.msra.mxu0 %v4839_v22  ;;  %4117 = vmatprep.subr.bf16.mxu1 %v4854_v5 }
 0x1bd   :  { %3406 = vmatprep.subr.bf16.mxu0 %v4847_v35 }
 0x1bf   :  { %4118 = vmatpush3.bf16.msra.mxu1 %v4855_v6 }
 0x1c0   :  { %3407 = vmatpush1.bf16.msra.mxu0 %v4845_v0  ;;  %4119 = vmatprep.subr.bf16.mxu1 %v4856_v7 }
 0x1c3   :  { %3409 = vmatmul.mubr.bf16.vlgmr.msra.gmra.mrb[0].mxu0 %v643_v54  ;;  %4120 = vmatpush3.bf16.msra.mxu1 %v4857_v60 }
 0x1c4   :  { %4121 = vmatprep.subr.bf16.mxu1 %v4858_v61 }
 0x1c7   :  { %4122 = vmatpush3.bf16.msra.mxu1 %v4859_v8 }
 0x1c8   :  { %4123 = vmatprep.subr.bf16.mxu1 %v4860_v9 }
 0x1cb   :  { %4124 = vmatpush3.bf16.msra.mxu1 %v4861_v10 }
 0x1cc   :  { %4125 = vmatprep.subr.bf16.mxu1 %v4862_v11 }
 0x1cf   :  { %4126 = vmatpush3.bf16.msra.mxu1 %v4863_v12 }
 0x255   :  { %v3123_v13 = vpop.f32.mrb[0].mxu1 }
 0x256   :  { %v3125_v14 = vpop.f32.mrb[1].mxu1  ;;  %v4133_v28 = vadd.f32 %v3123_v13, %v471_v26 }
 0x257   :  { %v3127_v15 = vpop.f32.mrb[2].mxu1  ;;  %v4136_v29 = vadd.f32 %v3125_v14, %v475_v27 }
 0x258   :  { %v3128_v16 = vpop.f32.mrb[3].mxu1 }
 0x285   :  { %v3451_v19 = vpop.f32.mrb[4].mxu1 }
 0x286   :  { %v3453_v20 = vpop.f32.mrb[5].mxu1 }
 0x287   :  { %v3455_v21 = vpop.f32.mrb[6].mxu1 }
 0x288   :  { %v3456_v52 = vpop.f32.mrb[7].mxu1 }
 0x296   :  { %v3410_v30 = vpop.f32.mrb[0].mxu0 }
 0x297   :  { %v4134_v31 = vadd.f32 %v4133_v28, %v3410_v30  ;;  %v3412_v32 = vpop.f32.mrb[1].mxu0 }
 0x298   :  { %v4137_v17 = vadd.f32 %v4136_v29, %v3412_v32  ;;  %v3414_v34 = vpop.f32.mrb[2].mxu0 }
 0x299   :  { %v4135_v36 = vadd.f32 %v4134_v31, %v3451_v19  ;;  %v3415_v37 = vpop.f32.mrb[3].mxu0 }
 0x29a   :  { %v4138_v38 = vadd.f32 %v4137_v17, %v3453_v20 }
 0x29b   :  { %v3458_v39 = vmax.f32 %v4135_v36, 0.0 }
 0x29c   :  { %v3459_v44 = vmax.f32 %v4138_v38, 0.0 }
 0x29d   :  { %v3460_v33 = vpack.c.bf16 %v3458_v39, %v3458_v39 }
 0x29e   :  { %v3461_v45 = vpack.c.bf16 %v3459_v44, %v3459_v44 }
 0x2a0   :  { %3629 = vmatprep.mubr.bf16.mxu1 %v3461_v45 }
 0x2a1   :  { %3630 = vmatmul.mubr.bf16.vlgmr.msra.gmra.mrb[8].mxu1 %v3460_v33 }
 0x374   :  { %v4127_v46 = vpop.f32.mrb[8].mxu1 }
 0x375   :  { %v4128_v42 = vpop.f32.mrb[9].mxu1 }
 0x376   :  { %v4129_v48 = vadd.f32 %v4128_v42, %v4127_v46  ;;  %v4130_v18 = vpop.f32.mrb[10].mxu1 }
 0x377   :  { %v4131_v41 = vpop.f32.mrb[11].mxu1 }
 0x378   :  { %v3632_v50 = vadd.f32 %v4129_v48, %v4094_v47 }
 0x37a   :  { %3637 = vst [vmem:[#allocation2] sm:$0x3] %v3632_v50 }
 0x37b   :  { %4877 = shalt.err (!%p4874_p4)
}
 0x37c   :  { %s4878_s14 = scalar_lea.hbm %s6439_s5, 32 }
 0x37d   :  { %p4879_p5 = scmp.ne.s32.totalorder %s6439_s5, %s4878_s14  ;;  %p4882_p6 = scmp.lt.u32.totalorder %s4878_s14, %s6439_s5 }
 0x37f   :  { %p4884_p7 = pnand %p4882_p6, %p4879_p5 }
 0x381   :  { %4887 = shalt.err (!%p4884_p7)
}
 0x382   :  { %3647 = dma.vmem_to_hbm [thread:$0]  %s3645_s1, 32, %s6439_s5, [#allocation3]  }
 0x383   :  { %4888 = dma.done.wait [#allocation3], 32  }
 0x384   :  { %4889 = vsyncadd [#allocation3], 4294967264 }
 0x385   :  { %3651 = vsyncpa [#allocation3], 1 }

</bundles_post_ra>
